<compile_context>
chip_gen: v6e
topology: v6e:2x2x1
jax: 0.10.0
libtpu: 0.0.40
codegen_flags: <defaults>
</compile_context>

<pallas_src>
import jax
import jax.numpy as jnp
from jax import lax
from jax.experimental import pallas as pl
from jax.experimental.pallas import tpu as pltpu

EPS = 1e-5           # PyTorch BatchNorm1d default eps
TILE_B = 1024        # samples per grid step (batch tile on the MXU M axis)

# MXU operand dtype. bf16 operands + f32 accumulation is exact for the banded
# structure and ~2-4x faster than f32 multi-pass on every generation; the
# correctness check below uses a slightly wider (5e-3) tolerance accordingly.
MATMUL_DTYPE = jnp.bfloat16


# ---------------------------------------------------------------------------
# Pallas kernel: one grid step == TILE_B samples. Pure matmul + elementwise.
# ---------------------------------------------------------------------------
def conv_classifier_kernel(x_ref,
                           a1e, a1o, b1,
                           a2e, a2o, b2,
                           a3, b3,
                           d1w, d1b, d2w, d2b, ow, ob,
                           out_ref):
    dt = MATMUL_DTYPE

    def mm(x, w_ref):
        return jnp.dot(x, w_ref[...], preferred_element_type=jnp.float32)

    x = x_ref[...].astype(dt)                                     # (TB, L)
    # conv1 + BN + ReLU fused with MaxPool(2): even/odd-position banded
    # matrices; the 2:1 max is an elementwise VPU op (no pool matmuls).
    # max(relu(a+b), relu(c+b)) == max(max(a,c)+b, 0)  (exact).
    h = jnp.maximum(jnp.maximum(mm(x, a1e), mm(x, a1o)) + b1[...], 0.0)
    h = h.astype(dt)                                              # (TB, L/2*F1)
    # conv2 + BN + ReLU fused with MaxPool(2)
    h = jnp.maximum(jnp.maximum(mm(h, a2e), mm(h, a2o)) + b2[...], 0.0)
    h = h.astype(dt)                                              # (TB, L/4*F2)
    # final_conv + BN + ReLU (no pool)
    h = jnp.maximum(mm(h, a3) + b3[...], 0.0).astype(dt)          # (TB, L/4*64)
    # flatten + dense1 + ReLU (weight pre-packed to torch's NCL flatten order,
    # padded to 128 output lanes)
    z = jnp.maximum(mm(h, d1w) + d1b[...], 0.0).astype(dt)        # (TB, 128)
    # dense2 + ReLU (padded to 128 lanes)
    z = jnp.maximum(mm(z, d2w) + d2b[...], 0.0).astype(dt)        # (TB, 128)
    # output layer (zero-padded to 128 lanes) + sigmoid, lane-dense f32 store
    out_ref[...] = jax.nn.sigmoid(mm(z, ow) + ob[...])            # (TB, 128)


# ---------------------------------------------------------------------------
# Glue-side constant folding: BN fold, banded conv matrices with the MaxPool(2)
# even/odd selection folded in, dense-weight repacking / lane padding.
# ---------------------------------------------------------------------------
def _fold_bn(conv_p):
    # exact eval-mode BN fold: y = conv_nobias * scale + shift
    w, b, gamma, beta, mean, var = conv_p
    inv = gamma / jnp.sqrt(var + EPS)
    shift = beta + (b - mean) * inv
    return w, inv, shift


def _conv_band_matrix(w, scale, seq_len):
    """(seq_len*Cin, seq_len*Cout) matrix for Conv1d(k=3, pad=1), BN scale folded.

    Row index = l_in*Cin + c, column index = l_out*Cout + f,
    value = w[f, c, l_in - l_out + 1] * scale[f] inside the |l_in-l_out|<=1 band.
    """
    cout, cin, _ = w.shape
    ws = (w * scale[:, None, None]).astype(jnp.float32)      # (Cout, Cin, 3)
    row = jnp.arange(seq_len * cin)
    col = jnp.arange(seq_len * cout)
    l_in, c = row // cin, row % cin
    l_out, f = col // cout, col % cout
    k = l_in[:, None] - l_out[None, :] + 1
    valid = (k >= 0) & (k <= 2)
    vals = ws[f[None, :], c[:, None], jnp.clip(k, 0, 2)]
    return jnp.where(valid, vals, 0.0)


def _pooled_band_matrices(w, scale, seq_len):
    """Band matrix split into even/odd output-position halves.

    Since ReLU/bias are elementwise and MaxPool(2) selectors are pure column
    selections, pool(relu(x@A + b)) == max(relu(x@A_even + b), relu(x@A_odd + b))
    exactly — no selector matmuls needed in the kernel.
    """
    cout, cin, _ = w.shape
    full = _conv_band_matrix(w, scale, seq_len)               # (S*Cin, S*Cout)
    full = full.reshape(seq_len * cin, seq_len, cout)
    a_even = full[:, 0::2, :].reshape(seq_len * cin, (seq_len // 2) * cout)
    a_odd = full[:, 1::2, :].reshape(seq_len * cin, (seq_len // 2) * cout)
    return a_even, a_odd


def _round_up(n, m):
    return ((n + m - 1) // m) * m


def _pad2(a, rows, cols):
    return jnp.pad(a, ((0, rows - a.shape[0]), (0, cols - a.shape[1])))


def _const_spec(a):
    # constants: full-array blocks, same index every grid step (resident in VMEM)
    return pl.BlockSpec(a.shape, lambda t: (0, 0))


def conv_classifier_forward(params, cat_inputs, num_inputs, tile_b=TILE_B):
    # Embedding lookup + concat stays in glue (data-dependent gather).
    embs = [params["emb"][i][cat_inputs[:, i]] for i in range(len(params["emb"]))]
    x = jnp.concatenate(embs + [num_inputs], axis=1).astype(jnp.float32)  # (B, L)
    B, L = x.shape
    assert L % 4 == 0, "input_size must be divisible by 4 (two MaxPool(2) stages)"

    w1, s1, t1 = _fold_bn(params["conv1"])
    w2, s2, t2 = _fold_bn(params["conv2"])
    w3, s3, t3 = _fold_bn(params["conv3"])
    F1, F2, C3 = w1.shape[0], w2.shape[0], w3.shape[0]
    L2, L4 = L // 2, L // 4

    # conv1/conv2 with MaxPool(2) folded into even/odd column-selected bands
    a1e, a1o = _pooled_band_matrices(w1, s1, L)               # (L,     L2*F1) x2
    a2e, a2o = _pooled_band_matrices(w2, s2, L2)              # (L2*F1, L4*F2) x2
    a3 = _conv_band_matrix(w3, s3, L4)                        # (L4*F2, L4*C3)
    b1r = jnp.tile(t1, L2)[None, :]                           # (1, L2*F1)
    b2r = jnp.tile(t2, L4)[None, :]                           # (1, L4*F2)
    b3r = jnp.tile(t3, L4)[None, :]                           # (1, L4*C3)

    # dense head, repacked to the kernel's (position-major, channel-minor)
    # layout and zero-padded to 128 lanes end-to-end.
    W1, b1 = params["dense1"]
    D1 = W1.shape[0]
    Dp1 = _round_up(D1, 128)
    d1w = W1.T.reshape(C3, L4, D1).transpose(1, 0, 2).reshape(L4 * C3, D1)
    d1w = _pad2(d1w, L4 * C3, Dp1)                            # (L4*C3, Dp1)
    d1b = _pad2(b1[None, :], 1, Dp1)
    W2, b2 = params["dense2"]
    D2 = W2.shape[0]
    Dp2 = _round_up(D2, 128)
    d2w = _pad2(W2.T, Dp1, Dp2)                               # (Dp1, Dp2)
    d2b = _pad2(b2[None, :], 1, Dp2)
    Wo, bo = params["out"]
    ow = _pad2(Wo.T, Dp2, 128)                                # (Dp2, 128)
    ob = _pad2(bo[None, :], 1, 128)

    # MXU operands in bf16; bias rows / epilogue stay f32.
    a1e, a1o, a2e, a2o, a3, d1w, d2w, ow = (
        m.astype(MATMUL_DTYPE) for m in (a1e, a1o, a2e, a2o, a3, d1w, d2w, ow))

    # Batch tiling: big tiles to amortize per-step overhead, multiple of 256,
    # but keep >= 2 tiles for large batches so v7x's 2 TensorCores both work.
    tile_b = min(tile_b, _round_up(B, 256))
    if B > 256:
        tile_b = min(tile_b, _round_up(pl.cdiv(B, 2), 256))
    n_tiles = pl.cdiv(B, tile_b)
    b_pad = n_tiles * tile_b
    x_pad = jnp.pad(x, ((0, b_pad - B), (0, 0)))

    args = (x_pad, a1e, a1o, b1r, a2e, a2o, b2r, a3, b3r,
            d1w, d1b, d2w, d2b, ow, ob)

    out = pl.pallas_call(
        conv_classifier_kernel,
        out_shape=jax.ShapeDtypeStruct((b_pad, 128), jnp.float32),
        grid_spec=pltpu.PrefetchScalarGridSpec(
            num_scalar_prefetch=0,
            grid=(n_tiles,),
            in_specs=[pl.BlockSpec((tile_b, L), lambda t: (t, 0))]
                     + [_const_spec(a) for a in args[1:]],
            out_specs=pl.BlockSpec((tile_b, 128), lambda t: (t, 0)),
        ),
        compiler_params=pltpu.CompilerParams(
            dimension_semantics=("parallel",),          # v7x: tiles across 2 TCs
            vmem_limit_bytes=48 * 1024 * 1024,
        ),
    )(*args)
    return out[:B, 0:1]                                 # (B, 1)


# ---------------------------------------------------------------------------
# Pure-JAX reference (same math, torch-layout params) for verification.
# ---------------------------------------------------------------------------
def reference_forward(params, cat_inputs, num_inputs):
    embs = [params["emb"][i][cat_inputs[:, i]] for i in range(len(params["emb"]))]
    x = jnp.concatenate(embs + [num_inputs], axis=1).astype(jnp.float32)
    h = x[:, None, :]                                    # (B, 1, L)

    def block(h, conv_p, pool):
        w, b, g, beta, m, v = conv_p
        y = lax.conv_general_dilated(h, w, window_strides=(1,), padding=((1, 1),),
                                     dimension_numbers=("NCH", "OIH", "NCH"),
                                     precision=lax.Precision.HIGHEST)
        y = y + b[None, :, None]
        y = (y - m[None, :, None]) / jnp.sqrt(v + EPS)[None, :, None] \
            * g[None, :, None] + beta[None, :, None]
        y = jnp.maximum(y, 0.0)
        if pool:
            Bn, Cn, Ln = y.shape
            y = y.reshape(Bn, Cn, Ln // 2, 2).max(axis=-1)
        return y

    h = block(h, params["conv1"], True)
    h = block(h, params["conv2"], True)
    h = block(h, params["conv3"], False)
    flat = h.reshape(h.shape[0], -1)
    W1, b1 = params["dense1"]
    W2, b2 = params["dense2"]
    Wo, bo = params["out"]
    hi = lax.Precision.HIGHEST
    z = jnp.maximum(jnp.dot(flat, W1.T, precision=hi) + b1, 0.0)
    z = jnp.maximum(jnp.dot(z, W2.T, precision=hi) + b2, 0.0)
    return jax.nn.sigmoid(jnp.dot(z, Wo.T, precision=hi) + bo)


# ---------------------------------------------------------------------------
# Deterministic parameter construction (synthetic, torch-layout shapes).
# ---------------------------------------------------------------------------
def make_params(key, cat_dims, num_features, embedding_dim=4,
                conv_filters=(16, 32), dense_units=64):
    keys = iter(jax.random.split(key, 64))
    nrm = lambda shape, s: s * jax.random.normal(next(keys), shape, jnp.float32)

    params = {"emb": [nrm((v + 1, embedding_dim), 0.5) for v in cat_dims]}
    input_size = len(cat_dims) * embedding_dim + num_features

    def conv_block(cin, cout):
        w = nrm((cout, cin, 3), 0.2)
        b = nrm((cout,), 0.1)
        gamma = 1.0 + nrm((cout,), 0.1)
        beta = nrm((cout,), 0.1)
        mean = nrm((cout,), 0.1)
        var = 0.5 + jax.random.uniform(next(keys), (cout,), jnp.float32)
        return (w, b, gamma, beta, mean, var)

    params["conv1"] = conv_block(1, conv_filters[0])
    params["conv2"] = conv_block(conv_filters[0], conv_filters[1])
    params["conv3"] = conv_block(conv_filters[1], 64)        # final_conv -> 64

    flattened = 64 * (input_size // (2 ** len(conv_filters)))
    params["dense1"] = (nrm((dense_units, flattened), 0.05), nrm((dense_units,), 0.05))
    params["dense2"] = (nrm((dense_units // 2, dense_units), 0.1),
                        nrm((dense_units // 2,), 0.05))
    params["out"] = (nrm((1, dense_units // 2), 0.1), nrm((1,), 0.05))
    return params


if __name__ == "__main__":
    cat_dims = [10, 7, 5]          # 3 categorical features
    num_features = 20              # -> input_size = 3*4 + 20 = 32
    B = 2

    key = jax.random.PRNGKey(0)
    k_param, k_cat, k_num = jax.random.split(key, 3)
    params = make_params(k_param, cat_dims, num_features)

    cols = [jax.random.randint(jax.random.fold_in(k_cat, i), (B,), 0, v + 1)
            for i, v in enumerate(cat_dims)]
    cat_inputs = jnp.stack(cols, axis=1).astype(jnp.int32)   # (B, 3)
    num_inputs = jax.random.normal(k_num, (B, num_features), jnp.float32)

    out = conv_classifier_forward(params, cat_inputs, num_inputs)
    out = jax.block_until_ready(out)

    ref = reference_forward(params, cat_inputs, num_inputs)
    assert out.shape == (B, 1), out.shape
    # bf16 MXU operands / f32 accumulation vs f32-HIGHEST reference: 5e-3 on a
    # sigmoid output still catches any structural (layout/fold) error.
    assert jnp.allclose(out, ref, atol=5e-3, rtol=5e-3), (out, ref)
    print("KERNEL_OK")
</pallas_src>

<mosaic_0001>
module attributes {stable_mosaic.version = 11 : i64} {
  func.func @conv_classifier_kernel(%arg0: i32, %arg1: memref<256x32xf32, #tpu.memory_space<vmem>>, %arg2: memref<32x256xbf16, #tpu.memory_space<vmem>>, %arg3: memref<32x256xbf16, #tpu.memory_space<vmem>>, %arg4: memref<1x256xf32, #tpu.memory_space<vmem>>, %arg5: memref<256x256xbf16, #tpu.memory_space<vmem>>, %arg6: memref<256x256xbf16, #tpu.memory_space<vmem>>, %arg7: memref<1x256xf32, #tpu.memory_space<vmem>>, %arg8: memref<256x512xbf16, #tpu.memory_space<vmem>>, %arg9: memref<1x512xf32, #tpu.memory_space<vmem>>, %arg10: memref<512x128xbf16, #tpu.memory_space<vmem>>, %arg11: memref<1x128xf32, #tpu.memory_space<vmem>>, %arg12: memref<128x128xbf16, #tpu.memory_space<vmem>>, %arg13: memref<1x128xf32, #tpu.memory_space<vmem>>, %arg14: memref<128x128xbf16, #tpu.memory_space<vmem>>, %arg15: memref<1x128xf32, #tpu.memory_space<vmem>>, %arg16: memref<256x128xf32, #tpu.memory_space<vmem>>) attributes {dimension_semantics = [#tpu.dimension_semantics<parallel>], iteration_bounds = array<i64: 1>, scalar_prefetch = 0 : i64, scratch_operands = 0 : i64, tpu.core_type = #tpu.core_type<tc>, window_params = [{transform_indices = @transform_0, window_bounds = array<i64: 256, 32>}, {pipeline_mode = #tpu.pipeline_mode<synchronous>, transform_indices = @transform_1, window_bounds = array<i64: 32, 256>}, {pipeline_mode = #tpu.pipeline_mode<synchronous>, transform_indices = @transform_2, window_bounds = array<i64: 32, 256>}, {pipeline_mode = #tpu.pipeline_mode<synchronous>, transform_indices = @transform_3, window_bounds = array<i64: 1, 256>}, {pipeline_mode = #tpu.pipeline_mode<synchronous>, transform_indices = @transform_4, window_bounds = array<i64: 256, 256>}, {pipeline_mode = #tpu.pipeline_mode<synchronous>, transform_indices = @transform_5, window_bounds = array<i64: 256, 256>}, {pipeline_mode = #tpu.pipeline_mode<synchronous>, transform_indices = @transform_6, window_bounds = array<i64: 1, 256>}, {pipeline_mode = #tpu.pipeline_mode<synchronous>, transform_indices = @transform_7, window_bounds = array<i64: 256, 512>}, {pipeline_mode = #tpu.pipeline_mode<synchronous>, transform_indices = @transform_8, window_bounds = array<i64: 1, 512>}, {pipeline_mode = #tpu.pipeline_mode<synchronous>, transform_indices = @transform_9, window_bounds = array<i64: 512, 128>}, {pipeline_mode = #tpu.pipeline_mode<synchronous>, transform_indices = @transform_10, window_bounds = array<i64: 1, 128>}, {pipeline_mode = #tpu.pipeline_mode<synchronous>, transform_indices = @transform_11, window_bounds = array<i64: 128, 128>}, {pipeline_mode = #tpu.pipeline_mode<synchronous>, transform_indices = @transform_12, window_bounds = array<i64: 1, 128>}, {pipeline_mode = #tpu.pipeline_mode<synchronous>, transform_indices = @transform_13, window_bounds = array<i64: 128, 128>}, {pipeline_mode = #tpu.pipeline_mode<synchronous>, transform_indices = @transform_14, window_bounds = array<i64: 1, 128>}, {transform_indices = @transform_15, window_bounds = array<i64: 256, 128>}]} {
    %c0 = arith.constant 0 : index
    %c0_0 = arith.constant 0 : index
    %0 = vector.load %arg1[%c0, %c0_0] : memref<256x32xf32, #tpu.memory_space<vmem>>, vector<256x32xf32>
    %1 = arith.truncf %0 : vector<256x32xf32> to vector<256x32xbf16>
    %c0_1 = arith.constant 0 : index
    %c0_2 = arith.constant 0 : index
    %2 = vector.load %arg2[%c0_1, %c0_2] : memref<32x256xbf16, #tpu.memory_space<vmem>>, vector<32x256xbf16>
    %cst = arith.constant dense<0.000000e+00> : vector<256x256xf32>
    %3 = tpu.matmul %1, %2, %cst {dimension_numbers = #tpu.dot_dimension_numbers<[1], [0], [0], [1], [0, 0, 1, 1], [], []>} : vector<256x32xbf16>, vector<32x256xbf16>, vector<256x256xf32> -> vector<256x256xf32>
    %c0_3 = arith.constant 0 : index
    %c0_4 = arith.constant 0 : index
    %4 = vector.load %arg3[%c0_3, %c0_4] : memref<32x256xbf16, #tpu.memory_space<vmem>>, vector<32x256xbf16>
    %cst_5 = arith.constant dense<0.000000e+00> : vector<256x256xf32>
    %5 = tpu.matmul %1, %4, %cst_5 {dimension_numbers = #tpu.dot_dimension_numbers<[1], [0], [0], [1], [0, 0, 1, 1], [], []>} : vector<256x32xbf16>, vector<32x256xbf16>, vector<256x256xf32> -> vector<256x256xf32>
    %6 = arith.maximumf %3, %5 : vector<256x256xf32>
    %c0_6 = arith.constant 0 : index
    %c0_7 = arith.constant 0 : index
    %7 = vector.load %arg4[%c0_6, %c0_7] : memref<1x256xf32, #tpu.memory_space<vmem>>, vector<1x256xf32>
    %8 = vector.broadcast %7 : vector<1x256xf32> to vector<256x256xf32>
    %9 = arith.addf %6, %8 : vector<256x256xf32>
    %cst_8 = arith.constant 0.000000e+00 : f32
    %10 = vector.broadcast %cst_8 : f32 to vector<256x256xf32>
    %11 = arith.maximumf %9, %10 : vector<256x256xf32>
    %12 = arith.truncf %11 : vector<256x256xf32> to vector<256x256xbf16>
    %c0_9 = arith.constant 0 : index
    %c0_10 = arith.constant 0 : index
    %13 = vector.load %arg5[%c0_9, %c0_10] : memref<256x256xbf16, #tpu.memory_space<vmem>>, vector<256x256xbf16>
    %cst_11 = arith.constant dense<0.000000e+00> : vector<256x256xf32>
    %14 = tpu.matmul %12, %13, %cst_11 {dimension_numbers = #tpu.dot_dimension_numbers<[1], [0], [0], [1], [0, 0, 1, 1], [], []>} : vector<256x256xbf16>, vector<256x256xbf16>, vector<256x256xf32> -> vector<256x256xf32>
    %c0_12 = arith.constant 0 : index
    %c0_13 = arith.constant 0 : index
    %15 = vector.load %arg6[%c0_12, %c0_13] : memref<256x256xbf16, #tpu.memory_space<vmem>>, vector<256x256xbf16>
    %cst_14 = arith.constant dense<0.000000e+00> : vector<256x256xf32>
    %16 = tpu.matmul %12, %15, %cst_14 {dimension_numbers = #tpu.dot_dimension_numbers<[1], [0], [0], [1], [0, 0, 1, 1], [], []>} : vector<256x256xbf16>, vector<256x256xbf16>, vector<256x256xf32> -> vector<256x256xf32>
    %17 = arith.maximumf %14, %16 : vector<256x256xf32>
    %c0_15 = arith.constant 0 : index
    %c0_16 = arith.constant 0 : index
    %18 = vector.load %arg7[%c0_15, %c0_16] : memref<1x256xf32, #tpu.memory_space<vmem>>, vector<1x256xf32>
    %19 = vector.broadcast %18 : vector<1x256xf32> to vector<256x256xf32>
    %20 = arith.addf %17, %19 : vector<256x256xf32>
    %cst_17 = arith.constant 0.000000e+00 : f32
    %21 = vector.broadcast %cst_17 : f32 to vector<256x256xf32>
    %22 = arith.maximumf %20, %21 : vector<256x256xf32>
    %23 = arith.truncf %22 : vector<256x256xf32> to vector<256x256xbf16>
    %c0_18 = arith.constant 0 : index
    %c0_19 = arith.constant 0 : index
    %24 = vector.load %arg8[%c0_18, %c0_19] : memref<256x512xbf16, #tpu.memory_space<vmem>>, vector<256x512xbf16>
    %cst_20 = arith.constant dense<0.000000e+00> : vector<256x512xf32>
    %25 = tpu.matmul %23, %24, %cst_20 {dimension_numbers = #tpu.dot_dimension_numbers<[1], [0], [0], [1], [0, 0, 1, 1], [], []>} : vector<256x256xbf16>, vector<256x512xbf16>, vector<256x512xf32> -> vector<256x512xf32>
    %c0_21 = arith.constant 0 : index
    %c0_22 = arith.constant 0 : index
    %26 = vector.load %arg9[%c0_21, %c0_22] : memref<1x512xf32, #tpu.memory_space<vmem>>, vector<1x512xf32>
    %27 = vector.broadcast %26 : vector<1x512xf32> to vector<256x512xf32>
    %28 = arith.addf %25, %27 : vector<256x512xf32>
    %cst_23 = arith.constant 0.000000e+00 : f32
    %29 = vector.broadcast %cst_23 : f32 to vector<256x512xf32>
    %30 = arith.maximumf %28, %29 : vector<256x512xf32>
    %31 = arith.truncf %30 : vector<256x512xf32> to vector<256x512xbf16>
    %c0_24 = arith.constant 0 : index
    %c0_25 = arith.constant 0 : index
    %32 = vector.load %arg10[%c0_24, %c0_25] : memref<512x128xbf16, #tpu.memory_space<vmem>>, vector<512x128xbf16>
    %cst_26 = arith.constant dense<0.000000e+00> : vector<256x128xf32>
    %33 = tpu.matmul %31, %32, %cst_26 {dimension_numbers = #tpu.dot_dimension_numbers<[1], [0], [0], [1], [0, 0, 1, 1], [], []>} : vector<256x512xbf16>, vector<512x128xbf16>, vector<256x128xf32> -> vector<256x128xf32>
    %c0_27 = arith.constant 0 : index
    %c0_28 = arith.constant 0 : index
    %34 = vector.load %arg11[%c0_27, %c0_28] : memref<1x128xf32, #tpu.memory_space<vmem>>, vector<1x128xf32>
    %35 = vector.broadcast %34 : vector<1x128xf32> to vector<256x128xf32>
    %36 = arith.addf %33, %35 : vector<256x128xf32>
    %cst_29 = arith.constant 0.000000e+00 : f32
    %37 = vector.broadcast %cst_29 : f32 to vector<256x128xf32>
    %38 = arith.maximumf %36, %37 : vector<256x128xf32>
    %39 = arith.truncf %38 : vector<256x128xf32> to vector<256x128xbf16>
    %c0_30 = arith.constant 0 : index
    %c0_31 = arith.constant 0 : index
    %40 = vector.load %arg12[%c0_30, %c0_31] : memref<128x128xbf16, #tpu.memory_space<vmem>>, vector<128x128xbf16>
    %cst_32 = arith.constant dense<0.000000e+00> : vector<256x128xf32>
    %41 = tpu.matmul %39, %40, %cst_32 {dimension_numbers = #tpu.dot_dimension_numbers<[1], [0], [0], [1], [0, 0, 1, 1], [], []>} : vector<256x128xbf16>, vector<128x128xbf16>, vector<256x128xf32> -> vector<256x128xf32>
    %c0_33 = arith.constant 0 : index
    %c0_34 = arith.constant 0 : index
    %42 = vector.load %arg13[%c0_33, %c0_34] : memref<1x128xf32, #tpu.memory_space<vmem>>, vector<1x128xf32>
    %43 = vector.broadcast %42 : vector<1x128xf32> to vector<256x128xf32>
    %44 = arith.addf %41, %43 : vector<256x128xf32>
    %cst_35 = arith.constant 0.000000e+00 : f32
    %45 = vector.broadcast %cst_35 : f32 to vector<256x128xf32>
    %46 = arith.maximumf %44, %45 : vector<256x128xf32>
    %47 = arith.truncf %46 : vector<256x128xf32> to vector<256x128xbf16>
    %c0_36 = arith.constant 0 : index
    %c0_37 = arith.constant 0 : index
    %48 = vector.load %arg14[%c0_36, %c0_37] : memref<128x128xbf16, #tpu.memory_space<vmem>>, vector<128x128xbf16>
    %cst_38 = arith.constant dense<0.000000e+00> : vector<256x128xf32>
    %49 = tpu.matmul %47, %48, %cst_38 {dimension_numbers = #tpu.dot_dimension_numbers<[1], [0], [0], [1], [0, 0, 1, 1], [], []>} : vector<256x128xbf16>, vector<128x128xbf16>, vector<256x128xf32> -> vector<256x128xf32>
    %c0_39 = arith.constant 0 : index
    %c0_40 = arith.constant 0 : index
    %50 = vector.load %arg15[%c0_39, %c0_40] : memref<1x128xf32, #tpu.memory_space<vmem>>, vector<1x128xf32>
    %51 = vector.broadcast %50 : vector<1x128xf32> to vector<256x128xf32>
    %52 = arith.addf %49, %51 : vector<256x128xf32>
    %53 = arith.negf %52 : vector<256x128xf32>
    %54 = math.exp %53 : vector<256x128xf32>
    %cst_41 = arith.constant 1.000000e+00 : f32
    %55 = vector.broadcast %cst_41 : f32 to vector<256x128xf32>
    %56 = arith.addf %55, %54 : vector<256x128xf32>
    %57 = arith.divf %55, %56 : vector<256x128xf32>
    %c0_42 = arith.constant 0 : index
    %c0_43 = arith.constant 0 : index
    %58 = vector.load %arg16[%c0_42, %c0_43] : memref<256x128xf32, #tpu.memory_space<vmem>>, vector<256x128xf32>
    tpu.vector_store %arg16[%c0_42, %c0_43], %57 {strides = array<i32>} : memref<256x128xf32, #tpu.memory_space<vmem>>, vector<256x128xf32>,
    return
  }
  func.func @transform_0(%arg0: i32) -> (i32, i32) {
    %c0_i32 = arith.constant 0 : i32
    %c0_i32_0 = arith.constant 0 : i32
    return %arg0, %c0_i32 : i32, i32
  }
  func.func @transform_1(%arg0: i32) -> (i32, i32) {
    %c0_i32 = arith.constant 0 : i32
    %c0_i32_0 = arith.constant 0 : i32
    %c0_i32_1 = arith.constant 0 : i32
    return %c0_i32, %c0_i32_0 : i32, i32
  }
  func.func @transform_2(%arg0: i32) -> (i32, i32) {
    %c0_i32 = arith.constant 0 : i32
    %c0_i32_0 = arith.constant 0 : i32
    %c0_i32_1 = arith.constant 0 : i32
    return %c0_i32, %c0_i32_0 : i32, i32
  }
  func.func @transform_3(%arg0: i32) -> (i32, i32) {
    %c0_i32 = arith.constant 0 : i32
    %c0_i32_0 = arith.constant 0 : i32
    %c0_i32_1 = arith.constant 0 : i32
    return %c0_i32, %c0_i32_0 : i32, i32
  }
  func.func @transform_4(%arg0: i32) -> (i32, i32) {
    %c0_i32 = arith.constant 0 : i32
    %c0_i32_0 = arith.constant 0 : i32
    %c0_i32_1 = arith.constant 0 : i32
    return %c0_i32, %c0_i32_0 : i32, i32
  }
  func.func @transform_5(%arg0: i32) -> (i32, i32) {
    %c0_i32 = arith.constant 0 : i32
    %c0_i32_0 = arith.constant 0 : i32
    %c0_i32_1 = arith.constant 0 : i32
    return %c0_i32, %c0_i32_0 : i32, i32
  }
  func.func @transform_6(%arg0: i32) -> (i32, i32) {
    %c0_i32 = arith.constant 0 : i32
    %c0_i32_0 = arith.constant 0 : i32
    %c0_i32_1 = arith.constant 0 : i32
    return %c0_i32, %c0_i32_0 : i32, i32
  }
  func.func @transform_7(%arg0: i32) -> (i32, i32) {
    %c0_i32 = arith.constant 0 : i32
    %c0_i32_0 = arith.constant 0 : i32
    %c0_i32_1 = arith.constant 0 : i32
    return %c0_i32, %c0_i32_0 : i32, i32
  }
  func.func @transform_8(%arg0: i32) -> (i32, i32) {
    %c0_i32 = arith.constant 0 : i32
    %c0_i32_0 = arith.constant 0 : i32
    %c0_i32_1 = arith.constant 0 : i32
    return %c0_i32, %c0_i32_0 : i32, i32
  }
  func.func @transform_9(%arg0: i32) -> (i32, i32) {
    %c0_i32 = arith.constant 0 : i32
    %c0_i32_0 = arith.constant 0 : i32
    %c0_i32_1 = arith.constant 0 : i32
    return %c0_i32, %c0_i32_0 : i32, i32
  }
  func.func @transform_10(%arg0: i32) -> (i32, i32) {
    %c0_i32 = arith.constant 0 : i32
    %c0_i32_0 = arith.constant 0 : i32
    %c0_i32_1 = arith.constant 0 : i32
    return %c0_i32, %c0_i32_0 : i32, i32
  }
  func.func @transform_11(%arg0: i32) -> (i32, i32) {
    %c0_i32 = arith.constant 0 : i32
    %c0_i32_0 = arith.constant 0 : i32
    %c0_i32_1 = arith.constant 0 : i32
    return %c0_i32, %c0_i32_0 : i32, i32
  }
  func.func @transform_12(%arg0: i32) -> (i32, i32) {
    %c0_i32 = arith.constant 0 : i32
    %c0_i32_0 = arith.constant 0 : i32
    %c0_i32_1 = arith.constant 0 : i32
    return %c0_i32, %c0_i32_0 : i32, i32
  }
  func.func @transform_13(%arg0: i32) -> (i32, i32) {
    %c0_i32 = arith.constant 0 : i32
    %c0_i32_0 = arith.constant 0 : i32
    %c0_i32_1 = arith.constant 0 : i32
    return %c0_i32, %c0_i32_0 : i32, i32
  }
  func.func @transform_14(%arg0: i32) -> (i32, i32) {
    %c0_i32 = arith.constant 0 : i32
    %c0_i32_0 = arith.constant 0 : i32
    %c0_i32_1 = arith.constant 0 : i32
    return %c0_i32, %c0_i32_0 : i32, i32
  }
  func.func @transform_15(%arg0: i32) -> (i32, i32) {
    %c0_i32 = arith.constant 0 : i32
    %c0_i32_0 = arith.constant 0 : i32
    return %arg0, %c0_i32 : i32, i32
  }
}

</mosaic_0001>

<bundles_post_ra>
// kernel: tpu_custom_call.1
= control target key start
LH: loop header
LB: loop body
LE: loop exit
PB: predicated region body
PF: predicated region fallthrough
CT: control target
= control target key end

     0   :  { %20 = vsyncpa [#allocation3], 0  ;;  %s6258_s0 = inlined_call_operand.vmem [shape: f32[256,32], index: 0, kind: input, shape index: {}]   ;;  %s6259_s1 = inlined_call_operand.hbm [shape: bf16[32,256], index: 1, kind: input, shape index: {}]   ;;  %s6260_s2 = inlined_call_operand.hbm [shape: bf16[32,256], index: 2, kind: input, shape index: {}]   ;;  %s6261_s3 = inlined_call_operand.vmem [shape: f32[1,256], index: 3, kind: input, shape index: {}]   ;;  %s6262_s4 = inlined_call_operand.vmem [shape: bf16[256,256], index: 4, kind: input, shape index: {}]   ;;  %s6263_s5 = inlined_call_operand.hbm [shape: bf16[256,256], index: 5, kind: input, shape index: {}]   ;;  %s6264_s6 = inlined_call_operand.vmem [shape: f32[1,256], index: 6, kind: input, shape index: {}]   ;;  %s6265_s7 = inlined_call_operand.hbm [shape: bf16[256,512], index: 7, kind: input, shape index: {}]   ;;  %s6266_s8 = inlined_call_operand.vmem [shape: f32[1,512], index: 8, kind: input, shape index: {}]   ;;  %s6267_s9 = inlined_call_operand.hbm [shape: bf16[512,128], index: 9, kind: input, shape index: {}]   ;;  %s6268_s10 = inlined_call_operand.vmem [shape: f32[1,128], index: 10, kind: input, shape index: {}]   ;;  %s6269_s11 = inlined_call_operand.vmem [shape: bf16[128,128], index: 11, kind: input, shape index: {}]   ;;  %s6270_s12 = inlined_call_operand.vmem [shape: f32[1,128], index: 12, kind: input, shape index: {}]   ;;  %s6271_s13 = inlined_call_operand.hbm [shape: bf16[128,128], index: 13, kind: input, shape index: {}]   ;;  %s6272_s14 = inlined_call_operand.vmem [shape: f32[1,128], index: 14, kind: input, shape index: {}]   ;;  %s6273_s15 = inlined_call_operand.hbm [shape: f32[256,128], index: 15, kind: output, shape index: {}]  }
   0x1   :  { %21 = vsyncpa [#allocation6], 0 }
   0x2   :  { %22 = vsyncpa [#allocation9], 0 }
   0x3   :  { %23 = vsyncpa [#allocation12], 0 }
   0x4   :  { %24 = vsyncpa [#allocation4], 0  ;;  %s5443_s18 = smov [#allocation5]   ;;  %s5444_s20 = smov [#allocation8]  }
   0x5   :  { %s44_s19 = sshll.u32 %s5443_s18, 4  ;;  %s74_s21 = sshll.u32 %s5444_s20, 4  ;;  %s45_s19 = int_to_ptr.vmem [resolvable:$true] %s44_s19  ;;  %s75_s21 = int_to_ptr.vmem [resolvable:$true] %s74_s21 }
   0x6   :  { %s5301_s22 = scalar_lea.vmem %s45_s19, 512  ;;  %p5306_p1 = scmp.lt.s32.totalorder %s45_s19, %s45_s19 }
   0x7   :  { %p5302_p0 = scmp.ne.s32.totalorder %s45_s19, %s5301_s22  ;;  %p5307_p2 = scmp.lt.s32.totalorder %s5301_s22, %s5301_s22 }
   0x9   :  { %p5308_p3 = por %p5307_p2, %p5306_p1 }
   0xb   :  { %p5309_p4 = pnand %p5308_p3, %p5302_p0 }
   0xd   :  { %5312 = shalt.err (!%p5309_p4)
}
   0xe   :  { %s5445_s23 = smov 128   ;;  %s5446_s24 = smov 8  }
   0xf   :  { %50 = dma.hbm_to_vmem [thread:$0]  %s6260_s2, 512, %s45_s19, [#allocation6], %s5445_s23, %s5445_s23, %s5446_s24  }
  0x10   :  { %s5321_s27 = scalar_lea.vmem %s75_s21, 8192  ;;  %p5326_p6 = scmp.lt.s32.totalorder %s75_s21, %s75_s21 }
  0x11   :  { %p5322_p5 = scmp.ne.s32.totalorder %s75_s21, %s5321_s27  ;;  %p5327_p7 = scmp.lt.s32.totalorder %s5321_s27, %s5321_s27 }
  0x13   :  { %p5328_p8 = por %p5327_p7, %p5326_p6 }
  0x15   :  { %p5329_p9 = pnand %p5328_p8, %p5322_p5 }
  0x17   :  { %5332 = shalt.err (!%p5329_p9)
}
  0x18   :  { %s5447_s28 = smov 256   ;;  %s5448_s29 = smov 16  }
  0x19   :  { %80 = dma.hbm_to_vmem [thread:$0]  %s6265_s7, 8192, %s75_s21, [#allocation9], %s5447_s28, %s5447_s28, %s5448_s29  }
  0x1a   :  { %s5449_s17 = smov [#allocation2]   ;;  %s5450_s20 = smov [#allocation7]  }
  0x1b   :  { %s32_s18 = sshll.u32 %s5449_s17, 4  ;;  %s60_s22 = sshll.u32 %s5450_s20, 4  ;;  %s33_s18 = int_to_ptr.vmem [resolvable:$true] %s32_s18  ;;  %s61_s22 = int_to_ptr.vmem [resolvable:$true] %s60_s22 }
  0x1c   :  { %s5341_s2 = scalar_lea.vmem %s33_s18, 512  ;;  %p5346_p11 = scmp.lt.s32.totalorder %s33_s18, %s33_s18 }
  0x1d   :  { %p5342_p10 = scmp.ne.s32.totalorder %s33_s18, %s5341_s2  ;;  %p5347_p12 = scmp.lt.s32.totalorder %s5341_s2, %s5341_s2 }
  0x1f   :  { %p5348_p13 = por %p5347_p12, %p5346_p11 }
  0x21   :  { %p5349_p0 = pnand %p5348_p13, %p5342_p10 }
  0x23   :  { %5352 = shalt.err (!%p5349_p0)
}
  0x24   :  { %38 = dma.hbm_to_vmem [thread:$0]  %s6259_s1, 512, %s33_s18, [#allocation3], %s5445_s23, %s5445_s23, %s5446_s24  }
  0x25   :  { %s5361_s7 = scalar_lea.vmem %s61_s22, 4096  ;;  %p5366_p2 = scmp.lt.s32.totalorder %s61_s22, %s61_s22 }
  0x26   :  { %p5362_p1 = scmp.ne.s32.totalorder %s61_s22, %s5361_s7  ;;  %p5367_p3 = scmp.lt.s32.totalorder %s5361_s7, %s5361_s7 }
  0x28   :  { %p5368_p4 = por %p5367_p3, %p5366_p2 }
  0x2a   :  { %p5369_p5 = pnand %p5368_p4, %p5362_p1 }
  0x2c   :  { %5372 = shalt.err (!%p5369_p5)
}
  0x2d   :  { %66 = dma.hbm_to_vmem [thread:$0]  %s6263_s5, 4096, %s61_s22, [#allocation6], %s5445_s23, %s5445_s23, %s5446_s24  }
  0x2e   :  { %s5451_s27 = smov [#allocation10]  }
  0x2f   :  { %s88_s28 = sshll.u32 %s5451_s27, 4  ;;  %s89_s28 = int_to_ptr.vmem [resolvable:$true] %s88_s28 }
  0x30   :  { %s5381_s29 = scalar_lea.vmem %s89_s28, 4096  ;;  %p5386_p7 = scmp.lt.s32.totalorder %s89_s28, %s89_s28 }
  0x31   :  { %p5382_p6 = scmp.ne.s32.totalorder %s89_s28, %s5381_s29  ;;  %p5387_p8 = scmp.lt.s32.totalorder %s5381_s29, %s5381_s29 }
  0x33   :  { %p5388_p9 = por %p5387_p8, %p5386_p7 }
  0x35   :  { %p5389_p10 = pnand %p5388_p9, %p5382_p6 }
  0x37   :  { %5392 = shalt.err (!%p5389_p10)
}
  0x38   :  { %s5452_s1 = smov 64   ;;  %s5453_s30 = smov 4  }
  0x39   :  { %94 = dma.hbm_to_vmem [thread:$0]  %s6267_s9, 4096, %s89_s28, [#allocation9], %s5452_s1, %s5452_s1, %s5453_s30  }
  0x3a   :  { %s5454_s18 = smov [#allocation11]  }
  0x3b   :  { %s106_s20 = sshll.u32 %s5454_s18, 4  ;;  %s107_s20 = int_to_ptr.vmem [resolvable:$true] %s106_s20 }
  0x3c   :  { %s5401_s5 = scalar_lea.vmem %s107_s20, 1024  ;;  %p5406_p12 = scmp.lt.s32.totalorder %s107_s20, %s107_s20 }
  0x3d   :  { %p5402_p11 = scmp.ne.s32.totalorder %s107_s20, %s5401_s5  ;;  %p5407_p13 = scmp.lt.s32.totalorder %s5401_s5, %s5401_s5 }
  0x3f   :  { %p5408_p0 = por %p5407_p13, %p5406_p12 }
  0x41   :  { %p5409_p1 = pnand %p5408_p0, %p5402_p11 }
  0x43   :  { %5412 = shalt.err (!%p5409_p1)
}
  0x44   :  { %112 = dma.hbm_to_vmem [thread:$0]  %s6271_s13, 1024, %s107_s20, [#allocation12], %s5452_s1, %s5452_s1, %s5453_s30  }
  0x45   :  { %5433 = dma.done.wait [#allocation3], 512  }
  0x46   :  { %5434 = vsyncadd [#allocation3], 4294966784 }
  0x47   :  { %5435 = dma.done.wait [#allocation6], 4608  }
  0x48   :  { %5436 = vsyncadd [#allocation6], 4294962688 }
  0x49   :  { %5437 = dma.done.wait [#allocation9], 12288  }
  0x4a   :  { %5438 = vsyncadd [#allocation9], 4294955008 }
  0x4b   :  { %5439 = dma.done.wait [#allocation12], 1024  }
  0x4c   :  { %5440 = vsyncadd [#allocation12], 4294966272  ;;  %v5455_v0 = vmov 0   ;;  %v4913_v1 = vld [vmem:[#allocation2 + $0x14] ss:$8 sps:$4 sm:$0xff]   ;;  %v134_v9 = vld [vmem:[%s6258_s0] sm:$0xff] }
  0x4d   :  { %287 = vmatprep.mubr.bf16.mxu0 %v5455_v0  ;;  %504 = vmatprep.mubr.bf16.mxu1 %v5455_v0  ;;  %v4915_v2 = vld [vmem:[#allocation5 + $0x14] ss:$8 sps:$4 sm:$0xff]   ;;  %v4917_v3 = vld [vmem:[#allocation2 + $0x10] ss:$8 sps:$4 sm:$0xff]   ;;  %v4919_v5 = vld [vmem:[#allocation2 + $0x4] ss:$8 sps:$4 sm:$0xff]  }
  0x4e   :  { %267 = vmatprep.subr.bf16.mxu0 %v4913_v1  ;;  %v4918_v4 = vld [vmem:[#allocation5 + $0x10] ss:$8 sps:$4 sm:$0xff]   ;;  %484 = vmatprep.subr.bf16.mxu1 %v4915_v2  ;;  %v4921_v6 = vld [vmem:[#allocation5 + $0x4] ss:$8 sps:$4 sm:$0xff]   ;;  %v4923_v7 = vld [vmem:[#allocation2] ss:$8 sps:$4 sm:$0xff]  }
  0x4f   :  { %268 = vmatpush1.bf16.msra.mxu0 %v4917_v3  ;;  %485 = vmatpush1.bf16.msra.mxu1 %v4918_v4  ;;  %v4924_v8 = vld [vmem:[#allocation5] ss:$8 sps:$4 sm:$0xff]   ;;  %vm206_vm0 = vcmask 261120   ;;  %v136_v12 = vld [vmem:[%s6258_s0 + $0x10] sm:$0xff]  ;;  %v137_v13 = vld [vmem:[%s6258_s0 + $0x18] sm:$0xff] }
  0x50   :  { %269 = vmatprep.subr.bf16.mxu0 %v4919_v5  ;;  %v135_v10 = vld [vmem:[%s6258_s0 + $0x8] sm:$0xff]  ;;  %486 = vmatprep.subr.bf16.mxu1 %v4921_v6  ;;  %v4925_v14 = vld [vmem:[%s6262_s4 + $0x70] ss:$8 sps:$4 sm:$0xff]   ;;  %v4927_v15 = vld [vmem:[%s6262_s4 + $0x74] ss:$8 sps:$4 sm:$0xff]   ;;  %v167_v18 = vpack.c.bf16 %v137_v13, %v136_v12 }
  0x51   :  { %v166_v11 = vpack.c.bf16 %v135_v10, %v134_v9  ;;  %v4928_v16 = vld [vmem:[#allocation7 + $0x70] ss:$8 sps:$4 sm:$0xff]   ;;  %v4930_v17 = vld [vmem:[#allocation7 + $0x74] ss:$8 sps:$4 sm:$0xff]   ;;  %v4933_v19 = vld [vmem:[%s6262_s4 + $0x64] ss:$8 sps:$4 sm:$0xff]  }
  0x52   :  { %v4931_v20 = vld [vmem:[%s6262_s4 + $0x60] ss:$8 sps:$4 sm:$0xff]   ;;  %v4936_v21 = vld [vmem:[#allocation7 + $0x64] ss:$8 sps:$4 sm:$0xff]   ;;  %v4939_v24 = vld [vmem:[%s6262_s4 + $0x54] ss:$8 sps:$4 sm:$0xff]  }
  0x53   :  { %270 = vmatpush1.bf16.msra.mxu0 %v4923_v7  ;;  %487 = vmatpush1.bf16.msra.mxu1 %v4924_v8  ;;  %v4934_v22 = vld [vmem:[#allocation7 + $0x60] ss:$8 sps:$4 sm:$0xff]   ;;  %v4937_v26 = vld [vmem:[%s6262_s4 + $0x50] ss:$8 sps:$4 sm:$0xff]   ;;  %v4942_v27 = vld [vmem:[#allocation7 + $0x54] ss:$8 sps:$4 sm:$0xff]  }
  0x54   :  { %1093 = vmatprep.subr.bf16.mxu0 %v4927_v15  ;;  %1478 = vmatprep.subr.bf16.mxu1 %v4930_v17  ;;  %v138_v23 = vld [vmem:[%s6258_s0 + $0x20] sm:$0xff]  ;;  %v139_v25 = vld [vmem:[%s6258_s0 + $0x28] sm:$0xff]  ;;  %v4940_v28 = vld [vmem:[#allocation7 + $0x50] ss:$8 sps:$4 sm:$0xff]  }
  0x55   :  { %v168_v29 = vpack.c.bf16 %v139_v25, %v138_v23  ;;  %v4945_v30 = vld [vmem:[%s6262_s4 + $0x44] ss:$8 sps:$4 sm:$0xff]   ;;  %v4943_v31 = vld [vmem:[%s6262_s4 + $0x40] ss:$8 sps:$4 sm:$0xff]   ;;  %v4951_v34 = vld [vmem:[%s6262_s4 + $0x34] ss:$8 sps:$4 sm:$0xff]  }
  0x56   :  { %4284 = vmatmul.mubr.msk.bf16.vlgmr.msra.gmra.mxu0 %vm206_vm0, %v166_v11  ;;  %4304 = vmatmul.mubr.msk.bf16.vlgmr.msra.gmra.mxu1 %vm206_vm0, %v166_v11  ;;  %v4948_v32 = vld [vmem:[#allocation7 + $0x44] ss:$8 sps:$4 sm:$0xff]   ;;  %v4946_v33 = vld [vmem:[#allocation7 + $0x40] ss:$8 sps:$4 sm:$0xff]   ;;  %v4954_v35 = vld [vmem:[#allocation7 + $0x34] ss:$8 sps:$4 sm:$0xff]  }
  0x57   :  { %297 = vmatprep.mubr.bf16.mxu0 %v5455_v0  ;;  %514 = vmatprep.mubr.bf16.mxu1 %v5455_v0  ;;  %v140_v36 = vld [vmem:[%s6258_s0 + $0x30] sm:$0xff]  ;;  %v141_v37 = vld [vmem:[%s6258_s0 + $0x38] sm:$0xff]  ;;  %v4957_v40 = vld [vmem:[%s6262_s4 + $0x24] ss:$8 sps:$4 sm:$0xff]  }
  0x58   :  { %1094 = vmatpush1.bf16.msra.mxu0 %v4925_v14  ;;  %1479 = vmatpush1.bf16.msra.mxu1 %v4928_v16  ;;  %v4949_v38 = vld [vmem:[%s6262_s4 + $0x30] ss:$8 sps:$4 sm:$0xff]   ;;  %v169_v41 = vpack.c.bf16 %v141_v37, %v140_v36  ;;  %v4955_v42 = vld [vmem:[%s6262_s4 + $0x20] ss:$8 sps:$4 sm:$0xff]   ;;  %v4960_v43 = vld [vmem:[#allocation7 + $0x24] ss:$8 sps:$4 sm:$0xff]  }
  0x59   :  { %1095 = vmatprep.subr.bf16.mxu0 %v4933_v19  ;;  %1480 = vmatprep.subr.bf16.mxu1 %v4936_v21  ;;  %v4952_v39 = vld [vmem:[#allocation7 + $0x30] ss:$8 sps:$4 sm:$0xff]   ;;  %v4958_v44 = vld [vmem:[#allocation7 + $0x20] ss:$8 sps:$4 sm:$0xff]   ;;  %v4963_v45 = vld [vmem:[%s6262_s4 + $0x14] ss:$8 sps:$4 sm:$0xff]  }
  0x5a   :  { %v142_v46 = vld [vmem:[%s6258_s0 + $0x40] sm:$0xff]  ;;  %v4966_v47 = vld [vmem:[#allocation7 + $0x14] ss:$8 sps:$4 sm:$0xff]   ;;  %v143_v48 = vld [vmem:[%s6258_s0 + $0x48] sm:$0xff] }
  0x5b   :  { %v4961_v49 = vld [vmem:[%s6262_s4 + $0x10] ss:$8 sps:$4 sm:$0xff]   ;;  %v4969_v51 = vld [vmem:[%s6262_s4 + $0x4] ss:$8 sps:$4 sm:$0xff]   ;;  %v170_v52 = vpack.c.bf16 %v143_v48, %v142_v46  ;;  %v4967_v53 = vld [vmem:[%s6262_s4] ss:$8 sps:$4 sm:$0xff]  }
  0x5c   :  { %1096 = vmatpush1.bf16.msra.mxu0 %v4931_v20  ;;  %1481 = vmatpush1.bf16.msra.mxu1 %v4934_v22  ;;  %v4964_v50 = vld [vmem:[#allocation7 + $0x10] ss:$8 sps:$4 sm:$0xff]   ;;  %v4972_v54 = vld [vmem:[#allocation7 + $0x4] ss:$8 sps:$4 sm:$0xff]   ;;  %v4970_v55 = vld [vmem:[#allocation7] ss:$8 sps:$4 sm:$0xff]  }
  0x5d   :  { %1097 = vmatprep.subr.bf16.mxu0 %v4939_v24  ;;  %1482 = vmatprep.subr.bf16.mxu1 %v4942_v27  ;;  %v4975_v56 = vld [vmem:[%s6262_s4 + $0xf4] ss:$8 sps:$4 sm:$0xff]   ;;  %v4973_v60 = vld [vmem:[%s6262_s4 + $0xf0] ss:$8 sps:$4 sm:$0xff]   ;;  %v4981_v62 = vld [vmem:[%s6262_s4 + $0xe4] ss:$8 sps:$4 sm:$0xff]  }
  0x5e   :  { %4285 = vmatmul.mubr.msk.bf16.gmra.mxu0 %vm206_vm0, %v167_v18  ;;  %4305 = vmatmul.mubr.msk.bf16.gmra.mxu1 %vm206_vm0, %v167_v18  ;;  %v144_v57 = vld [vmem:[%s6258_s0 + $0x50] sm:$0xff]  ;;  %v145_v59 = vld [vmem:[%s6258_s0 + $0x58] sm:$0xff]  ;;  %v4979_v1 = vld [vmem:[%s6262_s4 + $0xe0] ss:$8 sps:$4 sm:$0xff]  }
  0x5f   :  { %307 = vmatprep.mubr.bf16.mxu0 %v5455_v0  ;;  %524 = vmatprep.mubr.bf16.mxu1 %v5455_v0  ;;  %v4978_v58 = vld [vmem:[#allocation7 + $0xf4] ss:$8 sps:$4 sm:$0xff]   ;;  %v4976_v61 = vld [vmem:[#allocation7 + $0xf0] ss:$8 sps:$4 sm:$0xff]   ;;  %v171_v63 = vpack.c.bf16 %v145_v59, %v144_v57  ;;  %v4984_v2 = vld [vmem:[#allocation7 + $0xe4] ss:$8 sps:$4 sm:$0xff]  }
  0x60   :  { %1098 = vmatpush1.bf16.msra.mxu0 %v4937_v26  ;;  %1483 = vmatpush1.bf16.msra.mxu1 %v4940_v28  ;;  %v4982_v3 = vld [vmem:[#allocation7 + $0xe0] ss:$8 sps:$4 sm:$0xff]   ;;  %v4987_v4 = vld [vmem:[%s6262_s4 + $0xd4] ss:$8 sps:$4 sm:$0xff]   ;;  %v4985_v8 = vld [vmem:[%s6262_s4 + $0xd0] ss:$8 sps:$4 sm:$0xff]  }
  0x61   :  { %1099 = vmatprep.subr.bf16.mxu0 %v4945_v30  ;;  %1484 = vmatprep.subr.bf16.mxu1 %v4948_v32  ;;  %v146_v5 = vld [vmem:[%s6258_s0 + $0x60] sm:$0xff]  ;;  %v4990_v6 = vld [vmem:[#allocation7 + $0xd4] ss:$8 sps:$4 sm:$0xff]   ;;  %v147_v7 = vld [vmem:[%s6258_s0 + $0x68] sm:$0xff] }
  0x62   :  { %v4988_v9 = vld [vmem:[#allocation7 + $0xd0] ss:$8 sps:$4 sm:$0xff]   ;;  %v4993_v10 = vld [vmem:[%s6262_s4 + $0xc4] ss:$8 sps:$4 sm:$0xff]   ;;  %v172_v11 = vpack.c.bf16 %v147_v7, %v146_v5  ;;  %v4991_v12 = vld [vmem:[%s6262_s4 + $0xc0] ss:$8 sps:$4 sm:$0xff]  }
  0x63   :  { %v4996_v13 = vld [vmem:[#allocation7 + $0xc4] ss:$8 sps:$4 sm:$0xff]   ;;  %v4994_v14 = vld [vmem:[#allocation7 + $0xc0] ss:$8 sps:$4 sm:$0xff]   ;;  %v4999_v15 = vld [vmem:[%s6262_s4 + $0xb4] ss:$8 sps:$4 sm:$0xff]  }
  0x64   :  { %1100 = vmatpush1.bf16.msra.mxu0 %v4943_v31  ;;  %1485 = vmatpush1.bf16.msra.mxu1 %v4946_v33  ;;  %v5002_v16 = vld [vmem:[#allocation7 + $0xb4] ss:$8 sps:$4 sm:$0xff]   ;;  %v4997_v19 = vld [vmem:[%s6262_s4 + $0xb0] ss:$8 sps:$4 sm:$0xff]   ;;  %v5005_v21 = vld [vmem:[%s6262_s4 + $0xa4] ss:$8 sps:$4 sm:$0xff]  }
  0x65   :  { %1101 = vmatprep.subr.bf16.mxu0 %v4951_v34  ;;  %1486 = vmatprep.subr.bf16.mxu1 %v4954_v35  ;;  %v148_v17 = vld [vmem:[%s6258_s0 + $0x70] sm:$0xff]  ;;  %v149_v18 = vld [vmem:[%s6258_s0 + $0x78] sm:$0xff]  ;;  %v5003_v23 = vld [vmem:[%s6262_s4 + $0xa0] ss:$8 sps:$4 sm:$0xff]  }
  0x66   :  { %4286 = vmatmul.mubr.msk.bf16.gmra.mxu0 %vm206_vm0, %v168_v29  ;;  %4306 = vmatmul.mubr.msk.bf16.gmra.mxu1 %vm206_vm0, %v168_v29  ;;  %v5000_v20 = vld [vmem:[#allocation7 + $0xb0] ss:$8 sps:$4 sm:$0xff]   ;;  %v173_v22 = vpack.c.bf16 %v149_v18, %v148_v17  ;;  %v5008_v24 = vld [vmem:[#allocation7 + $0xa4] ss:$8 sps:$4 sm:$0xff]   ;;  %v5006_v25 = vld [vmem:[#allocation7 + $0xa0] ss:$8 sps:$4 sm:$0xff]  }
  0x67   :  { %317 = vmatprep.mubr.bf16.mxu0 %v5455_v0  ;;  %534 = vmatprep.mubr.bf16.mxu1 %v5455_v0  ;;  %v5011_v26 = vld [vmem:[%s6262_s4 + $0x94] ss:$8 sps:$4 sm:$0xff]   ;;  %v150_v28 = vld [vmem:[%s6258_s0 + $0x80] sm:$0xff]  ;;  %v151_v29 = vld [vmem:[%s6258_s0 + $0x88] sm:$0xff] }
  0x68   :  { %1102 = vmatpush1.bf16.msra.mxu0 %v4949_v38  ;;  %1487 = vmatpush1.bf16.msra.mxu1 %v4952_v39  ;;  %v5014_v27 = vld [vmem:[#allocation7 + $0x94] ss:$8 sps:$4 sm:$0xff]   ;;  %v5009_v30 = vld [vmem:[%s6262_s4 + $0x90] ss:$8 sps:$4 sm:$0xff]   ;;  %v174_v32 = vpack.c.bf16 %v151_v29, %v150_v28  ;;  %v154_v36 = vld [vmem:[%s6258_s0 + $0xa0] sm:$0xff] }
  0x69   :  { %1103 = vmatprep.subr.bf16.mxu0 %v4957_v40  ;;  %1488 = vmatprep.subr.bf16.mxu1 %v4960_v43  ;;  %v5012_v31 = vld [vmem:[#allocation7 + $0x90] ss:$8 sps:$4 sm:$0xff]   ;;  %v155_v37 = vld [vmem:[%s6258_s0 + $0xa8] sm:$0xff]  ;;  %v158_v46 = vld [vmem:[%s6258_s0 + $0xc0] sm:$0xff] }
  0x6a   :  { %v152_v33 = vld [vmem:[%s6258_s0 + $0x90] sm:$0xff]  ;;  %v153_v34 = vld [vmem:[%s6258_s0 + $0x98] sm:$0xff]  ;;  %v5017_v38 = vld [vmem:[%s6262_s4 + $0x84] ss:$8 sps:$4 sm:$0xff]  }
  0x6b   :  { %v175_v35 = vpack.c.bf16 %v153_v34, %v152_v33  ;;  %v5020_v39 = vld [vmem:[#allocation7 + $0x84] ss:$8 sps:$4 sm:$0xff]   ;;  %v5015_v40 = vld [vmem:[%s6262_s4 + $0x80] ss:$8 sps:$4 sm:$0xff]   ;;  %v156_v43 = vld [vmem:[%s6258_s0 + $0xb0] sm:$0xff] }
  0x6c   :  { %1104 = vmatpush1.bf16.msra.mxu0 %v4955_v42  ;;  %1489 = vmatpush1.bf16.msra.mxu1 %v4958_v44  ;;  %v176_v42 = vpack.c.bf16 %v155_v37, %v154_v36  ;;  %v157_v44 = vld [vmem:[%s6258_s0 + $0xb8] sm:$0xff]  ;;  %v5021_v33 = vld [vmem:[#allocation8 + $0xe0] ss:$16 sps:$4 sm:$0xff]  }
  0x6d   :  { %1105 = vmatprep.subr.bf16.mxu0 %v4963_v45  ;;  %1490 = vmatprep.subr.bf16.mxu1 %v4966_v47  ;;  %v177_v45 = vpack.c.bf16 %v157_v44, %v156_v43  ;;  %v159_v47 = vld [vmem:[%s6258_s0 + $0xc8] sm:$0xff] }
  0x6e   :  { %4287 = vmatmul.mubr.msk.bf16.gmra.mxu0 %vm206_vm0, %v169_v41  ;;  %4307 = vmatmul.mubr.msk.bf16.gmra.mxu1 %vm206_vm0, %v169_v41  ;;  %v5018_v41 = vld [vmem:[#allocation7 + $0x80] ss:$8 sps:$4 sm:$0xff]   ;;  %v178_v48 = vpack.c.bf16 %v159_v47, %v158_v46  ;;  %v5026_v59 = vld [vmem:[#allocation8 + $0xec] ss:$16 sps:$4 sm:$0xff]  }
  0x6f   :  { %327 = vmatprep.mubr.bf16.mxu0 %v5455_v0  ;;  %544 = vmatprep.mubr.bf16.mxu1 %v5455_v0  ;;  %v5024_v34 = vld [vmem:[#allocation8 + $0xe8] ss:$16 sps:$4 sm:$0xff]   ;;  %v5027_v47 = vld [vmem:[#allocation8 + $0xc0] ss:$16 sps:$4 sm:$0xff]  }
  0x70   :  { %1106 = vmatpush1.bf16.msra.mxu0 %v4961_v49  ;;  %1491 = vmatpush1.bf16.msra.mxu1 %v4964_v50  ;;  %v160_v49 = vld [vmem:[%s6258_s0 + $0xd0] sm:$0xff]  ;;  %v161_v50 = vld [vmem:[%s6258_s0 + $0xd8] sm:$0xff] }
  0x71   :  { %1107 = vmatprep.subr.bf16.mxu0 %v4969_v51  ;;  %1492 = vmatprep.subr.bf16.mxu1 %v4972_v54  ;;  %v179_v51 = vpack.c.bf16 %v161_v50, %v160_v49 }
  0x74   :  { %1108 = vmatpush1.bf16.msra.mxu0 %v4967_v53  ;;  %1493 = vmatpush1.bf16.msra.mxu1 %v4970_v55  ;;  %v163_v53 = vld [vmem:[%s6258_s0 + $0xe8] sm:$0xff]  ;;  %v164_v55 = vld [vmem:[%s6258_s0 + $0xf0] sm:$0xff] }
  0x75   :  { %1109 = vmatprep.subr.bf16.mxu0 %v4975_v56  ;;  %1494 = vmatprep.subr.bf16.mxu1 %v4978_v58  ;;  %v165_v56 = vld [vmem:[%s6258_s0 + $0xf8] sm:$0xff]  ;;  %v5023_v58 = vld [vmem:[#allocation8 + $0xe4] ss:$16 sps:$4 sm:$0xff]  }
  0x76   :  { %4288 = vmatmul.mubr.msk.bf16.gmra.mxu0 %vm206_vm0, %v170_v52  ;;  %4308 = vmatmul.mubr.msk.bf16.gmra.mxu1 %vm206_vm0, %v170_v52  ;;  %v162_v52 = vld [vmem:[%s6258_s0 + $0xe0] sm:$0xff]  ;;  %v181_v57 = vpack.c.bf16 %v165_v56, %v164_v55 }
  0x77   :  { %337 = vmatprep.mubr.bf16.mxu0 %v5455_v0  ;;  %554 = vmatprep.mubr.bf16.mxu1 %v5455_v0  ;;  %v180_v54 = vpack.c.bf16 %v163_v53, %v162_v52  ;;  %v5035_v52 = vld [vmem:[#allocation8 + $0xa4] ss:$16 sps:$4 sm:$0xff]   ;;  %v5038_v53 = vld [vmem:[#allocation8 + $0xac] ss:$16 sps:$4 sm:$0xff]  }
  0x78   :  { %1110 = vmatpush2.bf16.msra.mxu0 %v4973_v60  ;;  %1495 = vmatpush2.bf16.msra.mxu1 %v4976_v61  ;;  %v731_v60 = vlaneseq }
  0x79   :  { %1111 = vmatprep.subr.bf16.mxu0 %v4981_v62  ;;  %1496 = vmatprep.subr.bf16.mxu1 %v4984_v2  ;;  %v729_v2 = vld [vmem:[%s6261_s3] sm:$0x3] }
  0x7a   :  { %v5820_v61 = vshrl.u32 %v731_v60, 7 }
  0x7c   :  { %1112 = vmatpush2.bf16.msra.mxu0 %v4979_v1  ;;  %1497 = vmatpush2.bf16.msra.mxu1 %v4982_v3  ;;  %v5826_v1 = vsub.s32 0, %v5820_v61 }
  0x7d   :  { %1113 = vmatprep.subr.bf16.mxu0 %v4987_v4  ;;  %1498 = vmatprep.subr.bf16.mxu1 %v4990_v6 }
  0x7e   :  { %4289 = vmatmul.mubr.msk.bf16.gmra.mxu0 %vm206_vm0, %v171_v63  ;;  %4309 = vmatmul.mubr.msk.bf16.gmra.mxu1 %vm206_vm0, %v171_v63 }
  0x7f   :  { %347 = vmatprep.mubr.bf16.mxu0 %v5455_v0  ;;  %564 = vmatprep.mubr.bf16.mxu1 %v5455_v0 }
  0x80   :  { %1114 = vmatpush2.bf16.msra.mxu0 %v4985_v8  ;;  %1499 = vmatpush2.bf16.msra.mxu1 %v4988_v9  ;;  %v5835_v8 = vrot.slane %v729_v2, %v5826_v1 }
  0x81   :  { %1115 = vmatprep.subr.bf16.mxu0 %v4993_v10  ;;  %1500 = vmatprep.subr.bf16.mxu1 %v4996_v13 }
  0x84   :  { %1116 = vmatpush2.bf16.msra.mxu0 %v4991_v12  ;;  %1501 = vmatpush2.bf16.msra.mxu1 %v4994_v14 }
  0x85   :  { %1117 = vmatprep.subr.bf16.mxu0 %v4999_v15  ;;  %1502 = vmatprep.subr.bf16.mxu1 %v5002_v16 }
  0x86   :  { %4290 = vmatmul.mubr.msk.bf16.gmra.mxu0 %vm206_vm0, %v172_v11  ;;  %4310 = vmatmul.mubr.msk.bf16.gmra.mxu1 %vm206_vm0, %v172_v11 }
  0x87   :  { %357 = vmatprep.mubr.bf16.mxu0 %v5455_v0  ;;  %574 = vmatprep.mubr.bf16.mxu1 %v5455_v0 }
  0x88   :  { %1118 = vmatpush2.bf16.msra.mxu0 %v4997_v19  ;;  %1503 = vmatpush2.bf16.msra.mxu1 %v5000_v20 }
  0x89   :  { %1119 = vmatprep.subr.bf16.mxu0 %v5005_v21  ;;  %1504 = vmatprep.subr.bf16.mxu1 %v5008_v24 }
  0x8c   :  { %1120 = vmatpush2.bf16.msra.mxu0 %v5003_v23  ;;  %1505 = vmatpush2.bf16.msra.mxu1 %v5006_v25 }
  0x8d   :  { %1121 = vmatprep.subr.bf16.mxu0 %v5011_v26  ;;  %1506 = vmatprep.subr.bf16.mxu1 %v5014_v27 }
  0x8e   :  { %4291 = vmatmul.mubr.msk.bf16.gmra.mxu0 %vm206_vm0, %v173_v22  ;;  %4311 = vmatmul.mubr.msk.bf16.gmra.mxu1 %vm206_vm0, %v173_v22 }
  0x8f   :  { %367 = vmatprep.mubr.bf16.mxu0 %v5455_v0  ;;  %584 = vmatprep.mubr.bf16.mxu1 %v5455_v0 }
  0x90   :  { %1122 = vmatpush2.bf16.msra.mxu0 %v5009_v30  ;;  %1507 = vmatpush2.bf16.msra.mxu1 %v5012_v31 }
  0x91   :  { %1123 = vmatprep.subr.bf16.mxu0 %v5017_v38  ;;  %1508 = vmatprep.subr.bf16.mxu1 %v5020_v39  ;;  %v5029_v38 = vld [vmem:[#allocation8 + $0xc4] ss:$16 sps:$4 sm:$0xff]   ;;  %v5032_v39 = vld [vmem:[#allocation8 + $0xcc] ss:$16 sps:$4 sm:$0xff]  }
  0x94   :  { %1124 = vmatpush2.bf16.msra.mxu0 %v5015_v40  ;;  %1509 = vmatpush2.bf16.msra.mxu1 %v5018_v41 }
  0x95   :  { %2313 = vmatprep.subr.bf16.mxu0 %v5023_v58  ;;  %2506 = vmatprep.subr.bf16.mxu1 %v5026_v59 }
  0x96   :  { %4292 = vmatmul.mubr.msk.bf16.gmra.mxu0 %vm206_vm0, %v174_v32  ;;  %4312 = vmatmul.mubr.msk.bf16.gmra.mxu1 %vm206_vm0, %v174_v32 }
  0x97   :  { %377 = vmatprep.mubr.bf16.mxu0 %v5455_v0  ;;  %594 = vmatprep.mubr.bf16.mxu1 %v5455_v0 }
  0x9e   :  { %4293 = vmatmul.mubr.msk.bf16.gmra.mxu0 %vm206_vm0, %v175_v35  ;;  %4313 = vmatmul.mubr.msk.bf16.gmra.mxu1 %vm206_vm0, %v175_v35 }
  0x9f   :  { %387 = vmatprep.mubr.bf16.mxu0 %v5455_v0  ;;  %604 = vmatprep.mubr.bf16.mxu1 %v5455_v0 }
  0xa6   :  { %4294 = vmatmul.mubr.msk.bf16.gmra.mxu0 %vm206_vm0, %v176_v42  ;;  %4314 = vmatmul.mubr.msk.bf16.gmra.mxu1 %vm206_vm0, %v176_v42 }
  0xa7   :  { %397 = vmatprep.mubr.bf16.mxu0 %v5455_v0  ;;  %614 = vmatprep.mubr.bf16.mxu1 %v5455_v0 }
  0xae   :  { %4295 = vmatmul.mubr.msk.bf16.gmra.mxu0 %vm206_vm0, %v177_v45  ;;  %4315 = vmatmul.mubr.msk.bf16.gmra.mxu1 %vm206_vm0, %v177_v45 }
  0xaf   :  { %407 = vmatprep.mubr.bf16.mxu0 %v5455_v0  ;;  %624 = vmatprep.mubr.bf16.mxu1 %v5455_v0 }
  0xb6   :  { %4296 = vmatmul.mubr.msk.bf16.gmra.mxu0 %vm206_vm0, %v178_v48  ;;  %4316 = vmatmul.mubr.msk.bf16.gmra.mxu1 %vm206_vm0, %v178_v48  ;;  %v5030_v48 = vld [vmem:[#allocation8 + $0xc8] ss:$16 sps:$4 sm:$0xff]  }
  0xb7   :  { %417 = vmatprep.mubr.bf16.mxu0 %v5455_v0  ;;  %634 = vmatprep.mubr.bf16.mxu1 %v5455_v0 }
  0xbe   :  { %4297 = vmatmul.mubr.msk.bf16.gmra.mxu0 %vm206_vm0, %v179_v51  ;;  %4317 = vmatmul.mubr.msk.bf16.gmra.mxu1 %vm206_vm0, %v179_v51 }
  0xbf   :  { %427 = vmatprep.mubr.bf16.mxu0 %v5455_v0  ;;  %644 = vmatprep.mubr.bf16.mxu1 %v5455_v0 }
  0xc6   :  { %4298 = vmatmul.mubr.msk.bf16.gmra.mxu0 %vm206_vm0, %v180_v54  ;;  %4318 = vmatmul.mubr.msk.bf16.gmra.mxu1 %vm206_vm0, %v180_v54 }
  0xc7   :  { %437 = vmatprep.mubr.bf16.mxu0 %v5455_v0  ;;  %654 = vmatprep.mubr.bf16.mxu1 %v5455_v0  ;;  %v5823_v0 = vsub.s32 1, %v5820_v61 }
  0xc9   :  { %v5832_v6 = vrot.slane %v729_v2, %v5823_v0  ;;  %v5033_v2 = vld [vmem:[#allocation8 + $0xa0] ss:$16 sps:$4 sm:$0xff]  }
  0xce   :  { %4299 = vmatmul.mubr.msk.bf16.gmra.mxu0 %vm206_vm0, %v181_v57  ;;  %4319 = vmatmul.mubr.msk.bf16.gmra.mxu1 %vm206_vm0, %v181_v57 }
 0x116   :  { %v289_v62 = vpop.f32.mrf.mxu0  ;;  %v506_v63 = vpop.f32.mrf.mxu1 }
 0x117   :  { %v665_v7 = vmax.f32 %v289_v62, %v506_v63 }
 0x118   :  { %v291_v3 = vpop.f32.mrf.mxu0  ;;  %v508_v4 = vpop.f32.mrf.mxu1 }
 0x119   :  { %v666_v5 = vmax.f32 %v291_v3, %v508_v4  ;;  %v741_v17 = vadd.f32 %v5835_v8, %v665_v7  ;;  %v5036_v3 = vld [vmem:[#allocation8 + $0xa8] ss:$16 sps:$4 sm:$0xff]  }
 0x11a   :  { %v293_v9 = vpop.f32.mrf.mxu0  ;;  %v510_v10 = vpop.f32.mrf.mxu1 }
 0x11b   :  { %v667_v11 = vmax.f32 %v293_v9, %v510_v10  ;;  %v742_v14 = vadd.f32 %v5832_v6, %v666_v5  ;;  %v805_v27 = vmax.f32 %v741_v17, 0.0  ;;  %v5041_v9 = vld [vmem:[#allocation8 + $0x84] ss:$16 sps:$4 sm:$0xff]   ;;  %v5044_v10 = vld [vmem:[#allocation8 + $0x8c] ss:$16 sps:$4 sm:$0xff]  }
 0x11c   :  { %v295_v12 = vpop.f32.mrf.mxu0  ;;  %v512_v13 = vpop.f32.mrf.mxu1 }
 0x11d   :  { %v743_v15 = vadd.f32 %v5835_v8, %v667_v11  ;;  %v668_v16 = vmax.f32 %v295_v12, %v512_v13  ;;  %v806_v24 = vmax.f32 %v742_v14, 0.0 }
 0x11e   :  { %v299_v18 = vpop.f32.mrf.mxu0  ;;  %v516_v19 = vpop.f32.mrf.mxu1 }
 0x11f   :  { %v744_v20 = vadd.f32 %v5832_v6, %v668_v16  ;;  %v807_v21 = vmax.f32 %v743_v15, 0.0  ;;  %v669_v28 = vmax.f32 %v299_v18, %v516_v19  ;;  %v5039_v18 = vld [vmem:[#allocation8 + $0x80] ss:$16 sps:$4 sm:$0xff]   ;;  %v5042_v19 = vld [vmem:[#allocation8 + $0x88] ss:$16 sps:$4 sm:$0xff]  }
 0x120   :  { %v301_v22 = vpop.f32.mrf.mxu0  ;;  %v518_v23 = vpop.f32.mrf.mxu1 }
 0x121   :  { %v808_v25 = vmax.f32 %v744_v20, 0.0  ;;  %v670_v26 = vmax.f32 %v301_v22, %v518_v23  ;;  %v869_v35 = vpack.c.bf16 %v807_v21, %v805_v27  ;;  %v745_v43 = vadd.f32 %v5835_v8, %v669_v28  ;;  %v5047_v23 = vld [vmem:[#allocation8 + $0x64] ss:$16 sps:$4 sm:$0xff]  }
 0x122   :  { %v303_v29 = vpop.f32.mrf.mxu0  ;;  %v520_v30 = vpop.f32.mrf.mxu1 }
 0x123   :  { %v671_v31 = vmax.f32 %v303_v29, %v520_v30  ;;  %v870_v32 = vpack.c.bf16 %v808_v25, %v806_v24  ;;  %v746_v40 = vadd.f32 %v5832_v6, %v670_v26  ;;  %v809_v57 = vmax.f32 %v745_v43, 0.0  ;;  %v5050_v24 = vld [vmem:[#allocation8 + $0x6c] ss:$16 sps:$4 sm:$0xff]  }
 0x124   :  { %v305_v36 = vpop.f32.mrf.mxu0  ;;  %v522_v37 = vpop.f32.mrf.mxu1 }
 0x125   :  { %v747_v41 = vadd.f32 %v5835_v8, %v671_v31  ;;  %v672_v42 = vmax.f32 %v305_v36, %v522_v37  ;;  %1125 = vmatprep.mubr.bf16.mxu0 %v870_v32  ;;  %1510 = vmatprep.mubr.bf16.mxu1 %v870_v32  ;;  %v810_v54 = vmax.f32 %v746_v40, 0.0  ;;  %v5056_v40 = vld [vmem:[#allocation8 + $0x4c] ss:$16 sps:$4 sm:$0xff]  }
 0x126   :  { %v309_v44 = vpop.f32.mrf.mxu0  ;;  %v526_v45 = vpop.f32.mrf.mxu1  ;;  %1126 = vmatmul.mubr.bf16.vlgmr.msra.gmra.mxu0 %v869_v35  ;;  %1511 = vmatmul.mubr.bf16.vlgmr.msra.gmra.mxu1 %v869_v35  ;;  %v5048_v35 = vld [vmem:[#allocation8 + $0x68] ss:$16 sps:$4 sm:$0xff]  }
 0x127   :  { %v748_v46 = vadd.f32 %v5832_v6, %v672_v42  ;;  %2314 = vmatpush1.bf16.msra.mxu0 %v5021_v33  ;;  %2507 = vmatpush1.bf16.msra.mxu1 %v5024_v34  ;;  %v811_v49 = vmax.f32 %v747_v41, 0.0  ;;  %v673_v58 = vmax.f32 %v309_v44, %v526_v45  ;;  %v5045_v34 = vld [vmem:[#allocation8 + $0x60] ss:$16 sps:$4 sm:$0xff]  }
 0x128   :  { %v311_v50 = vpop.f32.mrf.mxu0  ;;  %v528_v51 = vpop.f32.mrf.mxu1  ;;  %2315 = vmatprep.subr.bf16.mxu0 %v5029_v38  ;;  %2508 = vmatprep.subr.bf16.mxu1 %v5032_v39  ;;  %v5053_v39 = vld [vmem:[#allocation8 + $0x44] ss:$16 sps:$4 sm:$0xff]  }
 0x129   :  { %v812_v55 = vmax.f32 %v748_v46, 0.0  ;;  %v674_v56 = vmax.f32 %v311_v50, %v528_v51  ;;  %v871_v7 = vpack.c.bf16 %v811_v49, %v809_v57  ;;  %v749_v14 = vadd.f32 %v5835_v8, %v673_v58  ;;  %v5054_v49 = vld [vmem:[#allocation8 + $0x48] ss:$16 sps:$4 sm:$0xff]  }
 0x12a   :  { %v313_v59 = vpop.f32.mrf.mxu0  ;;  %v530_v60 = vpop.f32.mrf.mxu1 }
 0x12b   :  { %v675_v62 = vmax.f32 %v313_v59, %v530_v60  ;;  %v872_v63 = vpack.c.bf16 %v812_v55, %v810_v54  ;;  %2316 = vmatpush1.bf16.msra.mxu0 %v5027_v47  ;;  %2509 = vmatpush1.bf16.msra.mxu1 %v5030_v48  ;;  %v750_v11 = vadd.f32 %v5832_v6, %v674_v56  ;;  %v813_v28 = vmax.f32 %v749_v14, 0.0  ;;  %v5051_v48 = vld [vmem:[#allocation8 + $0x40] ss:$16 sps:$4 sm:$0xff]   ;;  %v5062_v54 = vld [vmem:[#allocation8 + $0x2c] ss:$16 sps:$4 sm:$0xff]  }
 0x12c   :  { %v315_v4 = vpop.f32.mrf.mxu0  ;;  %v532_v5 = vpop.f32.mrf.mxu1  ;;  %2317 = vmatprep.subr.bf16.mxu0 %v5035_v52  ;;  %2510 = vmatprep.subr.bf16.mxu1 %v5038_v53  ;;  %v5059_v53 = vld [vmem:[#allocation8 + $0x24] ss:$16 sps:$4 sm:$0xff]  }
 0x12d   :  { %v751_v12 = vadd.f32 %v5835_v8, %v675_v62  ;;  %v676_v13 = vmax.f32 %v315_v4, %v532_v5  ;;  %1135 = vmatprep.mubr.bf16.mxu0 %v872_v63  ;;  %1520 = vmatprep.mubr.bf16.mxu1 %v872_v63  ;;  %v814_v25 = vmax.f32 %v750_v11, 0.0  ;;  %v5060_v4 = vld [vmem:[#allocation8 + $0x28] ss:$16 sps:$4 sm:$0xff]   ;;  %v5068_v11 = vld [vmem:[#allocation8 + $0xc] ss:$16 sps:$4 sm:$0xff]  }
 0x12e   :  { %v319_v15 = vpop.f32.mrf.mxu0  ;;  %v536_v16 = vpop.f32.mrf.mxu1  ;;  %1136 = vmatmul.mubr.bf16.gmra.mxu0 %v871_v7  ;;  %1521 = vmatmul.mubr.bf16.gmra.mxu1 %v871_v7 }
 0x12f   :  { %v752_v17 = vadd.f32 %v5832_v6, %v676_v13  ;;  %2318 = vmatpush1.bf16.msra.mxu0 %v5033_v2  ;;  %2511 = vmatpush1.bf16.msra.mxu1 %v5036_v3  ;;  %v815_v20 = vmax.f32 %v751_v12, 0.0  ;;  %v677_v29 = vmax.f32 %v319_v15, %v536_v16  ;;  %v5057_v3 = vld [vmem:[#allocation8 + $0x20] ss:$16 sps:$4 sm:$0xff]  }
 0x130   :  { %v321_v21 = vpop.f32.mrf.mxu0  ;;  %v538_v22 = vpop.f32.mrf.mxu1  ;;  %2319 = vmatprep.subr.bf16.mxu0 %v5041_v9  ;;  %2512 = vmatprep.subr.bf16.mxu1 %v5044_v10  ;;  %v5065_v10 = vld [vmem:[#allocation8 + $0x4] ss:$16 sps:$4 sm:$0xff]  }
 0x131   :  { %v816_v26 = vmax.f32 %v752_v17, 0.0  ;;  %v678_v27 = vmax.f32 %v321_v21, %v538_v22  ;;  %v873_v38 = vpack.c.bf16 %v815_v20, %v813_v28  ;;  %v753_v44 = vadd.f32 %v5835_v8, %v677_v29  ;;  %v5066_v20 = vld [vmem:[#allocation8 + $0x8] ss:$16 sps:$4 sm:$0xff]  }
 0x132   :  { %v323_v30 = vpop.f32.mrf.mxu0  ;;  %v540_v31 = vpop.f32.mrf.mxu1 }
 0x133   :  { %v679_v32 = vmax.f32 %v323_v30, %v540_v31  ;;  %v874_v33 = vpack.c.bf16 %v816_v26, %v814_v25  ;;  %2320 = vmatpush1.bf16.msra.mxu0 %v5039_v18  ;;  %2513 = vmatpush1.bf16.msra.mxu1 %v5042_v19  ;;  %v754_v41 = vadd.f32 %v5832_v6, %v678_v27  ;;  %v817_v58 = vmax.f32 %v753_v44, 0.0  ;;  %v5063_v19 = vld [vmem:[#allocation8] ss:$16 sps:$4 sm:$0xff]   ;;  %v5074_v25 = vld [vmem:[#allocation8 + $0x1ec] ss:$16 sps:$4 sm:$0xff]  }
 0x134   :  { %v325_v36 = vpop.f32.mrf.mxu0  ;;  %v542_v37 = vpop.f32.mrf.mxu1  ;;  %2321 = vmatprep.subr.bf16.mxu0 %v5047_v23  ;;  %2514 = vmatprep.subr.bf16.mxu1 %v5050_v24  ;;  %v5071_v24 = vld [vmem:[#allocation8 + $0x1e4] ss:$16 sps:$4 sm:$0xff]  }
 0x135   :  { %v755_v42 = vadd.f32 %v5835_v8, %v679_v32  ;;  %v680_v43 = vmax.f32 %v325_v36, %v542_v37  ;;  %1145 = vmatprep.mubr.bf16.mxu0 %v874_v33  ;;  %1530 = vmatprep.mubr.bf16.mxu1 %v874_v33  ;;  %v818_v55 = vmax.f32 %v754_v41, 0.0  ;;  %v5072_v36 = vld [vmem:[#allocation8 + $0x1e8] ss:$16 sps:$4 sm:$0xff]   ;;  %v5080_v41 = vld [vmem:[#allocation8 + $0x1cc] ss:$16 sps:$4 sm:$0xff]  }
 0x136   :  { %v329_v45 = vpop.f32.mrf.mxu0  ;;  %v546_v46 = vpop.f32.mrf.mxu1  ;;  %1146 = vmatmul.mubr.bf16.gmra.mxu0 %v873_v38  ;;  %1531 = vmatmul.mubr.bf16.gmra.mxu1 %v873_v38 }
 0x137   :  { %v756_v47 = vadd.f32 %v5832_v6, %v680_v43  ;;  %2322 = vmatpush1.bf16.msra.mxu0 %v5045_v34  ;;  %2515 = vmatpush1.bf16.msra.mxu1 %v5048_v35  ;;  %v819_v50 = vmax.f32 %v755_v42, 0.0  ;;  %v681_v59 = vmax.f32 %v329_v45, %v546_v46  ;;  %v5069_v35 = vld [vmem:[#allocation8 + $0x1e0] ss:$16 sps:$4 sm:$0xff]  }
 0x138   :  { %v331_v51 = vpop.f32.mrf.mxu0  ;;  %v548_v52 = vpop.f32.mrf.mxu1  ;;  %2323 = vmatprep.subr.bf16.mxu0 %v5053_v39  ;;  %2516 = vmatprep.subr.bf16.mxu1 %v5056_v40  ;;  %v5077_v40 = vld [vmem:[#allocation8 + $0x1c4] ss:$16 sps:$4 sm:$0xff]  }
 0x139   :  { %v820_v56 = vmax.f32 %v756_v47, 0.0  ;;  %v682_v57 = vmax.f32 %v331_v51, %v548_v52  ;;  %v875_v9 = vpack.c.bf16 %v819_v50, %v817_v58  ;;  %v757_v15 = vadd.f32 %v5835_v8, %v681_v59  ;;  %v5078_v50 = vld [vmem:[#allocation8 + $0x1c8] ss:$16 sps:$4 sm:$0xff]  }
 0x13a   :  { %v333_v60 = vpop.f32.mrf.mxu0  ;;  %v550_v62 = vpop.f32.mrf.mxu1 }
 0x13b   :  { %v683_v63 = vmax.f32 %v333_v60, %v550_v62  ;;  %v876_v2 = vpack.c.bf16 %v820_v56, %v818_v55  ;;  %2324 = vmatpush1.bf16.msra.mxu0 %v5051_v48  ;;  %2517 = vmatpush1.bf16.msra.mxu1 %v5054_v49  ;;  %v758_v12 = vadd.f32 %v5832_v6, %v682_v57  ;;  %v821_v29 = vmax.f32 %v757_v15, 0.0  ;;  %v5075_v49 = vld [vmem:[#allocation8 + $0x1c0] ss:$16 sps:$4 sm:$0xff]   ;;  %v5086_v55 = vld [vmem:[#allocation8 + $0x1ac] ss:$16 sps:$4 sm:$0xff]  }
 0x13c   :  { %v335_v5 = vpop.f32.mrf.mxu0  ;;  %v552_v7 = vpop.f32.mrf.mxu1  ;;  %2325 = vmatprep.subr.bf16.mxu0 %v5059_v53  ;;  %2518 = vmatprep.subr.bf16.mxu1 %v5062_v54  ;;  %v5083_v54 = vld [vmem:[#allocation8 + $0x1a4] ss:$16 sps:$4 sm:$0xff]  }
 0x13d   :  { %v759_v13 = vadd.f32 %v5835_v8, %v683_v63  ;;  %v684_v14 = vmax.f32 %v335_v5, %v552_v7  ;;  %1155 = vmatprep.mubr.bf16.mxu0 %v876_v2  ;;  %1540 = vmatprep.mubr.bf16.mxu1 %v876_v2  ;;  %v822_v26 = vmax.f32 %v758_v12, 0.0  ;;  %v5084_v5 = vld [vmem:[#allocation8 + $0x1a8] ss:$16 sps:$4 sm:$0xff]   ;;  %v5092_v12 = vld [vmem:[#allocation8 + $0x18c] ss:$16 sps:$4 sm:$0xff]  }
 0x13e   :  { %v339_v16 = vpop.f32.mrf.mxu0  ;;  %v556_v17 = vpop.f32.mrf.mxu1  ;;  %1156 = vmatmul.mubr.bf16.gmra.mxu0 %v875_v9  ;;  %1541 = vmatmul.mubr.bf16.gmra.mxu1 %v875_v9 }
 0x13f   :  { %v760_v18 = vadd.f32 %v5832_v6, %v684_v14  ;;  %2326 = vmatpush1.bf16.msra.mxu0 %v5057_v3  ;;  %2519 = vmatpush1.bf16.msra.mxu1 %v5060_v4  ;;  %v823_v21 = vmax.f32 %v759_v13, 0.0  ;;  %v685_v30 = vmax.f32 %v339_v16, %v556_v17  ;;  %v5081_v4 = vld [vmem:[#allocation8 + $0x1a0] ss:$16 sps:$4 sm:$0xff]  }
 0x140   :  { %v341_v22 = vpop.f32.mrf.mxu0  ;;  %v558_v23 = vpop.f32.mrf.mxu1  ;;  %2327 = vmatprep.subr.bf16.mxu0 %v5065_v10  ;;  %2520 = vmatprep.subr.bf16.mxu1 %v5068_v11  ;;  %v5089_v11 = vld [vmem:[#allocation8 + $0x184] ss:$16 sps:$4 sm:$0xff]  }
 0x141   :  { %v824_v27 = vmax.f32 %v760_v18, 0.0  ;;  %v686_v28 = vmax.f32 %v341_v22, %v558_v23  ;;  %v877_v39 = vpack.c.bf16 %v823_v21, %v821_v29  ;;  %v761_v45 = vadd.f32 %v5835_v8, %v685_v30  ;;  %v5090_v21 = vld [vmem:[#allocation8 + $0x188] ss:$16 sps:$4 sm:$0xff]  }
 0x142   :  { %v343_v31 = vpop.f32.mrf.mxu0  ;;  %v560_v32 = vpop.f32.mrf.mxu1 }
 0x143   :  { %v687_v33 = vmax.f32 %v343_v31, %v560_v32  ;;  %v878_v34 = vpack.c.bf16 %v824_v27, %v822_v26  ;;  %2328 = vmatpush1.bf16.msra.mxu0 %v5063_v19  ;;  %2521 = vmatpush1.bf16.msra.mxu1 %v5066_v20  ;;  %v762_v42 = vadd.f32 %v5832_v6, %v686_v28  ;;  %v825_v59 = vmax.f32 %v761_v45, 0.0  ;;  %v5087_v20 = vld [vmem:[#allocation8 + $0x180] ss:$16 sps:$4 sm:$0xff]   ;;  %v5098_v26 = vld [vmem:[#allocation8 + $0x16c] ss:$16 sps:$4 sm:$0xff]  }
 0x144   :  { %v345_v37 = vpop.f32.mrf.mxu0  ;;  %v562_v38 = vpop.f32.mrf.mxu1  ;;  %2329 = vmatprep.subr.bf16.mxu0 %v5071_v24  ;;  %2522 = vmatprep.subr.bf16.mxu1 %v5074_v25  ;;  %v5095_v25 = vld [vmem:[#allocation8 + $0x164] ss:$16 sps:$4 sm:$0xff]  }
 0x145   :  { %v763_v43 = vadd.f32 %v5835_v8, %v687_v33  ;;  %v688_v44 = vmax.f32 %v345_v37, %v562_v38  ;;  %1165 = vmatprep.mubr.bf16.mxu0 %v878_v34  ;;  %1550 = vmatprep.mubr.bf16.mxu1 %v878_v34  ;;  %v826_v56 = vmax.f32 %v762_v42, 0.0  ;;  %v5096_v37 = vld [vmem:[#allocation8 + $0x168] ss:$16 sps:$4 sm:$0xff]   ;;  %v5104_v42 = vld [vmem:[#allocation8 + $0x14c] ss:$16 sps:$4 sm:$0xff]  }
 0x146   :  { %v349_v46 = vpop.f32.mrf.mxu0  ;;  %v566_v47 = vpop.f32.mrf.mxu1  ;;  %1166 = vmatmul.mubr.bf16.gmra.mxu0 %v877_v39  ;;  %1551 = vmatmul.mubr.bf16.gmra.mxu1 %v877_v39 }
 0x147   :  { %v764_v48 = vadd.f32 %v5832_v6, %v688_v44  ;;  %2330 = vmatpush2.bf16.msra.mxu0 %v5069_v35  ;;  %2523 = vmatpush2.bf16.msra.mxu1 %v5072_v36  ;;  %v827_v51 = vmax.f32 %v763_v43, 0.0  ;;  %v689_v60 = vmax.f32 %v349_v46, %v566_v47  ;;  %v5093_v36 = vld [vmem:[#allocation8 + $0x160] ss:$16 sps:$4 sm:$0xff]  }
 0x148   :  { %v351_v52 = vpop.f32.mrf.mxu0  ;;  %v568_v53 = vpop.f32.mrf.mxu1  ;;  %2331 = vmatprep.subr.bf16.mxu0 %v5077_v40  ;;  %2524 = vmatprep.subr.bf16.mxu1 %v5080_v41  ;;  %v5101_v41 = vld [vmem:[#allocation8 + $0x144] ss:$16 sps:$4 sm:$0xff]  }
 0x149   :  { %v828_v57 = vmax.f32 %v764_v48, 0.0  ;;  %v690_v58 = vmax.f32 %v351_v52, %v568_v53  ;;  %v879_v10 = vpack.c.bf16 %v827_v51, %v825_v59  ;;  %v765_v16 = vadd.f32 %v5835_v8, %v689_v60  ;;  %v5102_v51 = vld [vmem:[#allocation8 + $0x148] ss:$16 sps:$4 sm:$0xff]  }
 0x14a   :  { %v353_v62 = vpop.f32.mrf.mxu0  ;;  %v570_v63 = vpop.f32.mrf.mxu1 }
 0x14b   :  { %v691_v2 = vmax.f32 %v353_v62, %v570_v63  ;;  %v880_v3 = vpack.c.bf16 %v828_v57, %v826_v56  ;;  %2332 = vmatpush2.bf16.msra.mxu0 %v5075_v49  ;;  %2525 = vmatpush2.bf16.msra.mxu1 %v5078_v50  ;;  %v766_v13 = vadd.f32 %v5832_v6, %v690_v58  ;;  %v829_v30 = vmax.f32 %v765_v16, 0.0  ;;  %v5099_v50 = vld [vmem:[#allocation8 + $0x140] ss:$16 sps:$4 sm:$0xff]  }
 0x14c   :  { %v355_v7 = vpop.f32.mrf.mxu0  ;;  %v572_v9 = vpop.f32.mrf.mxu1  ;;  %2333 = vmatprep.subr.bf16.mxu0 %v5083_v54  ;;  %2526 = vmatprep.subr.bf16.mxu1 %v5086_v55  ;;  %v5107_v55 = vld [vmem:[#allocation8 + $0x124] ss:$16 sps:$4 sm:$0xff]  }
 0x14d   :  { %v767_v14 = vadd.f32 %v5835_v8, %v691_v2  ;;  %v692_v15 = vmax.f32 %v355_v7, %v572_v9  ;;  %1175 = vmatprep.mubr.bf16.mxu0 %v880_v3  ;;  %1560 = vmatprep.mubr.bf16.mxu1 %v880_v3  ;;  %v830_v27 = vmax.f32 %v766_v13, 0.0 }
 0x14e   :  { %v359_v17 = vpop.f32.mrf.mxu0  ;;  %v576_v18 = vpop.f32.mrf.mxu1  ;;  %1176 = vmatmul.mubr.bf16.gmra.mxu0 %v879_v10  ;;  %1561 = vmatmul.mubr.bf16.gmra.mxu1 %v879_v10 }
 0x14f   :  { %v768_v19 = vadd.f32 %v5832_v6, %v692_v15  ;;  %2334 = vmatpush2.bf16.msra.mxu0 %v5081_v4  ;;  %2527 = vmatpush2.bf16.msra.mxu1 %v5084_v5  ;;  %v831_v22 = vmax.f32 %v767_v14, 0.0  ;;  %v693_v31 = vmax.f32 %v359_v17, %v576_v18  ;;  %v5105_v4 = vld [vmem:[#allocation8 + $0x120] ss:$16 sps:$4 sm:$0xff]  }
 0x150   :  { %v361_v23 = vpop.f32.mrf.mxu0  ;;  %v578_v24 = vpop.f32.mrf.mxu1  ;;  %2335 = vmatprep.subr.bf16.mxu0 %v5089_v11  ;;  %2528 = vmatprep.subr.bf16.mxu1 %v5092_v12 }
 0x151   :  { %v832_v28 = vmax.f32 %v768_v19, 0.0  ;;  %v694_v29 = vmax.f32 %v361_v23, %v578_v24  ;;  %v881_v40 = vpack.c.bf16 %v831_v22, %v829_v30  ;;  %v769_v46 = vadd.f32 %v5835_v8, %v693_v31 }
 0x152   :  { %v363_v32 = vpop.f32.mrf.mxu0  ;;  %v580_v33 = vpop.f32.mrf.mxu1 }
 0x153   :  { %v695_v34 = vmax.f32 %v363_v32, %v580_v33  ;;  %v882_v35 = vpack.c.bf16 %v832_v28, %v830_v27  ;;  %2336 = vmatpush2.bf16.msra.mxu0 %v5087_v20  ;;  %2529 = vmatpush2.bf16.msra.mxu1 %v5090_v21  ;;  %v770_v43 = vadd.f32 %v5832_v6, %v694_v29  ;;  %v833_v59 = vmax.f32 %v769_v46, 0.0 }
 0x154   :  { %v365_v38 = vpop.f32.mrf.mxu0  ;;  %v582_v39 = vpop.f32.mrf.mxu1  ;;  %2337 = vmatprep.subr.bf16.mxu0 %v5095_v25  ;;  %2530 = vmatprep.subr.bf16.mxu1 %v5098_v26 }
 0x155   :  { %v771_v44 = vadd.f32 %v5835_v8, %v695_v34  ;;  %v696_v45 = vmax.f32 %v365_v38, %v582_v39  ;;  %1185 = vmatprep.mubr.bf16.mxu0 %v882_v35  ;;  %1570 = vmatprep.mubr.bf16.mxu1 %v882_v35  ;;  %v834_v56 = vmax.f32 %v770_v43, 0.0 }
 0x156   :  { %v369_v47 = vpop.f32.mrf.mxu0  ;;  %v586_v48 = vpop.f32.mrf.mxu1  ;;  %1186 = vmatmul.mubr.bf16.gmra.mxu0 %v881_v40  ;;  %1571 = vmatmul.mubr.bf16.gmra.mxu1 %v881_v40 }
 0x157   :  { %v772_v49 = vadd.f32 %v5832_v6, %v696_v45  ;;  %2338 = vmatpush2.bf16.msra.mxu0 %v5093_v36  ;;  %2531 = vmatpush2.bf16.msra.mxu1 %v5096_v37  ;;  %v835_v52 = vmax.f32 %v771_v44, 0.0  ;;  %v697_v60 = vmax.f32 %v369_v47, %v586_v48 }
 0x158   :  { %v371_v53 = vpop.f32.mrf.mxu0  ;;  %v588_v54 = vpop.f32.mrf.mxu1  ;;  %2339 = vmatprep.subr.bf16.mxu0 %v5101_v41  ;;  %2532 = vmatprep.subr.bf16.mxu1 %v5104_v42 }
 0x159   :  { %v836_v57 = vmax.f32 %v772_v49, 0.0  ;;  %v698_v58 = vmax.f32 %v371_v53, %v588_v54  ;;  %v883_v9 = vpack.c.bf16 %v835_v52, %v833_v59  ;;  %v773_v13 = vadd.f32 %v5835_v8, %v697_v60 }
 0x15a   :  { %v373_v62 = vpop.f32.mrf.mxu0  ;;  %v590_v63 = vpop.f32.mrf.mxu1 }
 0x15b   :  { %v699_v2 = vmax.f32 %v373_v62, %v590_v63  ;;  %v884_v3 = vpack.c.bf16 %v836_v57, %v834_v56  ;;  %2340 = vmatpush2.bf16.msra.mxu0 %v5099_v50  ;;  %2533 = vmatpush2.bf16.msra.mxu1 %v5102_v51  ;;  %v774_v10 = vadd.f32 %v5832_v6, %v698_v58  ;;  %v837_v23 = vmax.f32 %v773_v13, 0.0  ;;  %v5110_v51 = vld [vmem:[#allocation8 + $0x12c] ss:$16 sps:$4 sm:$0xff]   ;;  %v5114_v13 = vld [vmem:[#allocation8 + $0x108] ss:$16 sps:$4 sm:$0xff]  }
 0x15c   :  { %v375_v5 = vpop.f32.mrf.mxu0  ;;  %v592_v7 = vpop.f32.mrf.mxu1  ;;  %2341 = vmatprep.subr.bf16.mxu0 %v5107_v55  ;;  %v5108_v55 = vld [vmem:[#allocation8 + $0x128] ss:$16 sps:$4 sm:$0xff]   ;;  %2534 = vmatprep.subr.bf16.mxu1 %v5110_v51 }
 0x15d   :  { %v775_v11 = vadd.f32 %v5835_v8, %v699_v2  ;;  %v700_v12 = vmax.f32 %v375_v5, %v592_v7  ;;  %1195 = vmatprep.mubr.bf16.mxu0 %v884_v3  ;;  %1580 = vmatprep.mubr.bf16.mxu1 %v884_v3  ;;  %v838_v20 = vmax.f32 %v774_v10, 0.0  ;;  %v5113_v5 = vld [vmem:[#allocation8 + $0x104] ss:$16 sps:$4 sm:$0xff]   ;;  %v5116_v7 = vld [vmem:[#allocation8 + $0x10c] ss:$16 sps:$4 sm:$0xff]  }
 0x15e   :  { %v379_v14 = vpop.f32.mrf.mxu0  ;;  %v596_v15 = vpop.f32.mrf.mxu1  ;;  %1196 = vmatmul.mubr.bf16.gmra.mxu0 %v883_v9  ;;  %1581 = vmatmul.mubr.bf16.gmra.mxu1 %v883_v9 }
 0x15f   :  { %v776_v16 = vadd.f32 %v5832_v6, %v700_v12  ;;  %2342 = vmatpush2.bf16.msra.mxu0 %v5105_v4  ;;  %v839_v17 = vmax.f32 %v775_v11, 0.0  ;;  %v701_v24 = vmax.f32 %v379_v14, %v596_v15  ;;  %2535 = vmatpush2.bf16.msra.mxu1 %v5108_v55  ;;  %v5111_v12 = vld [vmem:[#allocation8 + $0x100] ss:$16 sps:$4 sm:$0xff]  }
 0x160   :  { %v381_v18 = vpop.f32.mrf.mxu0  ;;  %v598_v19 = vpop.f32.mrf.mxu1  ;;  %2343 = vmatprep.subr.bf16.mxu0 %v5113_v5  ;;  %2536 = vmatprep.subr.bf16.mxu1 %v5116_v7 }
 0x161   :  { %v840_v21 = vmax.f32 %v776_v16, 0.0  ;;  %v702_v22 = vmax.f32 %v381_v18, %v598_v19  ;;  %v885_v31 = vpack.c.bf16 %v839_v17, %v837_v23  ;;  %v777_v35 = vadd.f32 %v5835_v8, %v701_v24 }
 0x162   :  { %v383_v25 = vpop.f32.mrf.mxu0  ;;  %v600_v26 = vpop.f32.mrf.mxu1 }
 0x163   :  { %v703_v27 = vmax.f32 %v383_v25, %v600_v26  ;;  %v886_v28 = vpack.c.bf16 %v840_v21, %v838_v20  ;;  %v778_v32 = vadd.f32 %v5832_v6, %v702_v22  ;;  %v841_v45 = vmax.f32 %v777_v35, 0.0  ;;  %2344 = vmatpush2.bf16.msra.mxu0 %v5111_v12  ;;  %2537 = vmatpush2.bf16.msra.mxu1 %v5114_v13 }
 0x164   :  { %v385_v29 = vpop.f32.mrf.mxu0  ;;  %v602_v30 = vpop.f32.mrf.mxu1 }
 0x165   :  { %v779_v33 = vadd.f32 %v5835_v8, %v703_v27  ;;  %v704_v34 = vmax.f32 %v385_v29, %v602_v30  ;;  %1205 = vmatprep.mubr.bf16.mxu0 %v886_v28  ;;  %1590 = vmatprep.mubr.bf16.mxu1 %v886_v28  ;;  %v842_v42 = vmax.f32 %v778_v32, 0.0 }
 0x166   :  { %v389_v36 = vpop.f32.mrf.mxu0  ;;  %v606_v37 = vpop.f32.mrf.mxu1  ;;  %1206 = vmatmul.mubr.bf16.gmra.mxu0 %v885_v31  ;;  %1591 = vmatmul.mubr.bf16.gmra.mxu1 %v885_v31 }
 0x167   :  { %v780_v38 = vadd.f32 %v5832_v6, %v704_v34  ;;  %v843_v39 = vmax.f32 %v779_v33, 0.0  ;;  %v705_v46 = vmax.f32 %v389_v36, %v606_v37 }
 0x168   :  { %v391_v40 = vpop.f32.mrf.mxu0  ;;  %v608_v41 = vpop.f32.mrf.mxu1 }
 0x169   :  { %v844_v43 = vmax.f32 %v780_v38, 0.0  ;;  %v706_v44 = vmax.f32 %v391_v40, %v608_v41  ;;  %v887_v54 = vpack.c.bf16 %v843_v39, %v841_v45  ;;  %v781_v59 = vadd.f32 %v5835_v8, %v705_v46 }
 0x16a   :  { %v393_v47 = vpop.f32.mrf.mxu0  ;;  %v610_v48 = vpop.f32.mrf.mxu1 }
 0x16b   :  { %v707_v49 = vmax.f32 %v393_v47, %v610_v48  ;;  %v888_v50 = vpack.c.bf16 %v844_v43, %v842_v42  ;;  %v782_v56 = vadd.f32 %v5832_v6, %v706_v44  ;;  %v845_v14 = vmax.f32 %v781_v59, 0.0 }
 0x16c   :  { %v395_v52 = vpop.f32.mrf.mxu0  ;;  %v612_v53 = vpop.f32.mrf.mxu1 }
 0x16d   :  { %v783_v57 = vadd.f32 %v5835_v8, %v707_v49  ;;  %v708_v58 = vmax.f32 %v395_v52, %v612_v53  ;;  %1215 = vmatprep.mubr.bf16.mxu0 %v888_v50  ;;  %1600 = vmatprep.mubr.bf16.mxu1 %v888_v50  ;;  %v846_v9 = vmax.f32 %v782_v56, 0.0 }
 0x16e   :  { %v399_v60 = vpop.f32.mrf.mxu0  ;;  %v616_v62 = vpop.f32.mrf.mxu1  ;;  %1216 = vmatmul.mubr.bf16.gmra.mxu0 %v887_v54  ;;  %1601 = vmatmul.mubr.bf16.gmra.mxu1 %v887_v54 }
 0x16f   :  { %v784_v63 = vadd.f32 %v5832_v6, %v708_v58  ;;  %v847_v2 = vmax.f32 %v783_v57, 0.0  ;;  %v709_v15 = vmax.f32 %v399_v60, %v616_v62 }
 0x170   :  { %v401_v3 = vpop.f32.mrf.mxu0  ;;  %v618_v4 = vpop.f32.mrf.mxu1 }
 0x171   :  { %v848_v10 = vmax.f32 %v784_v63, 0.0  ;;  %v710_v11 = vmax.f32 %v401_v3, %v618_v4  ;;  %v889_v22 = vpack.c.bf16 %v847_v2, %v845_v14  ;;  %v785_v26 = vadd.f32 %v5835_v8, %v709_v15 }
 0x172   :  { %v403_v16 = vpop.f32.mrf.mxu0  ;;  %v620_v17 = vpop.f32.mrf.mxu1 }
 0x173   :  { %v711_v18 = vmax.f32 %v403_v16, %v620_v17  ;;  %v890_v19 = vpack.c.bf16 %v848_v10, %v846_v9  ;;  %v786_v23 = vadd.f32 %v5832_v6, %v710_v11  ;;  %v849_v36 = vmax.f32 %v785_v26, 0.0 }
 0x174   :  { %v405_v20 = vpop.f32.mrf.mxu0  ;;  %v622_v21 = vpop.f32.mrf.mxu1 }
 0x175   :  { %v787_v24 = vadd.f32 %v5835_v8, %v711_v18  ;;  %v712_v25 = vmax.f32 %v405_v20, %v622_v21  ;;  %1225 = vmatprep.mubr.bf16.mxu0 %v890_v19  ;;  %1610 = vmatprep.mubr.bf16.mxu1 %v890_v19  ;;  %v850_v33 = vmax.f32 %v786_v23, 0.0 }
 0x176   :  { %v409_v27 = vpop.f32.mrf.mxu0  ;;  %v626_v28 = vpop.f32.mrf.mxu1  ;;  %1226 = vmatmul.mubr.bf16.gmra.mxu0 %v889_v22  ;;  %1611 = vmatmul.mubr.bf16.gmra.mxu1 %v889_v22 }
 0x177   :  { %v788_v29 = vadd.f32 %v5832_v6, %v712_v25  ;;  %v851_v30 = vmax.f32 %v787_v24, 0.0  ;;  %v713_v37 = vmax.f32 %v409_v27, %v626_v28 }
 0x178   :  { %v411_v31 = vpop.f32.mrf.mxu0  ;;  %v628_v32 = vpop.f32.mrf.mxu1 }
 0x179   :  { %v852_v34 = vmax.f32 %v788_v29, 0.0  ;;  %v714_v35 = vmax.f32 %v411_v31, %v628_v32  ;;  %v891_v44 = vpack.c.bf16 %v851_v30, %v849_v36  ;;  %v789_v48 = vadd.f32 %v5835_v8, %v713_v37 }
 0x17a   :  { %v413_v38 = vpop.f32.mrf.mxu0  ;;  %v630_v39 = vpop.f32.mrf.mxu1 }
 0x17b   :  { %v715_v40 = vmax.f32 %v413_v38, %v630_v39  ;;  %v892_v41 = vpack.c.bf16 %v852_v34, %v850_v33  ;;  %v790_v45 = vadd.f32 %v5832_v6, %v714_v35  ;;  %v853_v58 = vmax.f32 %v789_v48, 0.0 }
 0x17c   :  { %v415_v42 = vpop.f32.mrf.mxu0  ;;  %v632_v43 = vpop.f32.mrf.mxu1 }
 0x17d   :  { %v791_v46 = vadd.f32 %v5835_v8, %v715_v40  ;;  %v716_v47 = vmax.f32 %v415_v42, %v632_v43  ;;  %1235 = vmatprep.mubr.bf16.mxu0 %v892_v41  ;;  %1620 = vmatprep.mubr.bf16.mxu1 %v892_v41  ;;  %v854_v55 = vmax.f32 %v790_v45, 0.0 }
 0x17e   :  { %v419_v49 = vpop.f32.mrf.mxu0  ;;  %v636_v50 = vpop.f32.mrf.mxu1  ;;  %1236 = vmatmul.mubr.bf16.gmra.mxu0 %v891_v44  ;;  %1621 = vmatmul.mubr.bf16.gmra.mxu1 %v891_v44 }
 0x17f   :  { %v792_v51 = vadd.f32 %v5832_v6, %v716_v47  ;;  %v855_v52 = vmax.f32 %v791_v46, 0.0  ;;  %v717_v59 = vmax.f32 %v419_v49, %v636_v50 }
 0x180   :  { %v421_v53 = vpop.f32.mrf.mxu0  ;;  %v638_v54 = vpop.f32.mrf.mxu1 }
 0x181   :  { %v856_v56 = vmax.f32 %v792_v51, 0.0  ;;  %v718_v57 = vmax.f32 %v421_v53, %v638_v54  ;;  %v893_v3 = vpack.c.bf16 %v855_v52, %v853_v58  ;;  %v793_v11 = vadd.f32 %v5835_v8, %v717_v59 }
 0x182   :  { %v423_v60 = vpop.f32.mrf.mxu0  ;;  %v640_v62 = vpop.f32.mrf.mxu1 }
 0x183   :  { %v719_v63 = vmax.f32 %v423_v60, %v640_v62  ;;  %v894_v2 = vpack.c.bf16 %v856_v56, %v854_v55  ;;  %v794_v7 = vadd.f32 %v5832_v6, %v718_v57  ;;  %v857_v21 = vmax.f32 %v793_v11, 0.0 }
 0x184   :  { %v425_v4 = vpop.f32.mrf.mxu0  ;;  %v642_v5 = vpop.f32.mrf.mxu1 }
 0x185   :  { %v795_v9 = vadd.f32 %v5835_v8, %v719_v63  ;;  %v720_v10 = vmax.f32 %v425_v4, %v642_v5  ;;  %1245 = vmatprep.mubr.bf16.mxu0 %v894_v2  ;;  %1630 = vmatprep.mubr.bf16.mxu1 %v894_v2  ;;  %v858_v18 = vmax.f32 %v794_v7, 0.0  ;;  %v5117_v2 = vld [vmem:[#allocation10 + $0x78] sm:$0xff]  }
 0x186   :  { %v429_v12 = vpop.f32.mrf.mxu0  ;;  %v646_v13 = vpop.f32.mrf.mxu1  ;;  %1246 = vmatmul.mubr.bf16.gmra.mxu0 %v893_v3  ;;  %1631 = vmatmul.mubr.bf16.gmra.mxu1 %v893_v3  ;;  %v5119_v3 = vld [vmem:[#allocation10 + $0xf8] sm:$0xff]  }
 0x187   :  { %v796_v14 = vadd.f32 %v5832_v6, %v720_v10  ;;  %v859_v15 = vmax.f32 %v795_v9, 0.0  ;;  %v721_v22 = vmax.f32 %v429_v12, %v646_v13  ;;  %4531 = vmatprep.subr.bf16.mxu0 %v5117_v2  ;;  %4643 = vmatprep.subr.bf16.mxu1 %v5119_v3 }
 0x188   :  { %v431_v16 = vpop.f32.mrf.mxu0  ;;  %v648_v17 = vpop.f32.mrf.mxu1 }
 0x189   :  { %v860_v19 = vmax.f32 %v796_v14, 0.0  ;;  %v722_v20 = vmax.f32 %v431_v16, %v648_v17  ;;  %v895_v27 = vpack.c.bf16 %v859_v15, %v857_v21  ;;  %v797_v33 = vadd.f32 %v5835_v8, %v721_v22 }
 0x18a   :  { %v433_v23 = vpop.f32.mrf.mxu0  ;;  %v650_v24 = vpop.f32.mrf.mxu1 }
 0x18b   :  { %v723_v25 = vmax.f32 %v433_v23, %v650_v24  ;;  %v896_v26 = vpack.c.bf16 %v860_v19, %v858_v18  ;;  %v798_v30 = vadd.f32 %v5832_v6, %v722_v20  ;;  %v861_v43 = vmax.f32 %v797_v33, 0.0 }
 0x18c   :  { %v435_v28 = vpop.f32.mrf.mxu0  ;;  %v652_v29 = vpop.f32.mrf.mxu1 }
 0x18d   :  { %v799_v31 = vadd.f32 %v5835_v8, %v723_v25  ;;  %v724_v32 = vmax.f32 %v435_v28, %v652_v29  ;;  %1255 = vmatprep.mubr.bf16.mxu0 %v896_v26  ;;  %1640 = vmatprep.mubr.bf16.mxu1 %v896_v26  ;;  %v862_v40 = vmax.f32 %v798_v30, 0.0 }
 0x18e   :  { %v439_v34 = vpop.f32.mrf.mxu0  ;;  %v656_v35 = vpop.f32.mrf.mxu1  ;;  %1256 = vmatmul.mubr.bf16.gmra.mxu0 %v895_v27  ;;  %1641 = vmatmul.mubr.bf16.gmra.mxu1 %v895_v27 }
 0x18f   :  { %v800_v36 = vadd.f32 %v5832_v6, %v724_v32  ;;  %v863_v37 = vmax.f32 %v799_v31, 0.0  ;;  %v725_v44 = vmax.f32 %v439_v34, %v656_v35 }
 0x190   :  { %v441_v38 = vpop.f32.mrf.mxu0  ;;  %v658_v39 = vpop.f32.mrf.mxu1 }
 0x191   :  { %v864_v41 = vmax.f32 %v800_v36, 0.0  ;;  %v726_v42 = vmax.f32 %v441_v38, %v658_v39  ;;  %v897_v49 = vpack.c.bf16 %v863_v37, %v861_v43  ;;  %v801_v55 = vadd.f32 %v5835_v8, %v725_v44  ;;  %v5118_v37 = vld [vmem:[#allocation10 + $0x38] sm:$0xff]   ;;  %v5123_v43 = vld [vmem:[#allocation10 + $0xf0] sm:$0xff]  }
 0x192   :  { %v443_v45 = vpop.f32.mrf.mxu0  ;;  %v660_v46 = vpop.f32.mrf.mxu1  ;;  %v5120_v38 = vld [vmem:[#allocation10 + $0xb8] sm:$0xff]  }
 0x193   :  { %v727_v47 = vmax.f32 %v443_v45, %v660_v46  ;;  %v898_v48 = vpack.c.bf16 %v864_v41, %v862_v40  ;;  %v802_v52 = vadd.f32 %v5832_v6, %v726_v42  ;;  %v865_v60 = vmax.f32 %v801_v55, 0.0  ;;  %v5121_v42 = vld [vmem:[#allocation10 + $0x70] sm:$0xff]  }
 0x194   :  { %v445_v50 = vpop.f32.mrf.mxu0  ;;  %v662_v51 = vpop.f32.mrf.mxu1 }
 0x195   :  { %v803_v53 = vadd.f32 %v5835_v8, %v727_v47  ;;  %v728_v54 = vmax.f32 %v445_v50, %v662_v51  ;;  %1265 = vmatprep.mubr.bf16.mxu0 %v898_v48  ;;  %1650 = vmatprep.mubr.bf16.mxu1 %v898_v48  ;;  %v866_v58 = vmax.f32 %v802_v52, 0.0  ;;  %v5122_v51 = vld [vmem:[#allocation10 + $0x30] sm:$0xff]  }
 0x196   :  { %1266 = vmatmul.mubr.bf16.gmra.mxu0 %v897_v49  ;;  %1651 = vmatmul.mubr.bf16.gmra.mxu1 %v897_v49  ;;  %v5124_v52 = vld [vmem:[#allocation10 + $0xb0] sm:$0xff]  }
 0x197   :  { %v804_v56 = vadd.f32 %v5832_v6, %v728_v54  ;;  %v867_v57 = vmax.f32 %v803_v53, 0.0  ;;  %v1735_v6 = vld [vmem:[%s6264_s6] sm:$0x3] }
 0x198   :  { %v5905_v10 = vrot.slane %v1735_v6, %v5823_v0  ;;  %v5908_v12 = vrot.slane %v1735_v6, %v5826_v1  ;;  %v5126_v6 = vld [vmem:[#allocation10 + $0x28] sm:$0xff]  }
 0x199   :  { %v868_v59 = vmax.f32 %v804_v56, 0.0  ;;  %v899_v63 = vpack.c.bf16 %v867_v57, %v865_v60  ;;  %v5125_v56 = vld [vmem:[#allocation10 + $0x68] sm:$0xff]  }
 0x19a   :  { %v5127_v57 = vld [vmem:[#allocation10 + $0xe8] sm:$0xff]  }
 0x19b   :  { %v900_v62 = vpack.c.bf16 %v868_v59, %v866_v58 }
 0x19d   :  { %1275 = vmatprep.mubr.bf16.mxu0 %v900_v62  ;;  %1660 = vmatprep.mubr.bf16.mxu1 %v900_v62 }
 0x19e   :  { %1276 = vmatmul.mubr.bf16.gmra.mxu0 %v899_v63  ;;  %1661 = vmatmul.mubr.bf16.gmra.mxu1 %v899_v63 }
 0x1e6   :  { %v1127_v4 = vpop.f32.mrf.mxu0  ;;  %v1512_v8 = vpop.f32.mrf.mxu1 }
 0x1e7   :  { %v1671_v11 = vmax.f32 %v1127_v4, %v1512_v8 }
 0x1e8   :  { %v1129_v5 = vpop.f32.mrf.mxu0  ;;  %v1514_v7 = vpop.f32.mrf.mxu1 }
 0x1e9   :  { %v1672_v9 = vmax.f32 %v1129_v5, %v1514_v7  ;;  %v1747_v21 = vadd.f32 %v5908_v12, %v1671_v11  ;;  %v5128_v5 = vld [vmem:[#allocation10 + $0xa8] sm:$0xff]  }
 0x1ea   :  { %v1131_v13 = vpop.f32.mrf.mxu0  ;;  %v1516_v14 = vpop.f32.mrf.mxu1 }
 0x1eb   :  { %v1673_v15 = vmax.f32 %v1131_v13, %v1516_v14  ;;  %v1748_v18 = vadd.f32 %v5905_v10, %v1672_v9  ;;  %v1811_v31 = vmax.f32 %v1747_v21, 0.0  ;;  %v5129_v13 = vld [vmem:[#allocation10 + $0x60] sm:$0xff]  }
 0x1ec   :  { %v1133_v16 = vpop.f32.mrf.mxu0  ;;  %v1518_v17 = vpop.f32.mrf.mxu1  ;;  %v5131_v14 = vld [vmem:[#allocation10 + $0xe0] sm:$0xff]  }
 0x1ed   :  { %v1749_v19 = vadd.f32 %v5908_v12, %v1673_v15  ;;  %v1674_v20 = vmax.f32 %v1133_v16, %v1518_v17  ;;  %v1812_v28 = vmax.f32 %v1748_v18, 0.0 }
 0x1ee   :  { %v1137_v22 = vpop.f32.mrf.mxu0  ;;  %v1522_v23 = vpop.f32.mrf.mxu1 }
 0x1ef   :  { %v1750_v24 = vadd.f32 %v5905_v10, %v1674_v20  ;;  %v1813_v25 = vmax.f32 %v1749_v19, 0.0  ;;  %v1675_v32 = vmax.f32 %v1137_v22, %v1522_v23  ;;  %v5130_v22 = vld [vmem:[#allocation10 + $0x20] sm:$0xff]  }
 0x1f0   :  { %v1139_v26 = vpop.f32.mrf.mxu0  ;;  %v1524_v27 = vpop.f32.mrf.mxu1  ;;  %v5132_v23 = vld [vmem:[#allocation10 + $0xa0] sm:$0xff]  }
 0x1f1   :  { %v1814_v29 = vmax.f32 %v1750_v24, 0.0  ;;  %v1676_v30 = vmax.f32 %v1139_v26, %v1524_v27  ;;  %v1875_v39 = vpack.c.bf16 %v1813_v25, %v1811_v31  ;;  %v1751_v47 = vadd.f32 %v5908_v12, %v1675_v32  ;;  %v5133_v27 = vld [vmem:[#allocation10 + $0x58] sm:$0xff]  }
 0x1f2   :  { %v1141_v33 = vpop.f32.mrf.mxu0  ;;  %v1526_v34 = vpop.f32.mrf.mxu1 }
 0x1f3   :  { %v1677_v35 = vmax.f32 %v1141_v33, %v1526_v34  ;;  %v1876_v36 = vpack.c.bf16 %v1814_v29, %v1812_v28  ;;  %v1752_v44 = vadd.f32 %v5905_v10, %v1676_v30  ;;  %v1815_v62 = vmax.f32 %v1751_v47, 0.0  ;;  %v5135_v28 = vld [vmem:[#allocation10 + $0xd8] sm:$0xff]  }
 0x1f4   :  { %v1143_v40 = vpop.f32.mrf.mxu0  ;;  %v1528_v41 = vpop.f32.mrf.mxu1 }
 0x1f5   :  { %v1753_v45 = vadd.f32 %v5908_v12, %v1677_v35  ;;  %v1678_v46 = vmax.f32 %v1143_v40, %v1528_v41  ;;  %2345 = vmatprep.mubr.bf16.mxu0 %v1876_v36  ;;  %2538 = vmatprep.mubr.bf16.mxu1 %v1876_v36  ;;  %v1816_v58 = vmax.f32 %v1752_v44, 0.0  ;;  %v5139_v44 = vld [vmem:[#allocation10 + $0xd0] sm:$0xff]  }
 0x1f6   :  { %v1147_v48 = vpop.f32.mrf.mxu0  ;;  %v1532_v49 = vpop.f32.mrf.mxu1  ;;  %2346 = vmatmul.mubr.bf16.vlgmr.msra.gmra.mxu0 %v1875_v39  ;;  %2539 = vmatmul.mubr.bf16.vlgmr.msra.gmra.mxu1 %v1875_v39  ;;  %v5136_v39 = vld [vmem:[#allocation10 + $0x98] sm:$0xff]  }
 0x1f7   :  { %v1754_v50 = vadd.f32 %v5905_v10, %v1678_v46  ;;  %4532 = vmatpush3.bf16.msra.mxu0 %v5118_v37  ;;  %4644 = vmatpush3.bf16.msra.mxu1 %v5120_v38  ;;  %v1817_v53 = vmax.f32 %v1753_v45, 0.0  ;;  %v1679_v63 = vmax.f32 %v1147_v48, %v1532_v49  ;;  %v5134_v38 = vld [vmem:[#allocation10 + $0x18] sm:$0xff]  }
 0x1f8   :  { %v1149_v54 = vpop.f32.mrf.mxu0  ;;  %v1534_v55 = vpop.f32.mrf.mxu1  ;;  %4533 = vmatprep.subr.bf16.mxu0 %v5121_v42  ;;  %4645 = vmatprep.subr.bf16.mxu1 %v5123_v43  ;;  %v5137_v43 = vld [vmem:[#allocation10 + $0x50] sm:$0xff]  }
 0x1f9   :  { %v1818_v59 = vmax.f32 %v1754_v50, 0.0  ;;  %v1680_v60 = vmax.f32 %v1149_v54, %v1534_v55  ;;  %v1877_v7 = vpack.c.bf16 %v1817_v53, %v1815_v62  ;;  %v1755_v18 = vadd.f32 %v5908_v12, %v1679_v63  ;;  %v5140_v53 = vld [vmem:[#allocation10 + $0x90] sm:$0xff]  }
 0x1fa   :  { %v1151_v2 = vpop.f32.mrf.mxu0  ;;  %v1536_v3 = vpop.f32.mrf.mxu1 }
 0x1fb   :  { %v1681_v4 = vmax.f32 %v1151_v2, %v1536_v3  ;;  %v1878_v8 = vpack.c.bf16 %v1818_v59, %v1816_v58  ;;  %4534 = vmatpush3.bf16.msra.mxu0 %v5122_v51  ;;  %4646 = vmatpush3.bf16.msra.mxu1 %v5124_v52  ;;  %v1756_v15 = vadd.f32 %v5905_v10, %v1680_v60  ;;  %v1819_v32 = vmax.f32 %v1755_v18, 0.0  ;;  %v5138_v52 = vld [vmem:[#allocation10 + $0x10] sm:$0xff]   ;;  %v5143_v58 = vld [vmem:[#allocation10 + $0xc8] sm:$0xff]  }
 0x1fc   :  { %v1153_v9 = vpop.f32.mrf.mxu0  ;;  %v1538_v11 = vpop.f32.mrf.mxu1  ;;  %4535 = vmatprep.subr.bf16.mxu0 %v5125_v56  ;;  %4647 = vmatprep.subr.bf16.mxu1 %v5127_v57  ;;  %v5141_v57 = vld [vmem:[#allocation10 + $0x48] sm:$0xff]  }
 0x1fd   :  { %v1757_v16 = vadd.f32 %v5908_v12, %v1681_v4  ;;  %v1682_v17 = vmax.f32 %v1153_v9, %v1538_v11  ;;  %2355 = vmatprep.mubr.bf16.mxu0 %v1878_v8  ;;  %2548 = vmatprep.mubr.bf16.mxu1 %v1878_v8  ;;  %v1820_v29 = vmax.f32 %v1756_v15, 0.0  ;;  %v5147_v15 = vld [vmem:[#allocation10 + $0xc0] sm:$0xff]  }
 0x1fe   :  { %v1157_v19 = vpop.f32.mrf.mxu0  ;;  %v1542_v20 = vpop.f32.mrf.mxu1  ;;  %2356 = vmatmul.mubr.bf16.gmra.mxu0 %v1877_v7  ;;  %2549 = vmatmul.mubr.bf16.gmra.mxu1 %v1877_v7  ;;  %v5144_v7 = vld [vmem:[#allocation10 + $0x88] sm:$0xff]  }
 0x1ff   :  { %v1758_v21 = vadd.f32 %v5905_v10, %v1682_v17  ;;  %4536 = vmatpush3.bf16.msra.mxu0 %v5126_v6  ;;  %4648 = vmatpush3.bf16.msra.mxu1 %v5128_v5  ;;  %v1821_v24 = vmax.f32 %v1757_v16, 0.0  ;;  %v1683_v33 = vmax.f32 %v1157_v19, %v1542_v20  ;;  %v5142_v5 = vld [vmem:[#allocation10 + $0x8] sm:$0xff]  }
 0x200   :  { %v1159_v25 = vpop.f32.mrf.mxu0  ;;  %v1544_v26 = vpop.f32.mrf.mxu1  ;;  %4537 = vmatprep.subr.bf16.mxu0 %v5129_v13  ;;  %4649 = vmatprep.subr.bf16.mxu1 %v5131_v14  ;;  %v5145_v14 = vld [vmem:[#allocation10 + $0x40] sm:$0xff]  }
 0x201   :  { %v1822_v30 = vmax.f32 %v1758_v21, 0.0  ;;  %v1684_v31 = vmax.f32 %v1159_v25, %v1544_v26  ;;  %v1879_v40 = vpack.c.bf16 %v1821_v24, %v1819_v32  ;;  %v1759_v48 = vadd.f32 %v5908_v12, %v1683_v33 }
 0x202   :  { %v1161_v34 = vpop.f32.mrf.mxu0  ;;  %v1546_v35 = vpop.f32.mrf.mxu1 }
 0x203   :  { %v1685_v36 = vmax.f32 %v1161_v34, %v1546_v35  ;;  %v1880_v37 = vpack.c.bf16 %v1822_v30, %v1820_v29  ;;  %4538 = vmatpush3.bf16.msra.mxu0 %v5130_v22  ;;  %4650 = vmatpush3.bf16.msra.mxu1 %v5132_v23  ;;  %v1760_v45 = vadd.f32 %v5905_v10, %v1684_v31  ;;  %v1823_v63 = vmax.f32 %v1759_v48, 0.0  ;;  %v5146_v23 = vld [vmem:[#allocation10] sm:$0xff]  }
 0x204   :  { %v1163_v41 = vpop.f32.mrf.mxu0  ;;  %v1548_v42 = vpop.f32.mrf.mxu1  ;;  %4539 = vmatprep.subr.bf16.mxu0 %v5133_v27  ;;  %4651 = vmatprep.subr.bf16.mxu1 %v5135_v28 }
 0x205   :  { %v1761_v46 = vadd.f32 %v5908_v12, %v1685_v36  ;;  %v1686_v47 = vmax.f32 %v1163_v41, %v1548_v42  ;;  %2365 = vmatprep.mubr.bf16.mxu0 %v1880_v37  ;;  %2558 = vmatprep.mubr.bf16.mxu1 %v1880_v37  ;;  %v1824_v59 = vmax.f32 %v1760_v45, 0.0 }
 0x206   :  { %v1167_v49 = vpop.f32.mrf.mxu0  ;;  %v1552_v50 = vpop.f32.mrf.mxu1  ;;  %2366 = vmatmul.mubr.bf16.gmra.mxu0 %v1879_v40  ;;  %2559 = vmatmul.mubr.bf16.gmra.mxu1 %v1879_v40 }
 0x207   :  { %v1762_v51 = vadd.f32 %v5905_v10, %v1686_v47  ;;  %4540 = vmatpush3.bf16.msra.mxu0 %v5134_v38  ;;  %4652 = vmatpush3.bf16.msra.mxu1 %v5136_v39  ;;  %v1825_v54 = vmax.f32 %v1761_v46, 0.0  ;;  %v1687_v2 = vmax.f32 %v1167_v49, %v1552_v50 }
 0x208   :  { %v1169_v55 = vpop.f32.mrf.mxu0  ;;  %v1554_v56 = vpop.f32.mrf.mxu1  ;;  %4541 = vmatprep.subr.bf16.mxu0 %v5137_v43  ;;  %4653 = vmatprep.subr.bf16.mxu1 %v5139_v44 }
 0x209   :  { %v1826_v60 = vmax.f32 %v1762_v51, 0.0  ;;  %v1688_v62 = vmax.f32 %v1169_v55, %v1554_v56  ;;  %v1881_v9 = vpack.c.bf16 %v1825_v54, %v1823_v63  ;;  %v1763_v19 = vadd.f32 %v5908_v12, %v1687_v2 }
 0x20a   :  { %v1171_v3 = vpop.f32.mrf.mxu0  ;;  %v1556_v4 = vpop.f32.mrf.mxu1 }
 0x20b   :  { %v1689_v8 = vmax.f32 %v1171_v3, %v1556_v4  ;;  %v1882_v6 = vpack.c.bf16 %v1826_v60, %v1824_v59  ;;  %4542 = vmatpush3.bf16.msra.mxu0 %v5138_v52  ;;  %4654 = vmatpush3.bf16.msra.mxu1 %v5140_v53  ;;  %v1764_v16 = vadd.f32 %v5905_v10, %v1688_v62  ;;  %v1827_v30 = vmax.f32 %v1763_v19, 0.0 }
 0x20c   :  { %v1173_v11 = vpop.f32.mrf.mxu0  ;;  %v1558_v13 = vpop.f32.mrf.mxu1  ;;  %4543 = vmatprep.subr.bf16.mxu0 %v5141_v57  ;;  %4655 = vmatprep.subr.bf16.mxu1 %v5143_v58 }
 0x20d   :  { %v1765_v17 = vadd.f32 %v5908_v12, %v1689_v8  ;;  %v1690_v18 = vmax.f32 %v1173_v11, %v1558_v13  ;;  %2375 = vmatprep.mubr.bf16.mxu0 %v1882_v6  ;;  %2568 = vmatprep.mubr.bf16.mxu1 %v1882_v6  ;;  %v1828_v27 = vmax.f32 %v1764_v16, 0.0 }
 0x20e   :  { %v1177_v20 = vpop.f32.mrf.mxu0  ;;  %v1562_v21 = vpop.f32.mrf.mxu1  ;;  %2376 = vmatmul.mubr.bf16.gmra.mxu0 %v1881_v9  ;;  %2569 = vmatmul.mubr.bf16.gmra.mxu1 %v1881_v9 }
 0x20f   :  { %v1766_v22 = vadd.f32 %v5905_v10, %v1690_v18  ;;  %4544 = vmatpush3.bf16.msra.mxu0 %v5142_v5  ;;  %4656 = vmatpush3.bf16.msra.mxu1 %v5144_v7  ;;  %v1829_v24 = vmax.f32 %v1765_v17, 0.0  ;;  %v1691_v31 = vmax.f32 %v1177_v20, %v1562_v21 }
 0x210   :  { %v1179_v25 = vpop.f32.mrf.mxu0  ;;  %v1564_v26 = vpop.f32.mrf.mxu1  ;;  %4545 = vmatprep.subr.bf16.mxu0 %v5145_v14  ;;  %4657 = vmatprep.subr.bf16.mxu1 %v5147_v15 }
 0x211   :  { %v1830_v28 = vmax.f32 %v1766_v22, 0.0  ;;  %v1692_v29 = vmax.f32 %v1179_v25, %v1564_v26  ;;  %v1883_v36 = vpack.c.bf16 %v1829_v24, %v1827_v30  ;;  %v1767_v42 = vadd.f32 %v5908_v12, %v1691_v31 }
 0x212   :  { %v1181_v32 = vpop.f32.mrf.mxu0  ;;  %v1566_v33 = vpop.f32.mrf.mxu1 }
 0x213   :  { %v1693_v34 = vmax.f32 %v1181_v32, %v1566_v33  ;;  %v1884_v35 = vpack.c.bf16 %v1830_v28, %v1828_v27  ;;  %4546 = vmatpush3.bf16.msra.mxu0 %v5146_v23  ;;  %v1768_v39 = vadd.f32 %v5905_v10, %v1692_v29  ;;  %v1831_v52 = vmax.f32 %v1767_v42, 0.0 }
 0x214   :  { %v1183_v37 = vpop.f32.mrf.mxu0  ;;  %v1568_v38 = vpop.f32.mrf.mxu1 }
 0x215   :  { %v1769_v40 = vadd.f32 %v5908_v12, %v1693_v34  ;;  %v1694_v41 = vmax.f32 %v1183_v37, %v1568_v38  ;;  %2385 = vmatprep.mubr.bf16.mxu0 %v1884_v35  ;;  %2578 = vmatprep.mubr.bf16.mxu1 %v1884_v35  ;;  %v1832_v49 = vmax.f32 %v1768_v39, 0.0 }
 0x216   :  { %v1187_v43 = vpop.f32.mrf.mxu0  ;;  %v1572_v44 = vpop.f32.mrf.mxu1  ;;  %2386 = vmatmul.mubr.bf16.gmra.mxu0 %v1883_v36  ;;  %2579 = vmatmul.mubr.bf16.gmra.mxu1 %v1883_v36 }
 0x217   :  { %v1770_v45 = vadd.f32 %v5905_v10, %v1694_v41  ;;  %v1833_v46 = vmax.f32 %v1769_v40, 0.0  ;;  %v1695_v53 = vmax.f32 %v1187_v43, %v1572_v44 }
 0x218   :  { %v1189_v47 = vpop.f32.mrf.mxu0  ;;  %v1574_v48 = vpop.f32.mrf.mxu1 }
 0x219   :  { %v1834_v50 = vmax.f32 %v1770_v45, 0.0  ;;  %v1696_v51 = vmax.f32 %v1189_v47, %v1574_v48  ;;  %v1885_v58 = vpack.c.bf16 %v1833_v46, %v1831_v52  ;;  %v1771_v3 = vadd.f32 %v5908_v12, %v1695_v53 }
 0x21a   :  { %v1191_v54 = vpop.f32.mrf.mxu0  ;;  %v1576_v55 = vpop.f32.mrf.mxu1 }
 0x21b   :  { %v1697_v56 = vmax.f32 %v1191_v54, %v1576_v55  ;;  %v1886_v57 = vpack.c.bf16 %v1834_v50, %v1832_v49  ;;  %v1772_v62 = vadd.f32 %v5905_v10, %v1696_v51  ;;  %v1835_v15 = vmax.f32 %v1771_v3, 0.0 }
 0x21c   :  { %v1193_v59 = vpop.f32.mrf.mxu0  ;;  %v1578_v60 = vpop.f32.mrf.mxu1 }
 0x21d   :  { %v1773_v63 = vadd.f32 %v5908_v12, %v1697_v56  ;;  %v1698_v2 = vmax.f32 %v1193_v59, %v1578_v60  ;;  %2395 = vmatprep.mubr.bf16.mxu0 %v1886_v57  ;;  %2588 = vmatprep.mubr.bf16.mxu1 %v1886_v57  ;;  %v1836_v11 = vmax.f32 %v1772_v62, 0.0 }
 0x21e   :  { %v1197_v4 = vpop.f32.mrf.mxu0  ;;  %v1582_v8 = vpop.f32.mrf.mxu1  ;;  %2396 = vmatmul.mubr.bf16.gmra.mxu0 %v1885_v58  ;;  %2589 = vmatmul.mubr.bf16.gmra.mxu1 %v1885_v58 }
 0x21f   :  { %v1774_v6 = vadd.f32 %v5905_v10, %v1698_v2  ;;  %v1837_v5 = vmax.f32 %v1773_v63, 0.0  ;;  %v1699_v16 = vmax.f32 %v1197_v4, %v1582_v8 }
 0x220   :  { %v1199_v7 = vpop.f32.mrf.mxu0  ;;  %v1584_v9 = vpop.f32.mrf.mxu1 }
 0x221   :  { %v1838_v13 = vmax.f32 %v1774_v6, 0.0  ;;  %v1700_v14 = vmax.f32 %v1199_v7, %v1584_v9  ;;  %v1887_v21 = vpack.c.bf16 %v1837_v5, %v1835_v15  ;;  %v1775_v27 = vadd.f32 %v5908_v12, %v1699_v16 }
 0x222   :  { %v1201_v17 = vpop.f32.mrf.mxu0  ;;  %v1586_v18 = vpop.f32.mrf.mxu1 }
 0x223   :  { %v1701_v19 = vmax.f32 %v1201_v17, %v1586_v18  ;;  %v1888_v20 = vpack.c.bf16 %v1838_v13, %v1836_v11  ;;  %v1776_v24 = vadd.f32 %v5905_v10, %v1700_v14  ;;  %v1839_v37 = vmax.f32 %v1775_v27, 0.0 }
 0x224   :  { %v1203_v22 = vpop.f32.mrf.mxu0  ;;  %v1588_v23 = vpop.f32.mrf.mxu1 }
 0x225   :  { %v1777_v25 = vadd.f32 %v5908_v12, %v1701_v19  ;;  %v1702_v26 = vmax.f32 %v1203_v22, %v1588_v23  ;;  %2405 = vmatprep.mubr.bf16.mxu0 %v1888_v20  ;;  %2598 = vmatprep.mubr.bf16.mxu1 %v1888_v20  ;;  %v1840_v34 = vmax.f32 %v1776_v24, 0.0  ;;  %v5148_v22 = vld [vmem:[#allocation10 + $0x80] sm:$0xff]  }
 0x226   :  { %v1207_v28 = vpop.f32.mrf.mxu0  ;;  %v1592_v29 = vpop.f32.mrf.mxu1  ;;  %2406 = vmatmul.mubr.bf16.gmra.mxu0 %v1887_v21  ;;  %2599 = vmatmul.mubr.bf16.gmra.mxu1 %v1887_v21 }
 0x227   :  { %v1778_v30 = vadd.f32 %v5905_v10, %v1702_v26  ;;  %v1841_v31 = vmax.f32 %v1777_v25, 0.0  ;;  %v1703_v38 = vmax.f32 %v1207_v28, %v1592_v29  ;;  %4658 = vmatpush3.bf16.msra.mxu1 %v5148_v22 }
 0x228   :  { %v1209_v32 = vpop.f32.mrf.mxu0  ;;  %v1594_v33 = vpop.f32.mrf.mxu1 }
 0x229   :  { %v1842_v35 = vmax.f32 %v1778_v30, 0.0  ;;  %v1704_v36 = vmax.f32 %v1209_v32, %v1594_v33  ;;  %v1889_v43 = vpack.c.bf16 %v1841_v31, %v1839_v37  ;;  %v1779_v49 = vadd.f32 %v5908_v12, %v1703_v38 }
 0x22a   :  { %v1211_v39 = vpop.f32.mrf.mxu0  ;;  %v1596_v40 = vpop.f32.mrf.mxu1 }
 0x22b   :  { %v1705_v41 = vmax.f32 %v1211_v39, %v1596_v40  ;;  %v1890_v42 = vpack.c.bf16 %v1842_v35, %v1840_v34  ;;  %v1780_v46 = vadd.f32 %v5905_v10, %v1704_v36  ;;  %v1843_v59 = vmax.f32 %v1779_v49, 0.0 }
 0x22c   :  { %v1213_v44 = vpop.f32.mrf.mxu0  ;;  %v1598_v45 = vpop.f32.mrf.mxu1 }
 0x22d   :  { %v1781_v47 = vadd.f32 %v5908_v12, %v1705_v41  ;;  %v1706_v48 = vmax.f32 %v1213_v44, %v1598_v45  ;;  %2415 = vmatprep.mubr.bf16.mxu0 %v1890_v42  ;;  %2608 = vmatprep.mubr.bf16.mxu1 %v1890_v42  ;;  %v1844_v56 = vmax.f32 %v1780_v46, 0.0 }
 0x22e   :  { %v1217_v50 = vpop.f32.mrf.mxu0  ;;  %v1602_v51 = vpop.f32.mrf.mxu1  ;;  %2416 = vmatmul.mubr.bf16.gmra.mxu0 %v1889_v43  ;;  %2609 = vmatmul.mubr.bf16.gmra.mxu1 %v1889_v43 }
 0x22f   :  { %v1782_v52 = vadd.f32 %v5905_v10, %v1706_v48  ;;  %v1845_v53 = vmax.f32 %v1781_v47, 0.0  ;;  %v1707_v60 = vmax.f32 %v1217_v50, %v1602_v51 }
 0x230   :  { %v1219_v54 = vpop.f32.mrf.mxu0  ;;  %v1604_v55 = vpop.f32.mrf.mxu1 }
 0x231   :  { %v1846_v57 = vmax.f32 %v1782_v52, 0.0  ;;  %v1708_v58 = vmax.f32 %v1219_v54, %v1604_v55  ;;  %v1891_v4 = vpack.c.bf16 %v1845_v53, %v1843_v59  ;;  %v1783_v11 = vadd.f32 %v5908_v12, %v1707_v60 }
 0x232   :  { %v1221_v62 = vpop.f32.mrf.mxu0  ;;  %v1606_v63 = vpop.f32.mrf.mxu1 }
 0x233   :  { %v1709_v2 = vmax.f32 %v1221_v62, %v1606_v63  ;;  %v1892_v3 = vpack.c.bf16 %v1846_v57, %v1844_v56  ;;  %v1784_v5 = vadd.f32 %v5905_v10, %v1708_v58  ;;  %v1847_v23 = vmax.f32 %v1783_v11, 0.0 }
 0x234   :  { %v1223_v8 = vpop.f32.mrf.mxu0  ;;  %v1608_v6 = vpop.f32.mrf.mxu1 }
 0x235   :  { %v1785_v7 = vadd.f32 %v5908_v12, %v1709_v2  ;;  %v1710_v9 = vmax.f32 %v1223_v8, %v1608_v6  ;;  %2425 = vmatprep.mubr.bf16.mxu0 %v1892_v3  ;;  %2618 = vmatprep.mubr.bf16.mxu1 %v1892_v3  ;;  %v1848_v19 = vmax.f32 %v1784_v5, 0.0 }
 0x236   :  { %v1227_v13 = vpop.f32.mrf.mxu0  ;;  %v1612_v14 = vpop.f32.mrf.mxu1  ;;  %2426 = vmatmul.mubr.bf16.gmra.mxu0 %v1891_v4  ;;  %2619 = vmatmul.mubr.bf16.gmra.mxu1 %v1891_v4 }
 0x237   :  { %v1786_v15 = vadd.f32 %v5905_v10, %v1710_v9  ;;  %v1849_v16 = vmax.f32 %v1785_v7, 0.0  ;;  %v1711_v24 = vmax.f32 %v1227_v13, %v1612_v14 }
 0x238   :  { %v1229_v17 = vpop.f32.mrf.mxu0  ;;  %v1614_v18 = vpop.f32.mrf.mxu1 }
 0x239   :  { %v1850_v20 = vmax.f32 %v1786_v15, 0.0  ;;  %v1712_v21 = vmax.f32 %v1229_v17, %v1614_v18  ;;  %v1893_v29 = vpack.c.bf16 %v1849_v16, %v1847_v23  ;;  %v1787_v35 = vadd.f32 %v5908_v12, %v1711_v24 }
 0x23a   :  { %v1231_v25 = vpop.f32.mrf.mxu0  ;;  %v1616_v26 = vpop.f32.mrf.mxu1 }
 0x23b   :  { %v1713_v27 = vmax.f32 %v1231_v25, %v1616_v26  ;;  %v1894_v28 = vpack.c.bf16 %v1850_v20, %v1848_v19  ;;  %v1788_v32 = vadd.f32 %v5905_v10, %v1712_v21  ;;  %v1851_v45 = vmax.f32 %v1787_v35, 0.0 }
 0x23c   :  { %v1233_v30 = vpop.f32.mrf.mxu0  ;;  %v1618_v31 = vpop.f32.mrf.mxu1 }
 0x23d   :  { %v1789_v33 = vadd.f32 %v5908_v12, %v1713_v27  ;;  %v1714_v34 = vmax.f32 %v1233_v30, %v1618_v31  ;;  %2435 = vmatprep.mubr.bf16.mxu0 %v1894_v28  ;;  %2628 = vmatprep.mubr.bf16.mxu1 %v1894_v28  ;;  %v1852_v42 = vmax.f32 %v1788_v32, 0.0 }
 0x23e   :  { %v1237_v36 = vpop.f32.mrf.mxu0  ;;  %v1622_v37 = vpop.f32.mrf.mxu1  ;;  %2436 = vmatmul.mubr.bf16.gmra.mxu0 %v1893_v29  ;;  %2629 = vmatmul.mubr.bf16.gmra.mxu1 %v1893_v29 }
 0x23f   :  { %v1790_v38 = vadd.f32 %v5905_v10, %v1714_v34  ;;  %v1853_v39 = vmax.f32 %v1789_v33, 0.0  ;;  %v1715_v46 = vmax.f32 %v1237_v36, %v1622_v37 }
 0x240   :  { %v1239_v40 = vpop.f32.mrf.mxu0  ;;  %v1624_v41 = vpop.f32.mrf.mxu1 }
 0x241   :  { %v1854_v43 = vmax.f32 %v1790_v38, 0.0  ;;  %v1716_v44 = vmax.f32 %v1239_v40, %v1624_v41  ;;  %v1895_v51 = vpack.c.bf16 %v1853_v39, %v1851_v45  ;;  %v1791_v57 = vadd.f32 %v5908_v12, %v1715_v46 }
 0x242   :  { %v1241_v47 = vpop.f32.mrf.mxu0  ;;  %v1626_v48 = vpop.f32.mrf.mxu1 }
 0x243   :  { %v1717_v49 = vmax.f32 %v1241_v47, %v1626_v48  ;;  %v1896_v50 = vpack.c.bf16 %v1854_v43, %v1852_v42  ;;  %v1792_v54 = vadd.f32 %v5905_v10, %v1716_v44  ;;  %v1855_v6 = vmax.f32 %v1791_v57, 0.0 }
 0x244   :  { %v1243_v52 = vpop.f32.mrf.mxu0  ;;  %v1628_v53 = vpop.f32.mrf.mxu1 }
 0x245   :  { %v1793_v55 = vadd.f32 %v5908_v12, %v1717_v49  ;;  %v1718_v56 = vmax.f32 %v1243_v52, %v1628_v53  ;;  %2445 = vmatprep.mubr.bf16.mxu0 %v1896_v50  ;;  %2638 = vmatprep.mubr.bf16.mxu1 %v1896_v50  ;;  %v1856_v3 = vmax.f32 %v1792_v54, 0.0 }
 0x246   :  { %v1247_v58 = vpop.f32.mrf.mxu0  ;;  %v1632_v59 = vpop.f32.mrf.mxu1  ;;  %2446 = vmatmul.mubr.bf16.gmra.mxu0 %v1895_v51  ;;  %2639 = vmatmul.mubr.bf16.gmra.mxu1 %v1895_v51 }
 0x247   :  { %v1794_v60 = vadd.f32 %v5905_v10, %v1718_v56  ;;  %v1857_v62 = vmax.f32 %v1793_v55, 0.0  ;;  %v1719_v5 = vmax.f32 %v1247_v58, %v1632_v59 }
 0x248   :  { %v1249_v63 = vpop.f32.mrf.mxu0  ;;  %v1634_v2 = vpop.f32.mrf.mxu1 }
 0x249   :  { %v1858_v4 = vmax.f32 %v1794_v60, 0.0  ;;  %v1720_v8 = vmax.f32 %v1249_v63, %v1634_v2  ;;  %v1897_v14 = vpack.c.bf16 %v1857_v62, %v1855_v6  ;;  %v1795_v20 = vadd.f32 %v5908_v12, %v1719_v5 }
 0x24a   :  { %v1251_v7 = vpop.f32.mrf.mxu0  ;;  %v1636_v9 = vpop.f32.mrf.mxu1 }
 0x24b   :  { %v1721_v11 = vmax.f32 %v1251_v7, %v1636_v9  ;;  %v1898_v13 = vpack.c.bf16 %v1858_v4, %v1856_v3  ;;  %v1796_v17 = vadd.f32 %v5905_v10, %v1720_v8  ;;  %v1859_v30 = vmax.f32 %v1795_v20, 0.0 }
 0x24c   :  { %v1253_v15 = vpop.f32.mrf.mxu0  ;;  %v1638_v16 = vpop.f32.mrf.mxu1 }
 0x24d   :  { %v1797_v18 = vadd.f32 %v5908_v12, %v1721_v11  ;;  %v1722_v19 = vmax.f32 %v1253_v15, %v1638_v16  ;;  %2455 = vmatprep.mubr.bf16.mxu0 %v1898_v13  ;;  %2648 = vmatprep.mubr.bf16.mxu1 %v1898_v13  ;;  %v1860_v27 = vmax.f32 %v1796_v17, 0.0 }
 0x24e   :  { %v1257_v21 = vpop.f32.mrf.mxu0  ;;  %v1642_v22 = vpop.f32.mrf.mxu1  ;;  %2456 = vmatmul.mubr.bf16.gmra.mxu0 %v1897_v14  ;;  %2649 = vmatmul.mubr.bf16.gmra.mxu1 %v1897_v14 }
 0x24f   :  { %v1798_v23 = vadd.f32 %v5905_v10, %v1722_v19  ;;  %v1861_v24 = vmax.f32 %v1797_v18, 0.0  ;;  %v1723_v31 = vmax.f32 %v1257_v21, %v1642_v22 }
 0x250   :  { %v1259_v25 = vpop.f32.mrf.mxu0  ;;  %v1644_v26 = vpop.f32.mrf.mxu1 }
 0x251   :  { %v1862_v28 = vmax.f32 %v1798_v23, 0.0  ;;  %v1724_v29 = vmax.f32 %v1259_v25, %v1644_v26  ;;  %v1899_v36 = vpack.c.bf16 %v1861_v24, %v1859_v30  ;;  %v1799_v42 = vadd.f32 %v5908_v12, %v1723_v31 }
 0x252   :  { %v1261_v32 = vpop.f32.mrf.mxu0  ;;  %v1646_v33 = vpop.f32.mrf.mxu1 }
 0x253   :  { %v1725_v34 = vmax.f32 %v1261_v32, %v1646_v33  ;;  %v1900_v35 = vpack.c.bf16 %v1862_v28, %v1860_v27  ;;  %v1800_v39 = vadd.f32 %v5905_v10, %v1724_v29  ;;  %v1863_v52 = vmax.f32 %v1799_v42, 0.0 }
 0x254   :  { %v1263_v37 = vpop.f32.mrf.mxu0  ;;  %v1648_v38 = vpop.f32.mrf.mxu1 }
 0x255   :  { %v1801_v40 = vadd.f32 %v5908_v12, %v1725_v34  ;;  %v1726_v41 = vmax.f32 %v1263_v37, %v1648_v38  ;;  %2465 = vmatprep.mubr.bf16.mxu0 %v1900_v35  ;;  %2658 = vmatprep.mubr.bf16.mxu1 %v1900_v35  ;;  %v1864_v49 = vmax.f32 %v1800_v39, 0.0  ;;  %v1987_v35 = vsub.s32 3, %v5820_v61 }
 0x256   :  { %v1267_v43 = vpop.f32.mrf.mxu0  ;;  %v1652_v44 = vpop.f32.mrf.mxu1  ;;  %2466 = vmatmul.mubr.bf16.gmra.mxu0 %v1899_v36  ;;  %2659 = vmatmul.mubr.bf16.gmra.mxu1 %v1899_v36  ;;  %v1983_v36 = vsub.s32 2, %v5820_v61 }
 0x257   :  { %v1802_v45 = vadd.f32 %v5905_v10, %v1726_v41  ;;  %v1865_v46 = vmax.f32 %v1801_v40, 0.0  ;;  %v1727_v53 = vmax.f32 %v1267_v43, %v1652_v44 }
 0x258   :  { %v1269_v47 = vpop.f32.mrf.mxu0  ;;  %v1654_v48 = vpop.f32.mrf.mxu1 }
 0x259   :  { %v1866_v50 = vmax.f32 %v1802_v45, 0.0  ;;  %v1728_v51 = vmax.f32 %v1269_v47, %v1654_v48  ;;  %v1901_v58 = vpack.c.bf16 %v1865_v46, %v1863_v52  ;;  %v1803_v3 = vadd.f32 %v5908_v12, %v1727_v53 }
 0x25a   :  { %v1271_v54 = vpop.f32.mrf.mxu0  ;;  %v1656_v55 = vpop.f32.mrf.mxu1 }
 0x25b   :  { %v1729_v56 = vmax.f32 %v1271_v54, %v1656_v55  ;;  %v1902_v57 = vpack.c.bf16 %v1866_v50, %v1864_v49  ;;  %v1804_v62 = vadd.f32 %v5905_v10, %v1728_v51  ;;  %v1867_v15 = vmax.f32 %v1803_v3, 0.0  ;;  %v5149_v51 = vld [vmem:[%s6269_s11 + $0x38] sm:$0xff]  }
 0x25c   :  { %v1273_v59 = vpop.f32.mrf.mxu0  ;;  %v1658_v60 = vpop.f32.mrf.mxu1  ;;  %4803 = vmatprep.subr.bf16.mxu0 %v5149_v51 }
 0x25d   :  { %v1805_v63 = vadd.f32 %v5908_v12, %v1729_v56  ;;  %v1730_v2 = vmax.f32 %v1273_v59, %v1658_v60  ;;  %2475 = vmatprep.mubr.bf16.mxu0 %v1902_v57  ;;  %2668 = vmatprep.mubr.bf16.mxu1 %v1902_v57  ;;  %v1868_v11 = vmax.f32 %v1804_v62, 0.0 }
 0x25e   :  { %v1277_v4 = vpop.f32.mrf.mxu0  ;;  %v1662_v8 = vpop.f32.mrf.mxu1  ;;  %2476 = vmatmul.mubr.bf16.gmra.mxu0 %v1901_v58  ;;  %2669 = vmatmul.mubr.bf16.gmra.mxu1 %v1901_v58 }
 0x25f   :  { %v1806_v6 = vadd.f32 %v5905_v10, %v1730_v2  ;;  %v1869_v5 = vmax.f32 %v1805_v63, 0.0  ;;  %v1731_v16 = vmax.f32 %v1277_v4, %v1662_v8 }
 0x260   :  { %v1279_v7 = vpop.f32.mrf.mxu0  ;;  %v1664_v9 = vpop.f32.mrf.mxu1 }
 0x261   :  { %v1870_v13 = vmax.f32 %v1806_v6, 0.0  ;;  %v1732_v14 = vmax.f32 %v1279_v7, %v1664_v9  ;;  %v1903_v21 = vpack.c.bf16 %v1869_v5, %v1867_v15  ;;  %v1807_v27 = vadd.f32 %v5908_v12, %v1731_v16 }
 0x262   :  { %v1281_v17 = vpop.f32.mrf.mxu0  ;;  %v1666_v18 = vpop.f32.mrf.mxu1 }
 0x263   :  { %v1733_v19 = vmax.f32 %v1281_v17, %v1666_v18  ;;  %v1904_v20 = vpack.c.bf16 %v1870_v13, %v1868_v11  ;;  %v1808_v24 = vadd.f32 %v5905_v10, %v1732_v14  ;;  %v1871_v32 = vmax.f32 %v1807_v27, 0.0  ;;  %v5150_v14 = vld [vmem:[%s6269_s11 + $0x30] sm:$0xff]  }
 0x264   :  { %v1283_v22 = vpop.f32.mrf.mxu0  ;;  %v1668_v23 = vpop.f32.mrf.mxu1 }
 0x265   :  { %v1809_v25 = vadd.f32 %v5908_v12, %v1733_v19  ;;  %v1734_v26 = vmax.f32 %v1283_v22, %v1668_v23  ;;  %2485 = vmatprep.mubr.bf16.mxu0 %v1904_v20  ;;  %2678 = vmatprep.mubr.bf16.mxu1 %v1904_v20  ;;  %v1872_v30 = vmax.f32 %v1808_v24, 0.0  ;;  %v1971_v12 = vld [vmem:[%s6266_s8] sm:$0xf] }
 0x266   :  { %2486 = vmatmul.mubr.bf16.gmra.mxu0 %v1903_v21  ;;  %2679 = vmatmul.mubr.bf16.gmra.mxu1 %v1903_v21  ;;  %v5980_v38 = vrot.slane %v1971_v12, %v5823_v0  ;;  %v5982_v39 = vrot.slane %v1971_v12, %v1987_v35  ;;  %v5985_v40 = vrot.slane %v1971_v12, %v5826_v1 }
 0x267   :  { %v1810_v28 = vadd.f32 %v5905_v10, %v1734_v26  ;;  %v1873_v29 = vmax.f32 %v1809_v25, 0.0  ;;  %v5987_v41 = vrot.slane %v1971_v12, %v1983_v36 }
 0x269   :  { %v1874_v31 = vmax.f32 %v1810_v28, 0.0  ;;  %v1905_v34 = vpack.c.bf16 %v1873_v29, %v1871_v32  ;;  %v5151_v28 = vld [vmem:[%s6269_s11 + $0x28] sm:$0xff]  }
 0x26b   :  { %v1906_v33 = vpack.c.bf16 %v1874_v31, %v1872_v30 }
 0x26d   :  { %2495 = vmatprep.mubr.bf16.mxu0 %v1906_v33  ;;  %2688 = vmatprep.mubr.bf16.mxu1 %v1906_v33 }
 0x26e   :  { %2496 = vmatmul.mubr.bf16.gmra.mxu0 %v1905_v34  ;;  %2689 = vmatmul.mubr.bf16.gmra.mxu1 %v1905_v34 }
 0x2b6   :  { %v2347_v37 = vpop.f32.mrf.mxu0  ;;  %v2540_v10 = vpop.f32.mrf.mxu1 }
 0x2b7   :  { %v2348_v48 = vadd.f32 %v2347_v37, %v5985_v40  ;;  %v2541_v49 = vadd.f32 %v2540_v10, %v5987_v41 }
 0x2b8   :  { %v2349_v42 = vpop.f32.mrf.mxu0  ;;  %v2542_v43 = vpop.f32.mrf.mxu1 }
 0x2b9   :  { %v2350_v45 = vadd.f32 %v2349_v42, %v5980_v38  ;;  %v2543_v46 = vadd.f32 %v2542_v43, %v5982_v39  ;;  %v2699_v63 = vmax.f32 %v2348_v48, 0.0  ;;  %v2701_v2 = vmax.f32 %v2541_v49, 0.0 }
 0x2ba   :  { %v2351_v44 = vpop.f32.mrf.mxu0  ;;  %v2544_v61 = vpop.f32.mrf.mxu1 }
 0x2bb   :  { %v2352_v47 = vadd.f32 %v2351_v44, %v5985_v40  ;;  %v2545_v0 = vadd.f32 %v2544_v61, %v5987_v41  ;;  %v2700_v58 = vmax.f32 %v2350_v45, 0.0  ;;  %v2702_v59 = vmax.f32 %v2543_v46, 0.0 }
 0x2bc   :  { %v2353_v1 = vpop.f32.mrf.mxu0  ;;  %v2546_v50 = vpop.f32.mrf.mxu1 }
 0x2bd   :  { %v2354_v52 = vadd.f32 %v2353_v1, %v5980_v38  ;;  %v2547_v53 = vadd.f32 %v2546_v50, %v5982_v39  ;;  %v2703_v54 = vmax.f32 %v2352_v47, 0.0  ;;  %v2705_v55 = vmax.f32 %v2545_v0, 0.0 }
 0x2be   :  { %v2357_v56 = vpop.f32.mrf.mxu0  ;;  %v2550_v57 = vpop.f32.mrf.mxu1 }
 0x2bf   :  { %v2704_v60 = vmax.f32 %v2354_v52, 0.0  ;;  %v2706_v62 = vmax.f32 %v2547_v53, 0.0  ;;  %v2827_v5 = vpack.c.bf16 %v2703_v54, %v2699_v63  ;;  %v2829_v7 = vpack.c.bf16 %v2705_v55, %v2701_v2 }
 0x2c0   :  { %v2359_v3 = vpop.f32.mrf.mxu0  ;;  %v2552_v4 = vpop.f32.mrf.mxu1  ;;  %v2358_v18 = vadd.f32 %v2357_v56, %v5985_v40  ;;  %v2551_v19 = vadd.f32 %v2550_v57, %v5987_v41 }
 0x2c1   :  { %v2828_v8 = vpack.c.bf16 %v2704_v60, %v2700_v58  ;;  %v2830_v6 = vpack.c.bf16 %v2706_v62, %v2702_v59  ;;  %v2360_v9 = vadd.f32 %v2359_v3, %v5980_v38  ;;  %v2553_v15 = vadd.f32 %v2552_v4, %v5982_v39 }
 0x2c2   :  { %v2361_v11 = vpop.f32.mrf.mxu0  ;;  %v2554_v13 = vpop.f32.mrf.mxu1  ;;  %v2707_v33 = vmax.f32 %v2358_v18, 0.0  ;;  %v2709_v34 = vmax.f32 %v2551_v19, 0.0 }
 0x2c3   :  { %v2362_v16 = vadd.f32 %v2361_v11, %v5985_v40  ;;  %v2555_v17 = vadd.f32 %v2554_v13, %v5987_v41  ;;  %3186 = vmatprep.mubr.bf16.mxu0 %v2828_v8  ;;  %3347 = vmatprep.mubr.bf16.mxu1 %v2830_v6  ;;  %v2708_v29 = vmax.f32 %v2360_v9, 0.0  ;;  %v2710_v30 = vmax.f32 %v2553_v15, 0.0 }
 0x2c4   :  { %v2363_v20 = vpop.f32.mrf.mxu0  ;;  %v2556_v21 = vpop.f32.mrf.mxu1  ;;  %3187 = vmatmul.mubr.bf16.vlgmr.msra.gmra.mxu0 %v2827_v5  ;;  %3348 = vmatmul.mubr.bf16.vlgmr.msra.gmra.mxu1 %v2829_v7 }
 0x2c5   :  { %v2364_v22 = vadd.f32 %v2363_v20, %v5980_v38  ;;  %v2557_v23 = vadd.f32 %v2556_v21, %v5982_v39  ;;  %4804 = vmatpush3.bf16.msra.mxu0 %v5149_v51  ;;  %v2711_v24 = vmax.f32 %v2362_v16, 0.0  ;;  %v2713_v25 = vmax.f32 %v2555_v17, 0.0 }
 0x2c6   :  { %v2367_v26 = vpop.f32.mrf.mxu0  ;;  %v2560_v27 = vpop.f32.mrf.mxu1  ;;  %4805 = vmatprep.subr.bf16.mxu0 %v5150_v14 }
 0x2c7   :  { %v2712_v31 = vmax.f32 %v2364_v22, 0.0  ;;  %v2714_v32 = vmax.f32 %v2557_v23, 0.0  ;;  %v2831_v10 = vpack.c.bf16 %v2711_v24, %v2707_v33  ;;  %v2833_v42 = vpack.c.bf16 %v2713_v25, %v2709_v34 }
 0x2c8   :  { %v2369_v35 = vpop.f32.mrf.mxu0  ;;  %v2562_v36 = vpop.f32.mrf.mxu1  ;;  %v2368_v0 = vadd.f32 %v2367_v26, %v5985_v40  ;;  %v2561_v48 = vadd.f32 %v2560_v27, %v5987_v41 }
 0x2c9   :  { %v2832_v12 = vpack.c.bf16 %v2712_v31, %v2708_v29  ;;  %v2834_v37 = vpack.c.bf16 %v2714_v32, %v2710_v30  ;;  %4806 = vmatpush3.bf16.msra.mxu0 %v5150_v14  ;;  %v2370_v43 = vadd.f32 %v2369_v35, %v5980_v38  ;;  %v2563_v45 = vadd.f32 %v2562_v36, %v5982_v39 }
 0x2ca   :  { %v2371_v44 = vpop.f32.mrf.mxu0  ;;  %v2564_v61 = vpop.f32.mrf.mxu1  ;;  %4807 = vmatprep.subr.bf16.mxu0 %v5151_v28  ;;  %v2715_v60 = vmax.f32 %v2368_v0, 0.0  ;;  %v2717_v62 = vmax.f32 %v2561_v48, 0.0 }
 0x2cb   :  { %v2372_v46 = vadd.f32 %v2371_v44, %v5985_v40  ;;  %v2565_v47 = vadd.f32 %v2564_v61, %v5987_v41  ;;  %3194 = vmatprep.mubr.bf16.mxu0 %v2832_v12  ;;  %3355 = vmatprep.mubr.bf16.mxu1 %v2834_v37  ;;  %v2716_v56 = vmax.f32 %v2370_v43, 0.0  ;;  %v2718_v57 = vmax.f32 %v2563_v45, 0.0 }
 0x2cc   :  { %v2373_v49 = vpop.f32.mrf.mxu0  ;;  %v2566_v1 = vpop.f32.mrf.mxu1  ;;  %3195 = vmatmul.mubr.bf16.gmra.mxu0 %v2831_v10  ;;  %3356 = vmatmul.mubr.bf16.gmra.mxu1 %v2833_v42 }
 0x2cd   :  { %v2374_v50 = vadd.f32 %v2373_v49, %v5980_v38  ;;  %v2567_v51 = vadd.f32 %v2566_v1, %v5982_v39  ;;  %4808 = vmatpush3.bf16.msra.mxu0 %v5151_v28  ;;  %v2719_v52 = vmax.f32 %v2372_v46, 0.0  ;;  %v2721_v53 = vmax.f32 %v2565_v47, 0.0 }
 0x2ce   :  { %v2377_v54 = vpop.f32.mrf.mxu0  ;;  %v2570_v55 = vpop.f32.mrf.mxu1 }
 0x2cf   :  { %v2720_v58 = vmax.f32 %v2374_v50, 0.0  ;;  %v2722_v59 = vmax.f32 %v2567_v51, 0.0  ;;  %v2835_v8 = vpack.c.bf16 %v2719_v52, %v2715_v60  ;;  %v2837_v6 = vpack.c.bf16 %v2721_v53, %v2717_v62 }
 0x2d0   :  { %v2379_v63 = vpop.f32.mrf.mxu0  ;;  %v2572_v2 = vpop.f32.mrf.mxu1  ;;  %v2378_v15 = vadd.f32 %v2377_v54, %v5985_v40  ;;  %v2571_v16 = vadd.f32 %v2570_v55, %v5987_v41 }
 0x2d1   :  { %v2836_v3 = vpack.c.bf16 %v2720_v58, %v2716_v56  ;;  %v2838_v4 = vpack.c.bf16 %v2722_v59, %v2718_v57  ;;  %v2380_v5 = vadd.f32 %v2379_v63, %v5980_v38  ;;  %v2573_v11 = vadd.f32 %v2572_v2, %v5982_v39 }
 0x2d2   :  { %v2381_v7 = vpop.f32.mrf.mxu0  ;;  %v2574_v9 = vpop.f32.mrf.mxu1  ;;  %v2723_v29 = vmax.f32 %v2378_v15, 0.0  ;;  %v2725_v30 = vmax.f32 %v2571_v16, 0.0 }
 0x2d3   :  { %v2382_v13 = vadd.f32 %v2381_v7, %v5985_v40  ;;  %v2575_v14 = vadd.f32 %v2574_v9, %v5987_v41  ;;  %3202 = vmatprep.mubr.bf16.mxu0 %v2836_v3  ;;  %3363 = vmatprep.mubr.bf16.mxu1 %v2838_v4  ;;  %v2724_v25 = vmax.f32 %v2380_v5, 0.0  ;;  %v2726_v26 = vmax.f32 %v2573_v11, 0.0 }
 0x2d4   :  { %v2383_v17 = vpop.f32.mrf.mxu0  ;;  %v2576_v18 = vpop.f32.mrf.mxu1  ;;  %3203 = vmatmul.mubr.bf16.gmra.mxu0 %v2835_v8  ;;  %3364 = vmatmul.mubr.bf16.gmra.mxu1 %v2837_v6 }
 0x2d5   :  { %v2384_v19 = vadd.f32 %v2383_v17, %v5980_v38  ;;  %v2577_v20 = vadd.f32 %v2576_v18, %v5982_v39  ;;  %v2727_v21 = vmax.f32 %v2382_v13, 0.0  ;;  %v2729_v22 = vmax.f32 %v2575_v14, 0.0 }
 0x2d6   :  { %v2387_v23 = vpop.f32.mrf.mxu0  ;;  %v2580_v24 = vpop.f32.mrf.mxu1 }
 0x2d7   :  { %v2728_v27 = vmax.f32 %v2384_v19, 0.0  ;;  %v2730_v28 = vmax.f32 %v2577_v20, 0.0  ;;  %v2839_v35 = vpack.c.bf16 %v2727_v21, %v2723_v29  ;;  %v2841_v36 = vpack.c.bf16 %v2729_v22, %v2725_v30 }
 0x2d8   :  { %v2389_v31 = vpop.f32.mrf.mxu0  ;;  %v2582_v32 = vpop.f32.mrf.mxu1  ;;  %v2388_v61 = vadd.f32 %v2387_v23, %v5985_v40  ;;  %v2581_v45 = vadd.f32 %v2580_v24, %v5987_v41 }
 0x2d9   :  { %v2840_v33 = vpack.c.bf16 %v2728_v27, %v2724_v25  ;;  %v2842_v34 = vpack.c.bf16 %v2730_v28, %v2726_v26  ;;  %v2390_v12 = vadd.f32 %v2389_v31, %v5980_v38  ;;  %v2583_v42 = vadd.f32 %v2582_v32, %v5982_v39 }
 0x2da   :  { %v2391_v37 = vpop.f32.mrf.mxu0  ;;  %v2584_v10 = vpop.f32.mrf.mxu1  ;;  %v2731_v56 = vmax.f32 %v2388_v61, 0.0  ;;  %v2733_v57 = vmax.f32 %v2581_v45, 0.0 }
 0x2db   :  { %v2392_v43 = vadd.f32 %v2391_v37, %v5985_v40  ;;  %v2585_v44 = vadd.f32 %v2584_v10, %v5987_v41  ;;  %3210 = vmatprep.mubr.bf16.mxu0 %v2840_v33  ;;  %3371 = vmatprep.mubr.bf16.mxu1 %v2842_v34  ;;  %v2732_v52 = vmax.f32 %v2390_v12, 0.0  ;;  %v2734_v53 = vmax.f32 %v2583_v42, 0.0 }
 0x2dc   :  { %v2393_v46 = vpop.f32.mrf.mxu0  ;;  %v2586_v47 = vpop.f32.mrf.mxu1  ;;  %3211 = vmatmul.mubr.bf16.gmra.mxu0 %v2839_v35  ;;  %3372 = vmatmul.mubr.bf16.gmra.mxu1 %v2841_v36 }
 0x2dd   :  { %v2394_v0 = vadd.f32 %v2393_v46, %v5980_v38  ;;  %v2587_v48 = vadd.f32 %v2586_v47, %v5982_v39  ;;  %v2735_v49 = vmax.f32 %v2392_v43, 0.0  ;;  %v2737_v1 = vmax.f32 %v2585_v44, 0.0 }
 0x2de   :  { %v2397_v50 = vpop.f32.mrf.mxu0  ;;  %v2590_v51 = vpop.f32.mrf.mxu1 }
 0x2df   :  { %v2736_v54 = vmax.f32 %v2394_v0, 0.0  ;;  %v2738_v55 = vmax.f32 %v2587_v48, 0.0  ;;  %v2843_v63 = vpack.c.bf16 %v2735_v49, %v2731_v56  ;;  %v2845_v2 = vpack.c.bf16 %v2737_v1, %v2733_v57 }
 0x2e0   :  { %v2399_v58 = vpop.f32.mrf.mxu0  ;;  %v2592_v59 = vpop.f32.mrf.mxu1  ;;  %v2398_v9 = vadd.f32 %v2397_v50, %v5985_v40  ;;  %v2591_v11 = vadd.f32 %v2590_v51, %v5987_v41 }
 0x2e1   :  { %v2844_v60 = vpack.c.bf16 %v2736_v54, %v2732_v52  ;;  %v2846_v62 = vpack.c.bf16 %v2738_v55, %v2734_v53  ;;  %v2400_v3 = vadd.f32 %v2399_v58, %v5980_v38  ;;  %v2593_v6 = vadd.f32 %v2592_v59, %v5982_v39 }
 0x2e2   :  { %v2401_v4 = vpop.f32.mrf.mxu0  ;;  %v2594_v8 = vpop.f32.mrf.mxu1  ;;  %v2739_v25 = vmax.f32 %v2398_v9, 0.0  ;;  %v2741_v26 = vmax.f32 %v2591_v11, 0.0 }
 0x2e3   :  { %v2402_v5 = vadd.f32 %v2401_v4, %v5985_v40  ;;  %v2595_v7 = vadd.f32 %v2594_v8, %v5987_v41  ;;  %3218 = vmatprep.mubr.bf16.mxu0 %v2844_v60  ;;  %3379 = vmatprep.mubr.bf16.mxu1 %v2846_v62  ;;  %v2740_v21 = vmax.f32 %v2400_v3, 0.0  ;;  %v2742_v22 = vmax.f32 %v2593_v6, 0.0 }
 0x2e4   :  { %v2403_v13 = vpop.f32.mrf.mxu0  ;;  %v2596_v14 = vpop.f32.mrf.mxu1  ;;  %3219 = vmatmul.mubr.bf16.gmra.mxu0 %v2843_v63  ;;  %3380 = vmatmul.mubr.bf16.gmra.mxu1 %v2845_v2 }
 0x2e5   :  { %v2404_v15 = vadd.f32 %v2403_v13, %v5980_v38  ;;  %v2597_v16 = vadd.f32 %v2596_v14, %v5982_v39  ;;  %v2743_v17 = vmax.f32 %v2402_v5, 0.0  ;;  %v2745_v18 = vmax.f32 %v2595_v7, 0.0 }
 0x2e6   :  { %v2407_v19 = vpop.f32.mrf.mxu0  ;;  %v2600_v20 = vpop.f32.mrf.mxu1 }
 0x2e7   :  { %v2744_v23 = vmax.f32 %v2404_v15, 0.0  ;;  %v2746_v24 = vmax.f32 %v2597_v16, 0.0  ;;  %v2847_v31 = vpack.c.bf16 %v2743_v17, %v2739_v25  ;;  %v2849_v32 = vpack.c.bf16 %v2745_v18, %v2741_v26 }
 0x2e8   :  { %v2409_v27 = vpop.f32.mrf.mxu0  ;;  %v2602_v28 = vpop.f32.mrf.mxu1  ;;  %v2408_v10 = vadd.f32 %v2407_v19, %v5985_v40  ;;  %v2601_v42 = vadd.f32 %v2600_v20, %v5987_v41 }
 0x2e9   :  { %v2848_v29 = vpack.c.bf16 %v2744_v23, %v2740_v21  ;;  %v2850_v30 = vpack.c.bf16 %v2746_v24, %v2742_v22  ;;  %v2410_v33 = vadd.f32 %v2409_v27, %v5980_v38  ;;  %v2603_v36 = vadd.f32 %v2602_v28, %v5982_v39 }
 0x2ea   :  { %v2411_v34 = vpop.f32.mrf.mxu0  ;;  %v2604_v35 = vpop.f32.mrf.mxu1  ;;  %v2747_v52 = vmax.f32 %v2408_v10, 0.0  ;;  %v2749_v53 = vmax.f32 %v2601_v42, 0.0 }
 0x2eb   :  { %v2412_v12 = vadd.f32 %v2411_v34, %v5985_v40  ;;  %v2605_v37 = vadd.f32 %v2604_v35, %v5987_v41  ;;  %3226 = vmatprep.mubr.bf16.mxu0 %v2848_v29  ;;  %3387 = vmatprep.mubr.bf16.mxu1 %v2850_v30  ;;  %v2748_v49 = vmax.f32 %v2410_v33, 0.0  ;;  %v2750_v1 = vmax.f32 %v2603_v36, 0.0 }
 0x2ec   :  { %v2413_v43 = vpop.f32.mrf.mxu0  ;;  %v2606_v44 = vpop.f32.mrf.mxu1  ;;  %3227 = vmatmul.mubr.bf16.gmra.mxu0 %v2847_v31  ;;  %3388 = vmatmul.mubr.bf16.gmra.mxu1 %v2849_v32 }
 0x2ed   :  { %v2414_v61 = vadd.f32 %v2413_v43, %v5980_v38  ;;  %v2607_v45 = vadd.f32 %v2606_v44, %v5982_v39  ;;  %v2751_v46 = vmax.f32 %v2412_v12, 0.0  ;;  %v2753_v47 = vmax.f32 %v2605_v37, 0.0 }
 0x2ee   :  { %v2417_v0 = vpop.f32.mrf.mxu0  ;;  %v2610_v48 = vpop.f32.mrf.mxu1 }
 0x2ef   :  { %v2752_v50 = vmax.f32 %v2414_v61, 0.0  ;;  %v2754_v51 = vmax.f32 %v2607_v45, 0.0  ;;  %v2851_v58 = vpack.c.bf16 %v2751_v46, %v2747_v52  ;;  %v2853_v59 = vpack.c.bf16 %v2753_v47, %v2749_v53 }
 0x2f0   :  { %v2419_v54 = vpop.f32.mrf.mxu0  ;;  %v2612_v55 = vpop.f32.mrf.mxu1  ;;  %v2418_v8 = vadd.f32 %v2417_v0, %v5985_v40  ;;  %v2611_v6 = vadd.f32 %v2610_v48, %v5987_v41 }
 0x2f1   :  { %v2852_v56 = vpack.c.bf16 %v2752_v50, %v2748_v49  ;;  %v2854_v57 = vpack.c.bf16 %v2754_v51, %v2750_v1  ;;  %v2420_v60 = vadd.f32 %v2419_v54, %v5980_v38  ;;  %v2613_v2 = vadd.f32 %v2612_v55, %v5982_v39 }
 0x2f2   :  { %v2421_v62 = vpop.f32.mrf.mxu0  ;;  %v2614_v63 = vpop.f32.mrf.mxu1  ;;  %v2755_v21 = vmax.f32 %v2418_v8, 0.0  ;;  %v2757_v22 = vmax.f32 %v2611_v6, 0.0  ;;  %v5152_v8 = vld [vmem:[%s6269_s11 + $0x20] sm:$0xff]  }
 0x2f3   :  { %v2422_v3 = vadd.f32 %v2421_v62, %v5985_v40  ;;  %v2615_v4 = vadd.f32 %v2614_v63, %v5987_v41  ;;  %3234 = vmatprep.mubr.bf16.mxu0 %v2852_v56  ;;  %3395 = vmatprep.mubr.bf16.mxu1 %v2854_v57  ;;  %v2756_v17 = vmax.f32 %v2420_v60, 0.0  ;;  %v2758_v18 = vmax.f32 %v2613_v2, 0.0 }
 0x2f4   :  { %v2423_v5 = vpop.f32.mrf.mxu0  ;;  %v2616_v7 = vpop.f32.mrf.mxu1  ;;  %3235 = vmatmul.mubr.bf16.gmra.mxu0 %v2851_v58  ;;  %3396 = vmatmul.mubr.bf16.gmra.mxu1 %v2853_v59 }
 0x2f5   :  { %v2424_v9 = vadd.f32 %v2423_v5, %v5980_v38  ;;  %v2617_v11 = vadd.f32 %v2616_v7, %v5982_v39  ;;  %v2759_v13 = vmax.f32 %v2422_v3, 0.0  ;;  %v2761_v14 = vmax.f32 %v2615_v4, 0.0  ;;  %4809 = vmatprep.subr.bf16.mxu0 %v5152_v8 }
 0x2f6   :  { %v2427_v15 = vpop.f32.mrf.mxu0  ;;  %v2620_v16 = vpop.f32.mrf.mxu1  ;;  %4810 = vmatpush3.bf16.msra.mxu0 %v5152_v8 }
 0x2f7   :  { %v2760_v19 = vmax.f32 %v2424_v9, 0.0  ;;  %v2762_v20 = vmax.f32 %v2617_v11, 0.0  ;;  %v2855_v27 = vpack.c.bf16 %v2759_v13, %v2755_v21  ;;  %v2857_v28 = vpack.c.bf16 %v2761_v14, %v2757_v22 }
 0x2f8   :  { %v2429_v23 = vpop.f32.mrf.mxu0  ;;  %v2622_v24 = vpop.f32.mrf.mxu1  ;;  %v2428_v35 = vadd.f32 %v2427_v15, %v5985_v40  ;;  %v2621_v36 = vadd.f32 %v2620_v16, %v5987_v41 }
 0x2f9   :  { %v2856_v25 = vpack.c.bf16 %v2760_v19, %v2756_v17  ;;  %v2858_v26 = vpack.c.bf16 %v2762_v20, %v2758_v18  ;;  %v2430_v29 = vadd.f32 %v2429_v23, %v5980_v38  ;;  %v2623_v32 = vadd.f32 %v2622_v24, %v5982_v39 }
 0x2fa   :  { %v2431_v30 = vpop.f32.mrf.mxu0  ;;  %v2624_v31 = vpop.f32.mrf.mxu1  ;;  %v2763_v49 = vmax.f32 %v2428_v35, 0.0  ;;  %v2765_v1 = vmax.f32 %v2621_v36, 0.0  ;;  %v5153_v36 = vld [vmem:[%s6269_s11 + $0x18] sm:$0xff]  }
 0x2fb   :  { %v2432_v33 = vadd.f32 %v2431_v30, %v5985_v40  ;;  %v2625_v34 = vadd.f32 %v2624_v31, %v5987_v41  ;;  %3242 = vmatprep.mubr.bf16.mxu0 %v2856_v25  ;;  %3403 = vmatprep.mubr.bf16.mxu1 %v2858_v26  ;;  %v2764_v46 = vmax.f32 %v2430_v29, 0.0  ;;  %v2766_v47 = vmax.f32 %v2623_v32, 0.0 }
 0x2fc   :  { %v2433_v12 = vpop.f32.mrf.mxu0  ;;  %v2626_v37 = vpop.f32.mrf.mxu1  ;;  %3243 = vmatmul.mubr.bf16.gmra.mxu0 %v2855_v27  ;;  %3404 = vmatmul.mubr.bf16.gmra.mxu1 %v2857_v28 }
 0x2fd   :  { %v2434_v10 = vadd.f32 %v2433_v12, %v5980_v38  ;;  %v2627_v42 = vadd.f32 %v2626_v37, %v5982_v39  ;;  %v2767_v43 = vmax.f32 %v2432_v33, 0.0  ;;  %v2769_v44 = vmax.f32 %v2625_v34, 0.0  ;;  %4811 = vmatprep.subr.bf16.mxu0 %v5153_v36 }
 0x2fe   :  { %v2437_v61 = vpop.f32.mrf.mxu0  ;;  %v2630_v45 = vpop.f32.mrf.mxu1  ;;  %4812 = vmatpush3.bf16.msra.mxu0 %v5153_v36 }
 0x2ff   :  { %v2768_v0 = vmax.f32 %v2434_v10, 0.0  ;;  %v2770_v48 = vmax.f32 %v2627_v42, 0.0  ;;  %v2859_v54 = vpack.c.bf16 %v2767_v43, %v2763_v49  ;;  %v2861_v55 = vpack.c.bf16 %v2769_v44, %v2765_v1 }
 0x300   :  { %v2439_v50 = vpop.f32.mrf.mxu0  ;;  %v2632_v51 = vpop.f32.mrf.mxu1  ;;  %v2438_v63 = vadd.f32 %v2437_v61, %v5985_v40  ;;  %v2631_v2 = vadd.f32 %v2630_v45, %v5987_v41 }
 0x301   :  { %v2860_v52 = vpack.c.bf16 %v2768_v0, %v2764_v46  ;;  %v2862_v53 = vpack.c.bf16 %v2770_v48, %v2766_v47  ;;  %v2440_v56 = vadd.f32 %v2439_v50, %v5980_v38  ;;  %v2633_v59 = vadd.f32 %v2632_v51, %v5982_v39  ;;  %v5154_v50 = vld [vmem:[%s6269_s11 + $0x10] sm:$0xff]  }
 0x302   :  { %v2441_v57 = vpop.f32.mrf.mxu0  ;;  %v2634_v58 = vpop.f32.mrf.mxu1  ;;  %v2771_v18 = vmax.f32 %v2438_v63, 0.0  ;;  %v2773_v19 = vmax.f32 %v2631_v2, 0.0  ;;  %4813 = vmatprep.subr.bf16.mxu0 %v5154_v50 }
 0x303   :  { %v2442_v60 = vadd.f32 %v2441_v57, %v5985_v40  ;;  %v2635_v62 = vadd.f32 %v2634_v58, %v5987_v41  ;;  %3250 = vmatprep.mubr.bf16.mxu0 %v2860_v52  ;;  %3411 = vmatprep.mubr.bf16.mxu1 %v2862_v53  ;;  %v2772_v14 = vmax.f32 %v2440_v56, 0.0  ;;  %v2774_v15 = vmax.f32 %v2633_v59, 0.0 }
 0x304   :  { %v2443_v3 = vpop.f32.mrf.mxu0  ;;  %v2636_v4 = vpop.f32.mrf.mxu1  ;;  %3251 = vmatmul.mubr.bf16.gmra.mxu0 %v2859_v54  ;;  %3412 = vmatmul.mubr.bf16.gmra.mxu1 %v2861_v55 }
 0x305   :  { %v2444_v6 = vadd.f32 %v2443_v3, %v5980_v38  ;;  %v2637_v5 = vadd.f32 %v2636_v4, %v5982_v39  ;;  %v2775_v7 = vmax.f32 %v2442_v60, 0.0  ;;  %v2777_v9 = vmax.f32 %v2635_v62, 0.0  ;;  %v5155_v4 = vld [vmem:[%s6269_s11 + $0x8] sm:$0xff]   ;;  %4814 = vmatpush3.bf16.msra.mxu0 %v5154_v50 }
 0x306   :  { %v2447_v11 = vpop.f32.mrf.mxu0  ;;  %v2640_v13 = vpop.f32.mrf.mxu1  ;;  %4815 = vmatprep.subr.bf16.mxu0 %v5155_v4 }
 0x307   :  { %v2776_v16 = vmax.f32 %v2444_v6, 0.0  ;;  %v2778_v17 = vmax.f32 %v2637_v5, 0.0  ;;  %v2863_v24 = vpack.c.bf16 %v2775_v7, %v2771_v18  ;;  %v2865_v25 = vpack.c.bf16 %v2777_v9, %v2773_v19 }
 0x308   :  { %v2449_v20 = vpop.f32.mrf.mxu0  ;;  %v2642_v21 = vpop.f32.mrf.mxu1  ;;  %v2448_v32 = vadd.f32 %v2447_v11, %v5985_v40  ;;  %v2641_v33 = vadd.f32 %v2640_v13, %v5987_v41 }
 0x309   :  { %v2864_v22 = vpack.c.bf16 %v2776_v16, %v2772_v14  ;;  %v2866_v23 = vpack.c.bf16 %v2778_v17, %v2774_v15  ;;  %v2450_v26 = vadd.f32 %v2449_v20, %v5980_v38  ;;  %v2643_v29 = vadd.f32 %v2642_v21, %v5982_v39  ;;  %v5156_v21 = vld [vmem:[%s6269_s11] sm:$0xff]   ;;  %4816 = vmatpush3.bf16.msra.mxu0 %v5155_v4 }
 0x30a   :  { %v2451_v27 = vpop.f32.mrf.mxu0  ;;  %v2644_v28 = vpop.f32.mrf.mxu1  ;;  %v2779_v0 = vmax.f32 %v2448_v32, 0.0  ;;  %v2781_v48 = vmax.f32 %v2641_v33, 0.0  ;;  %4817 = vmatprep.subr.bf16.mxu0 %v5156_v21 }
 0x30b   :  { %v2452_v30 = vadd.f32 %v2451_v27, %v5985_v40  ;;  %v2645_v31 = vadd.f32 %v2644_v28, %v5987_v41  ;;  %3258 = vmatprep.mubr.bf16.mxu0 %v2864_v22  ;;  %3419 = vmatprep.mubr.bf16.mxu1 %v2866_v23  ;;  %v2780_v61 = vmax.f32 %v2450_v26, 0.0  ;;  %v2782_v45 = vmax.f32 %v2643_v29, 0.0 }
 0x30c   :  { %v2453_v34 = vpop.f32.mrf.mxu0  ;;  %v2646_v35 = vpop.f32.mrf.mxu1  ;;  %3259 = vmatmul.mubr.bf16.gmra.mxu0 %v2863_v24  ;;  %3420 = vmatmul.mubr.bf16.gmra.mxu1 %v2865_v25 }
 0x30d   :  { %v2454_v12 = vadd.f32 %v2453_v34, %v5980_v38  ;;  %v2647_v37 = vadd.f32 %v2646_v35, %v5982_v39  ;;  %v2783_v10 = vmax.f32 %v2452_v30, 0.0  ;;  %v2785_v42 = vmax.f32 %v2645_v31, 0.0  ;;  %4818 = vmatpush3.bf16.msra.mxu0 %v5156_v21 }
 0x30e   :  { %v2457_v43 = vpop.f32.mrf.mxu0  ;;  %v2650_v44 = vpop.f32.mrf.mxu1 }
 0x30f   :  { %v2784_v46 = vmax.f32 %v2454_v12, 0.0  ;;  %v2786_v47 = vmax.f32 %v2647_v37, 0.0  ;;  %v2867_v53 = vpack.c.bf16 %v2783_v10, %v2779_v0  ;;  %v2869_v54 = vpack.c.bf16 %v2785_v42, %v2781_v48 }
 0x310   :  { %v2459_v49 = vpop.f32.mrf.mxu0  ;;  %v2652_v1 = vpop.f32.mrf.mxu1  ;;  %v2458_v62 = vadd.f32 %v2457_v43, %v5985_v40  ;;  %v2651_v63 = vadd.f32 %v2650_v44, %v5987_v41 }
 0x311   :  { %v2868_v51 = vpack.c.bf16 %v2784_v46, %v2780_v61  ;;  %v2870_v52 = vpack.c.bf16 %v2786_v47, %v2782_v45  ;;  %v2460_v55 = vadd.f32 %v2459_v49, %v5980_v38  ;;  %v2653_v58 = vadd.f32 %v2652_v1, %v5982_v39 }
 0x312   :  { %v2461_v56 = vpop.f32.mrf.mxu0  ;;  %v2654_v57 = vpop.f32.mrf.mxu1  ;;  %v2787_v17 = vmax.f32 %v2458_v62, 0.0  ;;  %v2789_v18 = vmax.f32 %v2651_v63, 0.0 }
 0x313   :  { %v2462_v59 = vadd.f32 %v2461_v56, %v5985_v40  ;;  %v2655_v60 = vadd.f32 %v2654_v57, %v5987_v41  ;;  %3266 = vmatprep.mubr.bf16.mxu0 %v2868_v51  ;;  %3427 = vmatprep.mubr.bf16.mxu1 %v2870_v52  ;;  %v2788_v13 = vmax.f32 %v2460_v55, 0.0  ;;  %v2790_v14 = vmax.f32 %v2653_v58, 0.0 }
 0x314   :  { %v2463_v2 = vpop.f32.mrf.mxu0  ;;  %v2656_v3 = vpop.f32.mrf.mxu1  ;;  %3267 = vmatmul.mubr.bf16.gmra.mxu0 %v2867_v53  ;;  %3428 = vmatmul.mubr.bf16.gmra.mxu1 %v2869_v54 }
 0x315   :  { %v2464_v8 = vadd.f32 %v2463_v2, %v5980_v38  ;;  %v2657_v6 = vadd.f32 %v2656_v3, %v5982_v39  ;;  %v2791_v5 = vmax.f32 %v2462_v59, 0.0  ;;  %v2793_v7 = vmax.f32 %v2655_v60, 0.0 }
 0x316   :  { %v2467_v9 = vpop.f32.mrf.mxu0  ;;  %v2660_v11 = vpop.f32.mrf.mxu1 }
 0x317   :  { %v2792_v15 = vmax.f32 %v2464_v8, 0.0  ;;  %v2794_v16 = vmax.f32 %v2657_v6, 0.0  ;;  %v2871_v24 = vpack.c.bf16 %v2791_v5, %v2787_v17  ;;  %v2873_v25 = vpack.c.bf16 %v2793_v7, %v2789_v18 }
 0x318   :  { %v2469_v19 = vpop.f32.mrf.mxu0  ;;  %v2662_v20 = vpop.f32.mrf.mxu1  ;;  %v2468_v32 = vadd.f32 %v2467_v9, %v5985_v40  ;;  %v2661_v33 = vadd.f32 %v2660_v11, %v5987_v41 }
 0x319   :  { %v2872_v22 = vpack.c.bf16 %v2792_v15, %v2788_v13  ;;  %v2874_v23 = vpack.c.bf16 %v2794_v16, %v2790_v14  ;;  %v2470_v26 = vadd.f32 %v2469_v19, %v5980_v38  ;;  %v2663_v29 = vadd.f32 %v2662_v20, %v5982_v39 }
 0x31a   :  { %v2471_v27 = vpop.f32.mrf.mxu0  ;;  %v2664_v28 = vpop.f32.mrf.mxu1  ;;  %v2795_v47 = vmax.f32 %v2468_v32, 0.0  ;;  %v2797_v0 = vmax.f32 %v2661_v33, 0.0 }
 0x31b   :  { %v2472_v30 = vadd.f32 %v2471_v27, %v5985_v40  ;;  %v2665_v31 = vadd.f32 %v2664_v28, %v5987_v41  ;;  %3274 = vmatprep.mubr.bf16.mxu0 %v2872_v22  ;;  %3435 = vmatprep.mubr.bf16.mxu1 %v2874_v23  ;;  %v2796_v44 = vmax.f32 %v2470_v26, 0.0  ;;  %v2798_v61 = vmax.f32 %v2663_v29, 0.0 }
 0x31c   :  { %v2473_v34 = vpop.f32.mrf.mxu0  ;;  %v2666_v35 = vpop.f32.mrf.mxu1  ;;  %3275 = vmatmul.mubr.bf16.gmra.mxu0 %v2871_v24  ;;  %3436 = vmatmul.mubr.bf16.gmra.mxu1 %v2873_v25 }
 0x31d   :  { %v2474_v36 = vadd.f32 %v2473_v34, %v5980_v38  ;;  %v2667_v12 = vadd.f32 %v2666_v35, %v5982_v39  ;;  %v2799_v37 = vmax.f32 %v2472_v30, 0.0  ;;  %v2801_v10 = vmax.f32 %v2665_v31, 0.0 }
 0x31e   :  { %v2477_v42 = vpop.f32.mrf.mxu0  ;;  %v2670_v43 = vpop.f32.mrf.mxu1 }
 0x31f   :  { %v2800_v45 = vmax.f32 %v2474_v36, 0.0  ;;  %v2802_v46 = vmax.f32 %v2667_v12, 0.0  ;;  %v2875_v51 = vpack.c.bf16 %v2799_v37, %v2795_v47  ;;  %v2877_v52 = vpack.c.bf16 %v2801_v10, %v2797_v0 }
 0x320   :  { %v2479_v48 = vpop.f32.mrf.mxu0  ;;  %v2672_v49 = vpop.f32.mrf.mxu1  ;;  %v2478_v59 = vadd.f32 %v2477_v42, %v5985_v40  ;;  %v2671_v60 = vadd.f32 %v2670_v43, %v5987_v41 }
 0x321   :  { %v2876_v1 = vpack.c.bf16 %v2800_v45, %v2796_v44  ;;  %v2878_v50 = vpack.c.bf16 %v2802_v46, %v2798_v61  ;;  %v2480_v53 = vadd.f32 %v2479_v48, %v5980_v38  ;;  %v2673_v56 = vadd.f32 %v2672_v49, %v5982_v39 }
 0x322   :  { %v2481_v54 = vpop.f32.mrf.mxu0  ;;  %v2674_v55 = vpop.f32.mrf.mxu1  ;;  %v2803_v14 = vmax.f32 %v2478_v59, 0.0  ;;  %v2805_v15 = vmax.f32 %v2671_v60, 0.0 }
 0x323   :  { %v2482_v57 = vadd.f32 %v2481_v54, %v5985_v40  ;;  %v2675_v58 = vadd.f32 %v2674_v55, %v5987_v41  ;;  %3282 = vmatprep.mubr.bf16.mxu0 %v2876_v1  ;;  %3443 = vmatprep.mubr.bf16.mxu1 %v2878_v50  ;;  %v2804_v7 = vmax.f32 %v2480_v53, 0.0  ;;  %v2806_v9 = vmax.f32 %v2673_v56, 0.0 }
 0x324   :  { %v2483_v62 = vpop.f32.mrf.mxu0  ;;  %v2676_v63 = vpop.f32.mrf.mxu1  ;;  %3283 = vmatmul.mubr.bf16.gmra.mxu0 %v2875_v51  ;;  %3444 = vmatmul.mubr.bf16.gmra.mxu1 %v2877_v52 }
 0x325   :  { %v2484_v2 = vadd.f32 %v2483_v62, %v5980_v38  ;;  %v2677_v3 = vadd.f32 %v2676_v63, %v5982_v39  ;;  %v2807_v4 = vmax.f32 %v2482_v57, 0.0  ;;  %v2809_v8 = vmax.f32 %v2675_v58, 0.0 }
 0x326   :  { %v2487_v6 = vpop.f32.mrf.mxu0  ;;  %v2680_v5 = vpop.f32.mrf.mxu1 }
 0x327   :  { %v2808_v11 = vmax.f32 %v2484_v2, 0.0  ;;  %v2810_v13 = vmax.f32 %v2677_v3, 0.0  ;;  %v2879_v20 = vpack.c.bf16 %v2807_v4, %v2803_v14  ;;  %v2881_v21 = vpack.c.bf16 %v2809_v8, %v2805_v15 }
 0x328   :  { %v2489_v16 = vpop.f32.mrf.mxu0  ;;  %v2682_v17 = vpop.f32.mrf.mxu1  ;;  %v2488_v28 = vadd.f32 %v2487_v6, %v5985_v40  ;;  %v2681_v29 = vadd.f32 %v2680_v5, %v5987_v41 }
 0x329   :  { %v2880_v18 = vpack.c.bf16 %v2808_v11, %v2804_v7  ;;  %v2882_v19 = vpack.c.bf16 %v2810_v13, %v2806_v9  ;;  %v2490_v22 = vadd.f32 %v2489_v16, %v5980_v38  ;;  %v2683_v25 = vadd.f32 %v2682_v17, %v5982_v39 }
 0x32a   :  { %v2491_v23 = vpop.f32.mrf.mxu0  ;;  %v2684_v24 = vpop.f32.mrf.mxu1  ;;  %v2811_v44 = vmax.f32 %v2488_v28, 0.0  ;;  %v2813_v61 = vmax.f32 %v2681_v29, 0.0  ;;  %v5157_v28 = vld [vmem:[#allocation11 + $0x38] sm:$0xff]   ;;  %v5158_v29 = vld [vmem:[#allocation11 + $0x30] sm:$0xff]  }
 0x32b   :  { %v2492_v26 = vadd.f32 %v2491_v23, %v5985_v40  ;;  %v2685_v27 = vadd.f32 %v2684_v24, %v5987_v41  ;;  %3290 = vmatprep.mubr.bf16.mxu0 %v2880_v18  ;;  %3451 = vmatprep.mubr.bf16.mxu1 %v2882_v19  ;;  %v2812_v37 = vmax.f32 %v2490_v22, 0.0  ;;  %v2814_v10 = vmax.f32 %v2683_v25, 0.0 }
 0x32c   :  { %v2493_v30 = vpop.f32.mrf.mxu0  ;;  %v2686_v31 = vpop.f32.mrf.mxu1  ;;  %3291 = vmatmul.mubr.bf16.gmra.mxu0 %v2879_v20  ;;  %3452 = vmatmul.mubr.bf16.gmra.mxu1 %v2881_v21 }
 0x32d   :  { %v2494_v32 = vadd.f32 %v2493_v30, %v5980_v38  ;;  %v2687_v33 = vadd.f32 %v2686_v31, %v5982_v39  ;;  %v2815_v34 = vmax.f32 %v2492_v26, 0.0  ;;  %v2817_v35 = vmax.f32 %v2685_v27, 0.0  ;;  %4851 = vmatprep.subr.bf16.mxu1 %v5157_v28 }
 0x32e   :  { %v2497_v36 = vpop.f32.mrf.mxu0  ;;  %v2690_v12 = vpop.f32.mrf.mxu1  ;;  %4852 = vmatpush3.bf16.msra.mxu1 %v5157_v28 }
 0x32f   :  { %v2816_v42 = vmax.f32 %v2494_v32, 0.0  ;;  %v2818_v43 = vmax.f32 %v2687_v33, 0.0  ;;  %v2883_v48 = vpack.c.bf16 %v2815_v34, %v2811_v44  ;;  %v2885_v49 = vpack.c.bf16 %v2817_v35, %v2813_v61  ;;  %4853 = vmatprep.subr.bf16.mxu1 %v5158_v29 }
 0x330   :  { %v2499_v45 = vpop.f32.mrf.mxu0  ;;  %v2692_v46 = vpop.f32.mrf.mxu1  ;;  %v2498_v55 = vadd.f32 %v2497_v36, %v5985_v40  ;;  %v2691_v56 = vadd.f32 %v2690_v12, %v5987_v41 }
 0x331   :  { %v2884_v47 = vpack.c.bf16 %v2816_v42, %v2812_v37  ;;  %v2886_v0 = vpack.c.bf16 %v2818_v43, %v2814_v10  ;;  %v2500_v1 = vadd.f32 %v2499_v45, %v5980_v38  ;;  %v2693_v52 = vadd.f32 %v2692_v46, %v5982_v39  ;;  %v5159_v10 = vld [vmem:[#allocation11 + $0x28] sm:$0xff]  }
 0x332   :  { %v2501_v50 = vpop.f32.mrf.mxu0  ;;  %v2694_v51 = vpop.f32.mrf.mxu1  ;;  %v2819_v6 = vmax.f32 %v2498_v55, 0.0  ;;  %v2821_v5 = vmax.f32 %v2691_v56, 0.0  ;;  %4854 = vmatpush3.bf16.msra.mxu1 %v5158_v29 }
 0x333   :  { %v2502_v53 = vadd.f32 %v2501_v50, %v5985_v40  ;;  %v2695_v54 = vadd.f32 %v2694_v51, %v5987_v41  ;;  %3298 = vmatprep.mubr.bf16.mxu0 %v2884_v47  ;;  %3459 = vmatprep.mubr.bf16.mxu1 %v2886_v0  ;;  %v2820_v2 = vmax.f32 %v2500_v1, 0.0  ;;  %v2822_v3 = vmax.f32 %v2693_v52, 0.0  ;;  %v5160_v1 = vld [vmem:[#allocation11 + $0x20] sm:$0xff]  }
 0x334   :  { %v2503_v57 = vpop.f32.mrf.mxu0  ;;  %v2696_v58 = vpop.f32.mrf.mxu1  ;;  %3299 = vmatmul.mubr.bf16.gmra.mxu0 %v2883_v48  ;;  %3460 = vmatmul.mubr.bf16.gmra.mxu1 %v2885_v49 }
 0x335   :  { %v2504_v59 = vadd.f32 %v2503_v57, %v5980_v38  ;;  %v2697_v60 = vadd.f32 %v2696_v58, %v5982_v39  ;;  %v2823_v62 = vmax.f32 %v2502_v53, 0.0  ;;  %v2825_v63 = vmax.f32 %v2695_v54, 0.0  ;;  %v6144_v39 = vld [vmem:[%s6268_s10] ss:$0 sm:$0xff]  ;;  %4855 = vmatprep.subr.bf16.mxu1 %v5159_v10 }
 0x336   :  { %4856 = vmatpush3.bf16.msra.mxu1 %v5159_v10 }
 0x337   :  { %v2824_v4 = vmax.f32 %v2504_v59, 0.0  ;;  %v2826_v8 = vmax.f32 %v2697_v60, 0.0  ;;  %v2887_v9 = vpack.c.bf16 %v2823_v62, %v2819_v6  ;;  %v2889_v41 = vpack.c.bf16 %v2825_v63, %v2821_v5  ;;  %4857 = vmatprep.subr.bf16.mxu1 %v5160_v1  ;;  %v5161_v59 = vld [vmem:[#allocation11 + $0x18] sm:$0xff]  }
 0x339   :  { %v2888_v7 = vpack.c.bf16 %v2824_v4, %v2820_v2  ;;  %v2890_v40 = vpack.c.bf16 %v2826_v8, %v2822_v3 }
 0x33a   :  { %4858 = vmatpush3.bf16.msra.mxu1 %v5160_v1 }
 0x33b   :  { %3306 = vmatprep.mubr.bf16.mxu0 %v2888_v7  ;;  %3467 = vmatprep.mubr.bf16.mxu1 %v2890_v40 }
 0x33c   :  { %3307 = vmatmul.mubr.bf16.gmra.mxu0 %v2887_v9  ;;  %3468 = vmatmul.mubr.bf16.gmra.mxu1 %v2889_v41 }
 0x33d   :  { %4859 = vmatprep.subr.bf16.mxu1 %v5161_v59 }
 0x33e   :  { %4860 = vmatpush3.bf16.msra.mxu1 %v5161_v59 }
 0x384   :  { %v4547_v11 = vpop.f32.mrf.mxu0  ;;  %v4659_v38 = vpop.f32.mrf.mxu1 }
 0x386   :  { %v4548_v13 = vpop.f32.mrf.mxu0  ;;  %v4660_v14 = vpop.f32.mrf.mxu1 }
 0x387   :  { %v4549_v15 = vadd.f32 %v4548_v13, %v4547_v11  ;;  %v4661_v21 = vadd.f32 %v4660_v14, %v4659_v38 }
 0x388   :  { %v4550_v16 = vpop.f32.mrf.mxu0  ;;  %v4662_v17 = vpop.f32.mrf.mxu1 }
 0x389   :  { %v3189_v18 = vadd.f32 %v4549_v15, %v6144_v39 }
 0x38a   :  { %v4551_v19 = vpop.f32.mrf.mxu0  ;;  %v4663_v20 = vpop.f32.mrf.mxu1 }
 0x38b   :  { %v4552_v22 = vadd.f32 %v4551_v19, %v4550_v16  ;;  %v3350_v25 = vadd.f32 %v4661_v21, %v3189_v18  ;;  %v4664_v27 = vadd.f32 %v4663_v20, %v4662_v17 }
 0x38c   :  { %v4553_v23 = vpop.f32.mrf.mxu0  ;;  %v4665_v24 = vpop.f32.mrf.mxu1 }
 0x38d   :  { %v3192_v26 = vadd.f32 %v4552_v22, %v6144_v39  ;;  %v3476_v36 = vmax.f32 %v3350_v25, 0.0 }
 0x38e   :  { %v4554_v30 = vpop.f32.mrf.mxu0  ;;  %v4666_v31 = vpop.f32.mrf.mxu1 }
 0x38f   :  { %v3353_v32 = vadd.f32 %v4664_v27, %v3192_v26  ;;  %v4555_v33 = vadd.f32 %v4554_v30, %v4553_v23  ;;  %v4667_v44 = vadd.f32 %v4666_v31, %v4665_v24 }
 0x390   :  { %v4556_v34 = vpop.f32.mrf.mxu0  ;;  %v4668_v35 = vpop.f32.mrf.mxu1 }
 0x391   :  { %v3477_v12 = vmax.f32 %v3353_v32, 0.0  ;;  %v3197_v37 = vadd.f32 %v4555_v33, %v6144_v39 }
 0x392   :  { %v4557_v42 = vpop.f32.mrf.mxu0  ;;  %v4669_v43 = vpop.f32.mrf.mxu1 }
 0x393   :  { %v4558_v61 = vadd.f32 %v4557_v42, %v4556_v34  ;;  %v3508_v45 = vpack.c.bf16 %v3477_v12, %v3476_v36  ;;  %v3358_v0 = vadd.f32 %v4667_v44, %v3197_v37  ;;  %v4670_v49 = vadd.f32 %v4669_v43, %v4668_v35 }
 0x394   :  { %v4559_v46 = vpop.f32.mrf.mxu0  ;;  %v4671_v47 = vpop.f32.mrf.mxu1 }
 0x395   :  { %v3200_v48 = vadd.f32 %v4558_v61, %v6144_v39  ;;  %4819 = vmatprep.mubr.bf16.mxu0 %v3508_v45  ;;  %v3478_v56 = vmax.f32 %v3358_v0, 0.0 }
 0x396   :  { %v4560_v50 = vpop.f32.mrf.mxu0  ;;  %v4672_v51 = vpop.f32.mrf.mxu1 }
 0x397   :  { %v3361_v52 = vadd.f32 %v4670_v49, %v3200_v48  ;;  %v4561_v53 = vadd.f32 %v4560_v50, %v4559_v46  ;;  %v4673_v2 = vadd.f32 %v4672_v51, %v4671_v47 }
 0x398   :  { %v4562_v54 = vpop.f32.mrf.mxu0  ;;  %v4674_v55 = vpop.f32.mrf.mxu1 }
 0x399   :  { %v3479_v57 = vmax.f32 %v3361_v52, 0.0  ;;  %v3205_v58 = vadd.f32 %v4561_v53, %v6144_v39 }
 0x39a   :  { %v4563_v60 = vpop.f32.mrf.mxu0  ;;  %v4675_v62 = vpop.f32.mrf.mxu1 }
 0x39b   :  { %v3509_v63 = vpack.c.bf16 %v3479_v57, %v3478_v56  ;;  %v4564_v3 = vadd.f32 %v4563_v60, %v4562_v54  ;;  %v3366_v6 = vadd.f32 %v4673_v2, %v3205_v58  ;;  %v4676_v7 = vadd.f32 %v4675_v62, %v4674_v55 }
 0x39c   :  { %v4565_v4 = vpop.f32.mrf.mxu0  ;;  %v4677_v8 = vpop.f32.mrf.mxu1 }
 0x39d   :  { %v3208_v5 = vadd.f32 %v4564_v3, %v6144_v39  ;;  %4820 = vmatmul.mubr.bf16.vlgmr.msra.gmra.mxu0 %v3509_v63  ;;  %v3480_v14 = vmax.f32 %v3366_v6, 0.0 }
 0x39e   :  { %v4566_v40 = vpop.f32.mrf.mxu0  ;;  %v4678_v9 = vpop.f32.mrf.mxu1 }
 0x39f   :  { %v3369_v41 = vadd.f32 %v4676_v7, %v3208_v5  ;;  %v4567_v11 = vadd.f32 %v4566_v40, %v4565_v4  ;;  %v4679_v19 = vadd.f32 %v4678_v9, %v4677_v8 }
 0x3a0   :  { %v4568_v38 = vpop.f32.mrf.mxu0  ;;  %v4680_v13 = vpop.f32.mrf.mxu1 }
 0x3a1   :  { %v3481_v15 = vmax.f32 %v3369_v41, 0.0  ;;  %v3213_v16 = vadd.f32 %v4567_v11, %v6144_v39 }
 0x3a2   :  { %v4569_v17 = vpop.f32.mrf.mxu0  ;;  %v4681_v18 = vpop.f32.mrf.mxu1 }
 0x3a3   :  { %v4570_v20 = vadd.f32 %v4569_v17, %v4568_v38  ;;  %v3510_v21 = vpack.c.bf16 %v3481_v15, %v3480_v14  ;;  %v3374_v24 = vadd.f32 %v4679_v19, %v3213_v16  ;;  %v4682_v26 = vadd.f32 %v4681_v18, %v4680_v13 }
 0x3a4   :  { %v4571_v22 = vpop.f32.mrf.mxu0  ;;  %v4683_v23 = vpop.f32.mrf.mxu1 }
 0x3a5   :  { %v3216_v25 = vadd.f32 %v4570_v20, %v6144_v39  ;;  %4823 = vmatprep.mubr.bf16.mxu0 %v3510_v21  ;;  %v3482_v33 = vmax.f32 %v3374_v24, 0.0 }
 0x3a6   :  { %v4572_v27 = vpop.f32.mrf.mxu0  ;;  %v4684_v28 = vpop.f32.mrf.mxu1 }
 0x3a7   :  { %v3377_v29 = vadd.f32 %v4682_v26, %v3216_v25  ;;  %v4573_v30 = vadd.f32 %v4572_v27, %v4571_v22  ;;  %v4685_v10 = vadd.f32 %v4684_v28, %v4683_v23 }
 0x3a8   :  { %v4574_v31 = vpop.f32.mrf.mxu0  ;;  %v4686_v32 = vpop.f32.mrf.mxu1 }
 0x3a9   :  { %v3483_v34 = vmax.f32 %v3377_v29, 0.0  ;;  %v3221_v35 = vadd.f32 %v4573_v30, %v6144_v39 }
 0x3aa   :  { %v4575_v36 = vpop.f32.mrf.mxu0  ;;  %v4687_v12 = vpop.f32.mrf.mxu1 }
 0x3ab   :  { %v3511_v37 = vpack.c.bf16 %v3483_v34, %v3482_v33  ;;  %v4576_v42 = vadd.f32 %v4575_v36, %v4574_v31  ;;  %v3382_v61 = vadd.f32 %v4685_v10, %v3221_v35  ;;  %v4688_v46 = vadd.f32 %v4687_v12, %v4686_v32 }
 0x3ac   :  { %v4577_v43 = vpop.f32.mrf.mxu0  ;;  %v4689_v44 = vpop.f32.mrf.mxu1 }
 0x3ad   :  { %v3224_v45 = vadd.f32 %v4576_v42, %v6144_v39  ;;  %4824 = vmatmul.mubr.bf16.gmra.mxu0 %v3511_v37  ;;  %v3484_v51 = vmax.f32 %v3382_v61, 0.0 }
 0x3ae   :  { %v4578_v47 = vpop.f32.mrf.mxu0  ;;  %v4690_v0 = vpop.f32.mrf.mxu1 }
 0x3af   :  { %v3385_v48 = vadd.f32 %v4688_v46, %v3224_v45  ;;  %v4579_v49 = vadd.f32 %v4578_v47, %v4577_v43  ;;  %v4691_v56 = vadd.f32 %v4690_v0, %v4689_v44 }
 0x3b0   :  { %v4580_v1 = vpop.f32.mrf.mxu0  ;;  %v4692_v50 = vpop.f32.mrf.mxu1 }
 0x3b1   :  { %v3485_v52 = vmax.f32 %v3385_v48, 0.0  ;;  %v3229_v53 = vadd.f32 %v4579_v49, %v6144_v39 }
 0x3b2   :  { %v4581_v54 = vpop.f32.mrf.mxu0  ;;  %v4693_v55 = vpop.f32.mrf.mxu1 }
 0x3b3   :  { %v4582_v57 = vadd.f32 %v4581_v54, %v4580_v1  ;;  %v3512_v58 = vpack.c.bf16 %v3485_v52, %v3484_v51  ;;  %v3390_v62 = vadd.f32 %v4691_v56, %v3229_v53  ;;  %v4694_v2 = vadd.f32 %v4693_v55, %v4692_v50 }
 0x3b4   :  { %v4583_v59 = vpop.f32.mrf.mxu0  ;;  %v4695_v60 = vpop.f32.mrf.mxu1 }
 0x3b5   :  { %v3232_v63 = vadd.f32 %v4582_v57, %v6144_v39  ;;  %4827 = vmatprep.mubr.bf16.mxu0 %v3512_v58  ;;  %v3486_v40 = vmax.f32 %v3390_v62, 0.0 }
 0x3b6   :  { %v4584_v3 = vpop.f32.mrf.mxu0  ;;  %v4696_v4 = vpop.f32.mrf.mxu1 }
 0x3b7   :  { %v3393_v8 = vadd.f32 %v4694_v2, %v3232_v63  ;;  %v4585_v6 = vadd.f32 %v4584_v3, %v4583_v59  ;;  %v4697_v14 = vadd.f32 %v4696_v4, %v4695_v60 }
 0x3b8   :  { %v4586_v5 = vpop.f32.mrf.mxu0  ;;  %v4698_v7 = vpop.f32.mrf.mxu1 }
 0x3b9   :  { %v3487_v9 = vmax.f32 %v3393_v8, 0.0  ;;  %v3237_v41 = vadd.f32 %v4585_v6, %v6144_v39 }
 0x3ba   :  { %v4587_v11 = vpop.f32.mrf.mxu0  ;;  %v4699_v38 = vpop.f32.mrf.mxu1 }
 0x3bb   :  { %v3513_v13 = vpack.c.bf16 %v3487_v9, %v3486_v40  ;;  %v4588_v15 = vadd.f32 %v4587_v11, %v4586_v5  ;;  %v3398_v18 = vadd.f32 %v4697_v14, %v3237_v41  ;;  %v4700_v20 = vadd.f32 %v4699_v38, %v4698_v7 }
 0x3bc   :  { %v4589_v16 = vpop.f32.mrf.mxu0  ;;  %v4701_v17 = vpop.f32.mrf.mxu1 }
 0x3bd   :  { %v3240_v19 = vadd.f32 %v4588_v15, %v6144_v39  ;;  %4828 = vmatmul.mubr.bf16.gmra.mxu0 %v3513_v13  ;;  %v3488_v27 = vmax.f32 %v3398_v18, 0.0 }
 0x3be   :  { %v4590_v21 = vpop.f32.mrf.mxu0  ;;  %v4702_v22 = vpop.f32.mrf.mxu1 }
 0x3bf   :  { %v3401_v23 = vadd.f32 %v4700_v20, %v3240_v19  ;;  %v4591_v24 = vadd.f32 %v4590_v21, %v4589_v16  ;;  %v4703_v32 = vadd.f32 %v4702_v22, %v4701_v17 }
 0x3c0   :  { %v4592_v25 = vpop.f32.mrf.mxu0  ;;  %v4704_v26 = vpop.f32.mrf.mxu1 }
 0x3c1   :  { %v3489_v28 = vmax.f32 %v3401_v23, 0.0  ;;  %v3245_v29 = vadd.f32 %v4591_v24, %v6144_v39 }
 0x3c2   :  { %v4593_v30 = vpop.f32.mrf.mxu0  ;;  %v4705_v31 = vpop.f32.mrf.mxu1 }
 0x3c3   :  { %v4594_v33 = vadd.f32 %v4593_v30, %v4592_v25  ;;  %v3514_v34 = vpack.c.bf16 %v3489_v28, %v3488_v27  ;;  %v3406_v12 = vadd.f32 %v4703_v32, %v3245_v29  ;;  %v4706_v10 = vadd.f32 %v4705_v31, %v4704_v26 }
 0x3c4   :  { %v4595_v35 = vpop.f32.mrf.mxu0  ;;  %v4707_v36 = vpop.f32.mrf.mxu1 }
 0x3c5   :  { %v3248_v37 = vadd.f32 %v4594_v33, %v6144_v39  ;;  %4831 = vmatprep.mubr.bf16.mxu0 %v3514_v34  ;;  %v3490_v47 = vmax.f32 %v3406_v12, 0.0 }
 0x3c6   :  { %v4596_v42 = vpop.f32.mrf.mxu0  ;;  %v4708_v43 = vpop.f32.mrf.mxu1 }
 0x3c7   :  { %v3409_v44 = vadd.f32 %v4706_v10, %v3248_v37  ;;  %v4597_v61 = vadd.f32 %v4596_v42, %v4595_v35  ;;  %v4709_v51 = vadd.f32 %v4708_v43, %v4707_v36  ;;  %v5162_v36 = vld [vmem:[#allocation11 + $0x10] sm:$0xff]  }
 0x3c8   :  { %v4598_v45 = vpop.f32.mrf.mxu0  ;;  %v4710_v46 = vpop.f32.mrf.mxu1  ;;  %4861 = vmatprep.subr.bf16.mxu1 %v5162_v36 }
 0x3c9   :  { %v3491_v0 = vmax.f32 %v3409_v44, 0.0  ;;  %v3253_v48 = vadd.f32 %v4597_v61, %v6144_v39  ;;  %4862 = vmatpush3.bf16.msra.mxu1 %v5162_v36 }
 0x3ca   :  { %v4599_v49 = vpop.f32.mrf.mxu0  ;;  %v4711_v1 = vpop.f32.mrf.mxu1 }
 0x3cb   :  { %v3515_v50 = vpack.c.bf16 %v3491_v0, %v3490_v47  ;;  %v4600_v52 = vadd.f32 %v4599_v49, %v4598_v45  ;;  %v3414_v55 = vadd.f32 %v4709_v51, %v3253_v48  ;;  %v4712_v57 = vadd.f32 %v4711_v1, %v4710_v46  ;;  %v5163_v47 = vld [vmem:[#allocation11 + $0x8] sm:$0xff]  }
 0x3cc   :  { %v4601_v53 = vpop.f32.mrf.mxu0  ;;  %v4713_v54 = vpop.f32.mrf.mxu1  ;;  %4863 = vmatprep.subr.bf16.mxu1 %v5163_v47 }
 0x3cd   :  { %v3256_v56 = vadd.f32 %v4600_v52, %v6144_v39  ;;  %4832 = vmatmul.mubr.bf16.gmra.mxu0 %v3515_v50  ;;  %v3492_v3 = vmax.f32 %v3414_v55, 0.0  ;;  %4864 = vmatpush3.bf16.msra.mxu1 %v5163_v47 }
 0x3ce   :  { %v4602_v58 = vpop.f32.mrf.mxu0  ;;  %v4714_v59 = vpop.f32.mrf.mxu1 }
 0x3cf   :  { %v3417_v60 = vadd.f32 %v4712_v57, %v3256_v56  ;;  %v4603_v62 = vadd.f32 %v4602_v58, %v4601_v53  ;;  %v4715_v7 = vadd.f32 %v4714_v59, %v4713_v54  ;;  %v5164_v56 = vld [vmem:[#allocation11] sm:$0xff]  }
 0x3d0   :  { %v4604_v63 = vpop.f32.mrf.mxu0  ;;  %v4716_v2 = vpop.f32.mrf.mxu1  ;;  %4865 = vmatprep.subr.bf16.mxu1 %v5164_v56 }
 0x3d1   :  { %v3493_v4 = vmax.f32 %v3417_v60, 0.0  ;;  %v3261_v8 = vadd.f32 %v4603_v62, %v6144_v39  ;;  %4866 = vmatpush3.bf16.msra.mxu1 %v5164_v56 }
 0x3d2   :  { %v4605_v6 = vpop.f32.mrf.mxu0  ;;  %v4717_v5 = vpop.f32.mrf.mxu1 }
 0x3d3   :  { %v4606_v40 = vadd.f32 %v4605_v6, %v4604_v63  ;;  %v3516_v9 = vpack.c.bf16 %v3493_v4, %v3492_v3  ;;  %v3422_v38 = vadd.f32 %v4715_v7, %v3261_v8  ;;  %v4718_v14 = vadd.f32 %v4717_v5, %v4716_v2 }
 0x3d4   :  { %v4607_v41 = vpop.f32.mrf.mxu0  ;;  %v4719_v11 = vpop.f32.mrf.mxu1 }
 0x3d5   :  { %v3264_v13 = vadd.f32 %v4606_v40, %v6144_v39  ;;  %4835 = vmatprep.mubr.bf16.mxu0 %v3516_v9  ;;  %v3494_v21 = vmax.f32 %v3422_v38, 0.0 }
 0x3d6   :  { %v4608_v15 = vpop.f32.mrf.mxu0  ;;  %v4720_v16 = vpop.f32.mrf.mxu1 }
 0x3d7   :  { %v3425_v17 = vadd.f32 %v4718_v14, %v3264_v13  ;;  %v4609_v18 = vadd.f32 %v4608_v15, %v4607_v41  ;;  %v4721_v27 = vadd.f32 %v4720_v16, %v4719_v11 }
 0x3d8   :  { %v4610_v19 = vpop.f32.mrf.mxu0  ;;  %v4722_v20 = vpop.f32.mrf.mxu1 }
 0x3d9   :  { %v3495_v22 = vmax.f32 %v3425_v17, 0.0  ;;  %v3269_v23 = vadd.f32 %v4609_v18, %v6144_v39 }
 0x3da   :  { %v4611_v24 = vpop.f32.mrf.mxu0  ;;  %v4723_v25 = vpop.f32.mrf.mxu1 }
 0x3db   :  { %v3517_v26 = vpack.c.bf16 %v3495_v22, %v3494_v21  ;;  %v4612_v28 = vadd.f32 %v4611_v24, %v4610_v19  ;;  %v3430_v31 = vadd.f32 %v4721_v27, %v3269_v23  ;;  %v4724_v33 = vadd.f32 %v4723_v25, %v4722_v20 }
 0x3dc   :  { %v4613_v29 = vpop.f32.mrf.mxu0  ;;  %v4725_v30 = vpop.f32.mrf.mxu1 }
 0x3dd   :  { %v3272_v32 = vadd.f32 %v4612_v28, %v6144_v39  ;;  %4836 = vmatmul.mubr.bf16.gmra.mxu0 %v3517_v26  ;;  %v3496_v43 = vmax.f32 %v3430_v31, 0.0 }
 0x3de   :  { %v4614_v34 = vpop.f32.mrf.mxu0  ;;  %v4726_v35 = vpop.f32.mrf.mxu1 }
 0x3df   :  { %v3433_v12 = vadd.f32 %v4724_v33, %v3272_v32  ;;  %v4615_v37 = vadd.f32 %v4614_v34, %v4613_v29  ;;  %v4727_v0 = vadd.f32 %v4726_v35, %v4725_v30 }
 0x3e0   :  { %v4616_v10 = vpop.f32.mrf.mxu0  ;;  %v4728_v42 = vpop.f32.mrf.mxu1 }
 0x3e1   :  { %v3497_v44 = vmax.f32 %v3433_v12, 0.0  ;;  %v3277_v61 = vadd.f32 %v4615_v37, %v6144_v39 }
 0x3e2   :  { %v4617_v45 = vpop.f32.mrf.mxu0  ;;  %v4729_v46 = vpop.f32.mrf.mxu1 }
 0x3e3   :  { %v4618_v48 = vadd.f32 %v4617_v45, %v4616_v10  ;;  %v3518_v49 = vpack.c.bf16 %v3497_v44, %v3496_v43  ;;  %v3438_v51 = vadd.f32 %v4727_v0, %v3277_v61  ;;  %v4730_v53 = vadd.f32 %v4729_v46, %v4728_v42 }
 0x3e4   :  { %v4619_v1 = vpop.f32.mrf.mxu0  ;;  %v4731_v50 = vpop.f32.mrf.mxu1 }
 0x3e5   :  { %v3280_v52 = vadd.f32 %v4618_v48, %v6144_v39  ;;  %4839 = vmatprep.mubr.bf16.mxu0 %v3518_v49  ;;  %v3498_v62 = vmax.f32 %v3438_v51, 0.0 }
 0x3e6   :  { %v4620_v54 = vpop.f32.mrf.mxu0  ;;  %v4732_v55 = vpop.f32.mrf.mxu1 }
 0x3e7   :  { %v3441_v57 = vadd.f32 %v4730_v53, %v3280_v52  ;;  %v4621_v58 = vadd.f32 %v4620_v54, %v4619_v1  ;;  %v4733_v6 = vadd.f32 %v4732_v55, %v4731_v50 }
 0x3e8   :  { %v4622_v59 = vpop.f32.mrf.mxu0  ;;  %v4734_v60 = vpop.f32.mrf.mxu1 }
 0x3e9   :  { %v3499_v63 = vmax.f32 %v3441_v57, 0.0  ;;  %v3285_v2 = vadd.f32 %v4621_v58, %v6144_v39 }
 0x3ea   :  { %v4623_v3 = vpop.f32.mrf.mxu0  ;;  %v4735_v4 = vpop.f32.mrf.mxu1 }
 0x3eb   :  { %v3519_v8 = vpack.c.bf16 %v3499_v63, %v3498_v62  ;;  %v4624_v5 = vadd.f32 %v4623_v3, %v4622_v59  ;;  %v3446_v9 = vadd.f32 %v4733_v6, %v3285_v2  ;;  %v4736_v11 = vadd.f32 %v4735_v4, %v4734_v60 }
 0x3ec   :  { %v4625_v7 = vpop.f32.mrf.mxu0  ;;  %v4737_v40 = vpop.f32.mrf.mxu1 }
 0x3ed   :  { %v3288_v41 = vadd.f32 %v4624_v5, %v6144_v39  ;;  %4840 = vmatmul.mubr.bf16.gmra.mxu0 %v3519_v8  ;;  %v3500_v18 = vmax.f32 %v3446_v9, 0.0 }
 0x3ee   :  { %v4626_v38 = vpop.f32.mrf.mxu0  ;;  %v4738_v13 = vpop.f32.mrf.mxu1 }
 0x3ef   :  { %v3449_v14 = vadd.f32 %v4736_v11, %v3288_v41  ;;  %v4627_v15 = vadd.f32 %v4626_v38, %v4625_v7  ;;  %v4739_v23 = vadd.f32 %v4738_v13, %v4737_v40  ;;  %v6181_v41 = vld [vmem:[%s6270_s12] ss:$0 sm:$0xff] }
 0x3f0   :  { %v4628_v16 = vpop.f32.mrf.mxu0  ;;  %v4740_v17 = vpop.f32.mrf.mxu1 }
 0x3f1   :  { %v3501_v19 = vmax.f32 %v3449_v14, 0.0  ;;  %v3293_v20 = vadd.f32 %v4627_v15, %v6144_v39 }
 0x3f2   :  { %v4629_v21 = vpop.f32.mrf.mxu0  ;;  %v4741_v22 = vpop.f32.mrf.mxu1 }
 0x3f3   :  { %v4630_v24 = vadd.f32 %v4629_v21, %v4628_v16  ;;  %v3520_v25 = vpack.c.bf16 %v3501_v19, %v3500_v18  ;;  %v3454_v28 = vadd.f32 %v4739_v23, %v3293_v20  ;;  %v4742_v30 = vadd.f32 %v4741_v22, %v4740_v17 }
 0x3f4   :  { %v4631_v26 = vpop.f32.mrf.mxu0  ;;  %v4743_v27 = vpop.f32.mrf.mxu1 }
 0x3f5   :  { %v3296_v29 = vadd.f32 %v4630_v24, %v6144_v39  ;;  %4843 = vmatprep.mubr.bf16.mxu0 %v3520_v25  ;;  %v3502_v12 = vmax.f32 %v3454_v28, 0.0 }
 0x3f6   :  { %v4632_v31 = vpop.f32.mrf.mxu0  ;;  %v4744_v32 = vpop.f32.mrf.mxu1 }
 0x3f7   :  { %v3457_v33 = vadd.f32 %v4742_v30, %v3296_v29  ;;  %v4633_v34 = vadd.f32 %v4632_v31, %v4631_v26  ;;  %v4745_v61 = vadd.f32 %v4744_v32, %v4743_v27 }
 0x3f8   :  { %v4634_v35 = vpop.f32.mrf.mxu0  ;;  %v4746_v36 = vpop.f32.mrf.mxu1 }
 0x3f9   :  { %v3503_v37 = vmax.f32 %v3457_v33, 0.0  ;;  %v3301_v10 = vadd.f32 %v4633_v34, %v6144_v39 }
 0x3fa   :  { %v4635_v42 = vpop.f32.mrf.mxu0  ;;  %v4747_v43 = vpop.f32.mrf.mxu1 }
 0x3fb   :  { %v3521_v44 = vpack.c.bf16 %v3503_v37, %v3502_v12  ;;  %v4636_v45 = vadd.f32 %v4635_v42, %v4634_v35  ;;  %v3462_v0 = vadd.f32 %v4745_v61, %v3301_v10  ;;  %v4748_v49 = vadd.f32 %v4747_v43, %v4746_v36 }
 0x3fc   :  { %v4637_v46 = vpop.f32.mrf.mxu0  ;;  %v4749_v47 = vpop.f32.mrf.mxu1 }
 0x3fd   :  { %v3304_v48 = vadd.f32 %v4636_v45, %v6144_v39  ;;  %4844 = vmatmul.mubr.bf16.gmra.mxu0 %v3521_v44  ;;  %v3504_v55 = vmax.f32 %v3462_v0, 0.0 }
 0x3fe   :  { %v4638_v1 = vpop.f32.mrf.mxu0  ;;  %v4750_v50 = vpop.f32.mrf.mxu1 }
 0x3ff   :  { %v3465_v51 = vadd.f32 %v4748_v49, %v3304_v48  ;;  %v4639_v52 = vadd.f32 %v4638_v1, %v4637_v46  ;;  %v4751_v60 = vadd.f32 %v4750_v50, %v4749_v47 }
 0x400   :  { %v4640_v53 = vpop.f32.mrf.mxu0  ;;  %v4752_v54 = vpop.f32.mrf.mxu1 }
 0x401   :  { %v3505_v56 = vmax.f32 %v3465_v51, 0.0  ;;  %v3309_v57 = vadd.f32 %v4639_v52, %v6144_v39 }
 0x402   :  { %v4641_v58 = vpop.f32.mrf.mxu0  ;;  %v4753_v59 = vpop.f32.mrf.mxu1 }
 0x403   :  { %v4642_v62 = vadd.f32 %v4641_v58, %v4640_v53  ;;  %v3522_v63 = vpack.c.bf16 %v3505_v56, %v3504_v55  ;;  %v3470_v2 = vadd.f32 %v4751_v60, %v3309_v57  ;;  %v4754_v4 = vadd.f32 %v4753_v59, %v4752_v54 }
 0x405   :  { %v3312_v3 = vadd.f32 %v4642_v62, %v6144_v39  ;;  %4847 = vmatprep.mubr.bf16.mxu0 %v3522_v63  ;;  %v3506_v6 = vmax.f32 %v3470_v2, 0.0 }
 0x407   :  { %v3473_v8 = vadd.f32 %v4754_v4, %v3312_v3 }
 0x409   :  { %v3507_v5 = vmax.f32 %v3473_v8, 0.0 }
 0x40b   :  { %v3523_v7 = vpack.c.bf16 %v3507_v5, %v3506_v6 }
 0x40d   :  { %4848 = vmatmul.mubr.bf16.gmra.mxu0 %v3523_v7 }
 0x45d   :  { %v4821_v40 = vpop.f32.mrf.mxu0 }
 0x45e   :  { %v3638_v39 = vadd.f32 %v4821_v40, %v6181_v41 }
 0x45f   :  { %v3629_v9 = vpop.f32.mrf.mxu0 }
 0x460   :  { %v3630_v38 = vadd.f32 %v6181_v41, %v3629_v9  ;;  %v3758_v19 = vmax.f32 %v3638_v39, 0.0 }
 0x461   :  { %v4822_v11 = vpop.f32.mrf.mxu0 }
 0x462   :  { %v3641_v13 = vadd.f32 %v4822_v11, %v6181_v41  ;;  %v3756_v17 = vmax.f32 %v3630_v38, 0.0 }
 0x463   :  { %v3632_v14 = vpop.f32.mrf.mxu0 }
 0x464   :  { %v3633_v15 = vadd.f32 %v6181_v41, %v3632_v14  ;;  %v3759_v16 = vmax.f32 %v3641_v13, 0.0 }
 0x466   :  { %v3757_v18 = vmax.f32 %v3633_v15, 0.0  ;;  %v3789_v21 = vpack.c.bf16 %v3759_v16, %v3758_v19 }
 0x468   :  { %v3788_v20 = vpack.c.bf16 %v3757_v18, %v3756_v17 }
 0x46a   :  { %4867 = vmatprep.mubr.bf16.mxu1 %v3788_v20 }
 0x46b   :  { %4868 = vmatmul.mubr.bf16.vlgmr.msra.gmra.mxu1 %v3789_v21 }
 0x46d   :  { %v4825_v22 = vpop.f32.mrf.mxu0 }
 0x46e   :  { %v3654_v27 = vadd.f32 %v4825_v22, %v6181_v41 }
 0x46f   :  { %v3645_v23 = vpop.f32.mrf.mxu0 }
 0x470   :  { %v3646_v25 = vadd.f32 %v6181_v41, %v3645_v23  ;;  %v3762_v33 = vmax.f32 %v3654_v27, 0.0 }
 0x471   :  { %v4826_v24 = vpop.f32.mrf.mxu0 }
 0x472   :  { %v3657_v26 = vadd.f32 %v4826_v24, %v6181_v41  ;;  %v3760_v31 = vmax.f32 %v3646_v25, 0.0 }
 0x473   :  { %v3648_v28 = vpop.f32.mrf.mxu0 }
 0x474   :  { %v3649_v29 = vadd.f32 %v6181_v41, %v3648_v28  ;;  %v3763_v30 = vmax.f32 %v3657_v26, 0.0 }
 0x476   :  { %v3761_v32 = vmax.f32 %v3649_v29, 0.0  ;;  %v3791_v35 = vpack.c.bf16 %v3763_v30, %v3762_v33 }
 0x478   :  { %v3790_v34 = vpack.c.bf16 %v3761_v32, %v3760_v31 }
 0x47a   :  { %4871 = vmatprep.mubr.bf16.mxu1 %v3790_v34 }
 0x47b   :  { %4872 = vmatmul.mubr.bf16.gmra.mxu1 %v3791_v35 }
 0x47d   :  { %v4829_v36 = vpop.f32.mrf.mxu0 }
 0x47e   :  { %v3670_v43 = vadd.f32 %v4829_v36, %v6181_v41 }
 0x47f   :  { %v3661_v12 = vpop.f32.mrf.mxu0 }
 0x480   :  { %v3662_v10 = vadd.f32 %v6181_v41, %v3661_v12  ;;  %v3766_v0 = vmax.f32 %v3670_v43, 0.0 }
 0x481   :  { %v4830_v37 = vpop.f32.mrf.mxu0 }
 0x482   :  { %v3673_v42 = vadd.f32 %v4830_v37, %v6181_v41  ;;  %v3764_v46 = vmax.f32 %v3662_v10, 0.0 }
 0x483   :  { %v3664_v44 = vpop.f32.mrf.mxu0 }
 0x484   :  { %v3665_v61 = vadd.f32 %v6181_v41, %v3664_v44  ;;  %v3767_v45 = vmax.f32 %v3673_v42, 0.0 }
 0x486   :  { %v3765_v47 = vmax.f32 %v3665_v61, 0.0  ;;  %v3793_v49 = vpack.c.bf16 %v3767_v45, %v3766_v0 }
 0x488   :  { %v3792_v48 = vpack.c.bf16 %v3765_v47, %v3764_v46 }
 0x48a   :  { %4875 = vmatprep.mubr.bf16.mxu1 %v3792_v48 }
 0x48b   :  { %4876 = vmatmul.mubr.bf16.gmra.mxu1 %v3793_v49 }
 0x48d   :  { %v4833_v1 = vpop.f32.mrf.mxu0 }
 0x48e   :  { %v3686_v54 = vadd.f32 %v4833_v1, %v6181_v41 }
 0x48f   :  { %v3677_v50 = vpop.f32.mrf.mxu0 }
 0x490   :  { %v3678_v52 = vadd.f32 %v6181_v41, %v3677_v50  ;;  %v3770_v60 = vmax.f32 %v3686_v54, 0.0 }
 0x491   :  { %v4834_v51 = vpop.f32.mrf.mxu0 }
 0x492   :  { %v3689_v53 = vadd.f32 %v4834_v51, %v6181_v41  ;;  %v3768_v58 = vmax.f32 %v3678_v52, 0.0 }
 0x493   :  { %v3680_v55 = vpop.f32.mrf.mxu0 }
 0x494   :  { %v3681_v56 = vadd.f32 %v6181_v41, %v3680_v55  ;;  %v3771_v57 = vmax.f32 %v3689_v53, 0.0 }
 0x496   :  { %v3769_v59 = vmax.f32 %v3681_v56, 0.0  ;;  %v3795_v63 = vpack.c.bf16 %v3771_v57, %v3770_v60  ;;  %v6218_v56 = vld [vmem:[%s6272_s14] ss:$0 sm:$0xff]  ;;  %s5456_s14 = smov [#allocation13]  }
 0x497   :  { %s4265_s17 = sshll.u32 %s5456_s14, 4  ;;  %s4266_s17 = int_to_ptr.vmem [resolvable:$true] %s4265_s17 }
 0x498   :  { %v3794_v62 = vpack.c.bf16 %v3769_v59, %v3768_v58  ;;  %s5413_s3 = scalar_lea.vmem %s4266_s17, 4096  ;;  %p5418_p3 = scmp.lt.s32.totalorder %s4266_s17, %s4266_s17 }
 0x499   :  { %p5414_p2 = scmp.ne.s32.totalorder %s4266_s17, %s5413_s3  ;;  %p5419_p4 = scmp.lt.s32.totalorder %s5413_s3, %s5413_s3 }
 0x49a   :  { %4879 = vmatprep.mubr.bf16.mxu1 %v3794_v62 }
 0x49b   :  { %4880 = vmatmul.mubr.bf16.gmra.mxu1 %v3795_v63  ;;  %p5420_p5 = por %p5419_p4, %p5418_p3 }
 0x49d   :  { %v4837_v2 = vpop.f32.mrf.mxu0  ;;  %p5421_p6 = pnand %p5420_p5, %p5414_p2 }
 0x49e   :  { %v3702_v5 = vadd.f32 %v4837_v2, %v6181_v41 }
 0x49f   :  { %v3693_v3 = vpop.f32.mrf.mxu0 }
 0x4a0   :  { %v3694_v8 = vadd.f32 %v6181_v41, %v3693_v3  ;;  %v3774_v13 = vmax.f32 %v3702_v5, 0.0 }
 0x4a1   :  { %v4838_v4 = vpop.f32.mrf.mxu0 }
 0x4a2   :  { %v3705_v6 = vadd.f32 %v4838_v4, %v6181_v41  ;;  %v3772_v11 = vmax.f32 %v3694_v8, 0.0 }
 0x4a3   :  { %v3696_v7 = vpop.f32.mrf.mxu0 }
 0x4a4   :  { %v3697_v40 = vadd.f32 %v6181_v41, %v3696_v7  ;;  %v3775_v9 = vmax.f32 %v3705_v6, 0.0 }
 0x4a6   :  { %v3773_v38 = vmax.f32 %v3697_v40, 0.0  ;;  %v3797_v14 = vpack.c.bf16 %v3775_v9, %v3774_v13 }
 0x4a8   :  { %v3796_v39 = vpack.c.bf16 %v3773_v38, %v3772_v11 }
 0x4aa   :  { %4883 = vmatprep.mubr.bf16.mxu1 %v3796_v39 }
 0x4ab   :  { %4884 = vmatmul.mubr.bf16.gmra.mxu1 %v3797_v14 }
 0x4ad   :  { %v4841_v15 = vpop.f32.mrf.mxu0 }
 0x4ae   :  { %v3718_v20 = vadd.f32 %v4841_v15, %v6181_v41 }
 0x4af   :  { %v3709_v16 = vpop.f32.mrf.mxu0 }
 0x4b0   :  { %v3710_v18 = vadd.f32 %v6181_v41, %v3709_v16  ;;  %v3778_v26 = vmax.f32 %v3718_v20, 0.0 }
 0x4b1   :  { %v4842_v17 = vpop.f32.mrf.mxu0 }
 0x4b2   :  { %v3721_v19 = vadd.f32 %v4842_v17, %v6181_v41  ;;  %v3776_v24 = vmax.f32 %v3710_v18, 0.0 }
 0x4b3   :  { %v3712_v21 = vpop.f32.mrf.mxu0 }
 0x4b4   :  { %v3713_v22 = vadd.f32 %v6181_v41, %v3712_v21  ;;  %v3779_v23 = vmax.f32 %v3721_v19, 0.0 }
 0x4b6   :  { %v3777_v25 = vmax.f32 %v3713_v22, 0.0  ;;  %v3799_v28 = vpack.c.bf16 %v3779_v23, %v3778_v26 }
 0x4b8   :  { %v3798_v27 = vpack.c.bf16 %v3777_v25, %v3776_v24 }
 0x4ba   :  { %4887 = vmatprep.mubr.bf16.mxu1 %v3798_v27 }
 0x4bb   :  { %4888 = vmatmul.mubr.bf16.gmra.mxu1 %v3799_v28 }
 0x4bd   :  { %v4845_v29 = vpop.f32.mrf.mxu0 }
 0x4be   :  { %v3734_v34 = vadd.f32 %v4845_v29, %v6181_v41 }
 0x4bf   :  { %v3725_v30 = vpop.f32.mrf.mxu0 }
 0x4c0   :  { %v3726_v32 = vadd.f32 %v6181_v41, %v3725_v30  ;;  %v3782_v42 = vmax.f32 %v3734_v34, 0.0 }
 0x4c1   :  { %v4846_v31 = vpop.f32.mrf.mxu0 }
 0x4c2   :  { %v3737_v33 = vadd.f32 %v4846_v31, %v6181_v41  ;;  %v3780_v37 = vmax.f32 %v3726_v32, 0.0 }
 0x4c3   :  { %v3728_v35 = vpop.f32.mrf.mxu0 }
 0x4c4   :  { %v3729_v36 = vadd.f32 %v6181_v41, %v3728_v35  ;;  %v3783_v12 = vmax.f32 %v3737_v33, 0.0 }
 0x4c6   :  { %v3781_v10 = vmax.f32 %v3729_v36, 0.0  ;;  %v3801_v44 = vpack.c.bf16 %v3783_v12, %v3782_v42 }
 0x4c8   :  { %v3800_v43 = vpack.c.bf16 %v3781_v10, %v3780_v37 }
 0x4ca   :  { %4891 = vmatprep.mubr.bf16.mxu1 %v3800_v43 }
 0x4cb   :  { %4892 = vmatmul.mubr.bf16.gmra.mxu1 %v3801_v44 }
 0x4cd   :  { %v4849_v61 = vpop.f32.mrf.mxu0 }
 0x4ce   :  { %v3750_v48 = vadd.f32 %v4849_v61, %v6181_v41 }
 0x4cf   :  { %v3741_v45 = vpop.f32.mrf.mxu0 }
 0x4d0   :  { %v3742_v47 = vadd.f32 %v6181_v41, %v3741_v45  ;;  %v3786_v53 = vmax.f32 %v3750_v48, 0.0 }
 0x4d1   :  { %v4850_v46 = vpop.f32.mrf.mxu0 }
 0x4d2   :  { %v3753_v0 = vadd.f32 %v4850_v46, %v6181_v41  ;;  %v3784_v51 = vmax.f32 %v3742_v47, 0.0 }
 0x4d3   :  { %v3744_v49 = vpop.f32.mrf.mxu0 }
 0x4d4   :  { %v3745_v1 = vadd.f32 %v6181_v41, %v3744_v49  ;;  %v3787_v50 = vmax.f32 %v3753_v0, 0.0 }
 0x4d6   :  { %v3785_v52 = vmax.f32 %v3745_v1, 0.0  ;;  %v3803_v55 = vpack.c.bf16 %v3787_v50, %v3786_v53 }
 0x4d8   :  { %v3802_v54 = vpack.c.bf16 %v3785_v52, %v3784_v51 }
 0x4da   :  { %4895 = vmatprep.mubr.bf16.mxu1 %v3802_v54 }
 0x4db   :  { %4896 = vmatmul.mubr.bf16.gmra.mxu1 %v3803_v55 }
 0x52b   :  { %v4869_v57 = vpop.f32.mrf.mxu1 }
 0x52c   :  { %v3918_v58 = vadd.f32 %v4869_v57, %v6218_v56 }
 0x52d   :  { %v3909_v59 = vpop.f32.mrf.mxu1 }
 0x52e   :  { %v4501_v60 = vmul.f32 -1.442695, %v3918_v58  ;;  %v3910_v41 = vadd.f32 %v6218_v56, %v3909_v59 }
 0x52f   :  { %v4870_v62 = vpop.f32.mrf.mxu1 }
 0x530   :  { %5165 = vpow2.f32 %v4501_v60  ;;  %v4499_v63 = vmul.f32 -1.442695, %v3910_v41  ;;  %v3921_v2 = vadd.f32 %v4870_v62, %v6218_v56 }
 0x531   :  { %v3912_v3 = vpop.f32.mrf.mxu1 }
 0x532   :  { %5167 = vpow2.f32 %v4499_v63  ;;  %v4502_v4 = vmul.f32 -1.442695, %v3921_v2  ;;  %v3913_v8 = vadd.f32 %v6218_v56, %v3912_v3 }
 0x534   :  { %5169 = vpow2.f32 %v4502_v4  ;;  %v4500_v6 = vmul.f32 -1.442695, %v3913_v8 }
 0x536   :  { %5171 = vpow2.f32 %v4500_v6 }
 0x53b   :  { %v4873_v5 = vpop.f32.mrf.mxu1 }
 0x53c   :  { %v3934_v7 = vadd.f32 %v4873_v5, %v6218_v56 }
 0x53d   :  { %v5166_v40 = vpop.eup %5165  ;;  %v3925_v9 = vpop.f32.mrf.mxu1 }
 0x53e   :  { %v4134_v11 = vadd.f32 1.0, %v5166_v40  ;;  %v4505_v38 = vmul.f32 -1.442695, %v3934_v7  ;;  %v3926_v13 = vadd.f32 %v6218_v56, %v3925_v9 }
 0x53f   :  { %v5168_v39 = vpop.eup %5167  ;;  %v4874_v14 = vpop.f32.mrf.mxu1 }
 0x540   :  { %5173 = vrcp.f32 %v4134_v11  ;;  %v4132_v15 = vadd.f32 1.0, %v5168_v39  ;;  %v4503_v16 = vmul.f32 -1.442695, %v3926_v13  ;;  %v3937_v17 = vadd.f32 %v4874_v14, %v6218_v56 }
 0x541   :  { %v5170_v18 = vpop.eup %5169  ;;  %5175 = vpow2.f32 %v4505_v38  ;;  %v3928_v19 = vpop.f32.mrf.mxu1 }
 0x542   :  { %5177 = vrcp.f32 %v4132_v15  ;;  %v4135_v20 = vadd.f32 1.0, %v5170_v18  ;;  %v4506_v21 = vmul.f32 -1.442695, %v3937_v17  ;;  %v3929_v22 = vadd.f32 %v6218_v56, %v3928_v19 }
 0x543   :  { %v5172_v23 = vpop.eup %5171  ;;  %5179 = vpow2.f32 %v4503_v16 }
 0x544   :  { %5181 = vrcp.f32 %v4135_v20  ;;  %v4133_v24 = vadd.f32 1.0, %v5172_v23  ;;  %v4504_v25 = vmul.f32 -1.442695, %v3929_v22 }
 0x545   :  { %5183 = vpow2.f32 %v4506_v21 }
 0x546   :  { %5185 = vrcp.f32 %v4133_v24 }
 0x547   :  { %5187 = vpow2.f32 %v4504_v25 }
 0x54b   :  { %v4877_v26 = vpop.f32.mrf.mxu1 }
 0x54c   :  { %v3950_v27 = vadd.f32 %v4877_v26, %v6218_v56 }
 0x54d   :  { %v5174_v28 = vpop.eup %5173  ;;  %v3941_v29 = vpop.f32.mrf.mxu1 }
 0x54e   :  { %v5176_v30 = vpop.eup %5175  ;;  %4230 = vst [vmem:[#allocation13 + $0x10] sm:$0xff] %v5174_v28  ;;  %v4509_v31 = vmul.f32 -1.442695, %v3950_v27  ;;  %v3942_v32 = vadd.f32 %v6218_v56, %v3941_v29 }
 0x54f   :  { %v5178_v33 = vpop.eup %5177  ;;  %v4138_v34 = vadd.f32 1.0, %v5176_v30  ;;  %v4878_v35 = vpop.f32.mrf.mxu1 }
 0x550   :  { %v5180_v36 = vpop.eup %5179  ;;  %4228 = vst [vmem:[#allocation13] sm:$0xff] %v5178_v33  ;;  %5189 = vpow2.f32 %v4509_v31  ;;  %v4507_v12 = vmul.f32 -1.442695, %v3942_v32  ;;  %v3953_v37 = vadd.f32 %v4878_v35, %v6218_v56 }
 0x551   :  { %v5182_v10 = vpop.eup %5181  ;;  %5191 = vrcp.f32 %v4138_v34  ;;  %v4136_v42 = vadd.f32 1.0, %v5180_v36  ;;  %v3944_v43 = vpop.f32.mrf.mxu1 }
 0x552   :  { %v5184_v44 = vpop.eup %5183  ;;  %4231 = vst [vmem:[#allocation13 + $0x18] sm:$0xff] %v5182_v10  ;;  %5193 = vpow2.f32 %v4507_v12  ;;  %v4510_v61 = vmul.f32 -1.442695, %v3953_v37  ;;  %v3945_v45 = vadd.f32 %v6218_v56, %v3944_v43 }
 0x553   :  { %v5186_v46 = vpop.eup %5185  ;;  %5195 = vrcp.f32 %v4136_v42  ;;  %v4139_v47 = vadd.f32 1.0, %v5184_v44 }
 0x554   :  { %v5188_v0 = vpop.eup %5187  ;;  %4229 = vst [vmem:[#allocation13 + $0x8] sm:$0xff] %v5186_v46  ;;  %5197 = vpow2.f32 %v4510_v61  ;;  %v4508_v48 = vmul.f32 -1.442695, %v3945_v45 }
 0x555   :  { %5199 = vrcp.f32 %v4139_v47  ;;  %v4137_v49 = vadd.f32 1.0, %v5188_v0 }
 0x556   :  { %5201 = vpow2.f32 %v4508_v48 }
 0x557   :  { %5203 = vrcp.f32 %v4137_v49 }
 0x55b   :  { %v4881_v1 = vpop.f32.mrf.mxu1 }
 0x55c   :  { %v3966_v50 = vadd.f32 %v4881_v1, %v6218_v56 }
 0x55d   :  { %v5190_v51 = vpop.eup %5189  ;;  %v3957_v52 = vpop.f32.mrf.mxu1 }
 0x55e   :  { %v5192_v53 = vpop.eup %5191  ;;  %v4142_v54 = vadd.f32 1.0, %v5190_v51  ;;  %v4513_v55 = vmul.f32 -1.442695, %v3966_v50  ;;  %v3958_v57 = vadd.f32 %v6218_v56, %v3957_v52 }
 0x55f   :  { %v5194_v58 = vpop.eup %5193  ;;  %4234 = vst [vmem:[#allocation13 + $0x30] sm:$0xff] %v5192_v53  ;;  %v4882_v59 = vpop.f32.mrf.mxu1 }
 0x560   :  { %v5196_v60 = vpop.eup %5195  ;;  %5205 = vrcp.f32 %v4142_v54  ;;  %v4140_v41 = vadd.f32 1.0, %v5194_v58  ;;  %v4511_v62 = vmul.f32 -1.442695, %v3958_v57  ;;  %v3969_v63 = vadd.f32 %v4882_v59, %v6218_v56 }
 0x561   :  { %v5198_v2 = vpop.eup %5197  ;;  %4232 = vst [vmem:[#allocation13 + $0x20] sm:$0xff] %v5196_v60  ;;  %5207 = vpow2.f32 %v4513_v55  ;;  %v3960_v3 = vpop.f32.mrf.mxu1 }
 0x562   :  { %v5200_v4 = vpop.eup %5199  ;;  %5209 = vrcp.f32 %v4140_v41  ;;  %v4143_v8 = vadd.f32 1.0, %v5198_v2  ;;  %v4514_v6 = vmul.f32 -1.442695, %v3969_v63  ;;  %v3961_v5 = vadd.f32 %v6218_v56, %v3960_v3 }
 0x563   :  { %v5202_v7 = vpop.eup %5201  ;;  %4235 = vst [vmem:[#allocation13 + $0x38] sm:$0xff] %v5200_v4  ;;  %5211 = vpow2.f32 %v4511_v62 }
 0x564   :  { %v5204_v40 = vpop.eup %5203  ;;  %5213 = vrcp.f32 %v4143_v8  ;;  %v4141_v9 = vadd.f32 1.0, %v5202_v7  ;;  %v4512_v11 = vmul.f32 -1.442695, %v3961_v5 }
 0x565   :  { %4233 = vst [vmem:[#allocation13 + $0x28] sm:$0xff] %v5204_v40  ;;  %5215 = vpow2.f32 %v4514_v6 }
 0x566   :  { %5217 = vrcp.f32 %v4141_v9 }
 0x567   :  { %5219 = vpow2.f32 %v4512_v11 }
 0x56b   :  { %v4885_v38 = vpop.f32.mrf.mxu1 }
 0x56c   :  { %v3982_v13 = vadd.f32 %v4885_v38, %v6218_v56 }
 0x56d   :  { %v5206_v39 = vpop.eup %5205  ;;  %v3973_v14 = vpop.f32.mrf.mxu1 }
 0x56e   :  { %v5208_v15 = vpop.eup %5207  ;;  %4238 = vst [vmem:[#allocation13 + $0x50] sm:$0xff] %v5206_v39  ;;  %v4517_v16 = vmul.f32 -1.442695, %v3982_v13  ;;  %v3974_v17 = vadd.f32 %v6218_v56, %v3973_v14 }
 0x56f   :  { %v5210_v18 = vpop.eup %5209  ;;  %v4146_v19 = vadd.f32 1.0, %v5208_v15  ;;  %v4886_v20 = vpop.f32.mrf.mxu1 }
 0x570   :  { %v5212_v21 = vpop.eup %5211  ;;  %4236 = vst [vmem:[#allocation13 + $0x40] sm:$0xff] %v5210_v18  ;;  %5221 = vpow2.f32 %v4517_v16  ;;  %v4515_v22 = vmul.f32 -1.442695, %v3974_v17  ;;  %v3985_v23 = vadd.f32 %v4886_v20, %v6218_v56 }
 0x571   :  { %v5214_v24 = vpop.eup %5213  ;;  %5223 = vrcp.f32 %v4146_v19  ;;  %v4144_v25 = vadd.f32 1.0, %v5212_v21  ;;  %v3976_v26 = vpop.f32.mrf.mxu1 }
 0x572   :  { %v5216_v27 = vpop.eup %5215  ;;  %4239 = vst [vmem:[#allocation13 + $0x58] sm:$0xff] %v5214_v24  ;;  %5225 = vpow2.f32 %v4515_v22  ;;  %v4518_v28 = vmul.f32 -1.442695, %v3985_v23  ;;  %v3977_v29 = vadd.f32 %v6218_v56, %v3976_v26 }
 0x573   :  { %v5218_v30 = vpop.eup %5217  ;;  %5227 = vrcp.f32 %v4144_v25  ;;  %v4147_v31 = vadd.f32 1.0, %v5216_v27 }
 0x574   :  { %v5220_v32 = vpop.eup %5219  ;;  %4237 = vst [vmem:[#allocation13 + $0x48] sm:$0xff] %v5218_v30  ;;  %5229 = vpow2.f32 %v4518_v28  ;;  %v4516_v33 = vmul.f32 -1.442695, %v3977_v29 }
 0x575   :  { %5231 = vrcp.f32 %v4147_v31  ;;  %v4145_v34 = vadd.f32 1.0, %v5220_v32 }
 0x576   :  { %5233 = vpow2.f32 %v4516_v33 }
 0x577   :  { %5235 = vrcp.f32 %v4145_v34 }
 0x57b   :  { %v4889_v35 = vpop.f32.mrf.mxu1 }
 0x57c   :  { %v3998_v36 = vadd.f32 %v4889_v35, %v6218_v56 }
 0x57d   :  { %v5222_v12 = vpop.eup %5221  ;;  %v3989_v37 = vpop.f32.mrf.mxu1 }
 0x57e   :  { %v5224_v10 = vpop.eup %5223  ;;  %v4150_v42 = vadd.f32 1.0, %v5222_v12  ;;  %v4521_v43 = vmul.f32 -1.442695, %v3998_v36  ;;  %v3990_v44 = vadd.f32 %v6218_v56, %v3989_v37 }
 0x57f   :  { %v5226_v61 = vpop.eup %5225  ;;  %4242 = vst [vmem:[#allocation13 + $0x70] sm:$0xff] %v5224_v10  ;;  %v4890_v45 = vpop.f32.mrf.mxu1 }
 0x580   :  { %v5228_v46 = vpop.eup %5227  ;;  %5237 = vrcp.f32 %v4150_v42  ;;  %v4148_v47 = vadd.f32 1.0, %v5226_v61  ;;  %v4519_v0 = vmul.f32 -1.442695, %v3990_v44  ;;  %v4001_v48 = vadd.f32 %v4890_v45, %v6218_v56 }
 0x581   :  { %v5230_v49 = vpop.eup %5229  ;;  %4240 = vst [vmem:[#allocation13 + $0x60] sm:$0xff] %v5228_v46  ;;  %5239 = vpow2.f32 %v4521_v43  ;;  %v3992_v1 = vpop.f32.mrf.mxu1 }
 0x582   :  { %v5232_v50 = vpop.eup %5231  ;;  %5241 = vrcp.f32 %v4148_v47  ;;  %v4151_v51 = vadd.f32 1.0, %v5230_v49  ;;  %v4522_v52 = vmul.f32 -1.442695, %v4001_v48  ;;  %v3993_v53 = vadd.f32 %v6218_v56, %v3992_v1 }
 0x583   :  { %v5234_v54 = vpop.eup %5233  ;;  %4243 = vst [vmem:[#allocation13 + $0x78] sm:$0xff] %v5232_v50  ;;  %5243 = vpow2.f32 %v4519_v0 }
 0x584   :  { %v5236_v55 = vpop.eup %5235  ;;  %5245 = vrcp.f32 %v4151_v51  ;;  %v4149_v57 = vadd.f32 1.0, %v5234_v54  ;;  %v4520_v58 = vmul.f32 -1.442695, %v3993_v53 }
 0x585   :  { %4241 = vst [vmem:[#allocation13 + $0x68] sm:$0xff] %v5236_v55  ;;  %5247 = vpow2.f32 %v4522_v52 }
 0x586   :  { %5249 = vrcp.f32 %v4149_v57 }
 0x587   :  { %5251 = vpow2.f32 %v4520_v58 }
 0x58b   :  { %v4893_v59 = vpop.f32.mrf.mxu1 }
 0x58c   :  { %v4014_v60 = vadd.f32 %v4893_v59, %v6218_v56 }
 0x58d   :  { %v5238_v41 = vpop.eup %5237  ;;  %v4005_v62 = vpop.f32.mrf.mxu1 }
 0x58e   :  { %v5240_v63 = vpop.eup %5239  ;;  %4246 = vst [vmem:[#allocation13 + $0x90] sm:$0xff] %v5238_v41  ;;  %v4525_v2 = vmul.f32 -1.442695, %v4014_v60  ;;  %v4006_v3 = vadd.f32 %v6218_v56, %v4005_v62 }
 0x58f   :  { %v5242_v4 = vpop.eup %5241  ;;  %v4154_v8 = vadd.f32 1.0, %v5240_v63  ;;  %v4894_v6 = vpop.f32.mrf.mxu1 }
 0x590   :  { %v5244_v5 = vpop.eup %5243  ;;  %4244 = vst [vmem:[#allocation13 + $0x80] sm:$0xff] %v5242_v4  ;;  %5253 = vpow2.f32 %v4525_v2  ;;  %v4523_v7 = vmul.f32 -1.442695, %v4006_v3  ;;  %v4017_v40 = vadd.f32 %v4894_v6, %v6218_v56 }
 0x591   :  { %v5246_v9 = vpop.eup %5245  ;;  %5255 = vrcp.f32 %v4154_v8  ;;  %v4152_v11 = vadd.f32 1.0, %v5244_v5  ;;  %v4008_v38 = vpop.f32.mrf.mxu1 }
 0x592   :  { %v5248_v13 = vpop.eup %5247  ;;  %4247 = vst [vmem:[#allocation13 + $0x98] sm:$0xff] %v5246_v9  ;;  %5257 = vpow2.f32 %v4523_v7  ;;  %v4526_v39 = vmul.f32 -1.442695, %v4017_v40  ;;  %v4009_v14 = vadd.f32 %v6218_v56, %v4008_v38 }
 0x593   :  { %v5250_v15 = vpop.eup %5249  ;;  %5259 = vrcp.f32 %v4152_v11  ;;  %v4155_v16 = vadd.f32 1.0, %v5248_v13 }
 0x594   :  { %v5252_v17 = vpop.eup %5251  ;;  %4245 = vst [vmem:[#allocation13 + $0x88] sm:$0xff] %v5250_v15  ;;  %5261 = vpow2.f32 %v4526_v39  ;;  %v4524_v18 = vmul.f32 -1.442695, %v4009_v14 }
 0x595   :  { %5263 = vrcp.f32 %v4155_v16  ;;  %v4153_v19 = vadd.f32 1.0, %v5252_v17 }
 0x596   :  { %5265 = vpow2.f32 %v4524_v18 }
 0x597   :  { %5267 = vrcp.f32 %v4153_v19 }
 0x59b   :  { %v4897_v20 = vpop.f32.mrf.mxu1 }
 0x59c   :  { %v4030_v21 = vadd.f32 %v4897_v20, %v6218_v56 }
 0x59d   :  { %v5254_v22 = vpop.eup %5253  ;;  %v4021_v23 = vpop.f32.mrf.mxu1 }
 0x59e   :  { %v5256_v24 = vpop.eup %5255  ;;  %v4158_v25 = vadd.f32 1.0, %v5254_v22  ;;  %v4529_v26 = vmul.f32 -1.442695, %v4030_v21  ;;  %v4022_v27 = vadd.f32 %v6218_v56, %v4021_v23 }
 0x59f   :  { %v5258_v28 = vpop.eup %5257  ;;  %4250 = vst [vmem:[#allocation13 + $0xb0] sm:$0xff] %v5256_v24  ;;  %v4898_v29 = vpop.f32.mrf.mxu1 }
 0x5a0   :  { %v5260_v30 = vpop.eup %5259  ;;  %5269 = vrcp.f32 %v4158_v25  ;;  %v4156_v31 = vadd.f32 1.0, %v5258_v28  ;;  %v4527_v32 = vmul.f32 -1.442695, %v4022_v27  ;;  %v4033_v33 = vadd.f32 %v4898_v29, %v6218_v56 }
 0x5a1   :  { %v5262_v34 = vpop.eup %5261  ;;  %4248 = vst [vmem:[#allocation13 + $0xa0] sm:$0xff] %v5260_v30  ;;  %5271 = vpow2.f32 %v4529_v26  ;;  %v4024_v35 = vpop.f32.mrf.mxu1 }
 0x5a2   :  { %v5264_v36 = vpop.eup %5263  ;;  %5273 = vrcp.f32 %v4156_v31  ;;  %v4159_v12 = vadd.f32 1.0, %v5262_v34  ;;  %v4530_v37 = vmul.f32 -1.442695, %v4033_v33  ;;  %v4025_v10 = vadd.f32 %v6218_v56, %v4024_v35 }
 0x5a3   :  { %v5266_v42 = vpop.eup %5265  ;;  %4251 = vst [vmem:[#allocation13 + $0xb8] sm:$0xff] %v5264_v36  ;;  %5275 = vpow2.f32 %v4527_v32 }
 0x5a4   :  { %v5268_v43 = vpop.eup %5267  ;;  %5277 = vrcp.f32 %v4159_v12  ;;  %v4157_v44 = vadd.f32 1.0, %v5266_v42  ;;  %v4528_v61 = vmul.f32 -1.442695, %v4025_v10 }
 0x5a5   :  { %4249 = vst [vmem:[#allocation13 + $0xa8] sm:$0xff] %v5268_v43  ;;  %5279 = vpow2.f32 %v4530_v37 }
 0x5a6   :  { %5281 = vrcp.f32 %v4157_v44 }
 0x5a7   :  { %5283 = vpow2.f32 %v4528_v61 }
 0x5ad   :  { %v5270_v45 = vpop.eup %5269 }
 0x5ae   :  { %v5272_v46 = vpop.eup %5271  ;;  %4254 = vst [vmem:[#allocation13 + $0xd0] sm:$0xff] %v5270_v45 }
 0x5af   :  { %v5274_v47 = vpop.eup %5273  ;;  %v4162_v0 = vadd.f32 1.0, %v5272_v46 }
 0x5b0   :  { %v5276_v48 = vpop.eup %5275  ;;  %4252 = vst [vmem:[#allocation13 + $0xc0] sm:$0xff] %v5274_v47 }
 0x5b1   :  { %v5278_v49 = vpop.eup %5277  ;;  %5285 = vrcp.f32 %v4162_v0  ;;  %v4160_v56 = vadd.f32 1.0, %v5276_v48 }
 0x5b2   :  { %v5280_v1 = vpop.eup %5279  ;;  %4255 = vst [vmem:[#allocation13 + $0xd8] sm:$0xff] %v5278_v49 }
 0x5b3   :  { %v5282_v50 = vpop.eup %5281  ;;  %5287 = vrcp.f32 %v4160_v56  ;;  %v4163_v51 = vadd.f32 1.0, %v5280_v1 }
 0x5b4   :  { %v5284_v52 = vpop.eup %5283  ;;  %4253 = vst [vmem:[#allocation13 + $0xc8] sm:$0xff] %v5282_v50 }
 0x5b5   :  { %5289 = vrcp.f32 %v4163_v51  ;;  %v4161_v53 = vadd.f32 1.0, %v5284_v52 }
 0x5b7   :  { %5291 = vrcp.f32 %v4161_v53 }
 0x5be   :  { %v5286_v54 = vpop.eup %5285 }
 0x5bf   :  { %4258 = vst [vmem:[#allocation13 + $0xf0] sm:$0xff] %v5286_v54 }
 0x5c0   :  { %v5288_v55 = vpop.eup %5287 }
 0x5c1   :  { %4256 = vst [vmem:[#allocation13 + $0xe0] sm:$0xff] %v5288_v55 }
 0x5c2   :  { %v5290_v57 = vpop.eup %5289 }
 0x5c3   :  { %4259 = vst [vmem:[#allocation13 + $0xf8] sm:$0xff] %v5290_v57 }
 0x5c4   :  { %v5292_v58 = vpop.eup %5291 }
 0x5c5   :  { %4257 = vst [vmem:[#allocation13 + $0xe8] sm:$0xff] %v5292_v58 }
 0x5c6   :  { %5424 = shalt.err (!%p5421_p6)
}
 0x5c7   :  { %4271 = dma.vmem_to_hbm [thread:$0]  %s4266_s17, 4096, %s6273_s15, [#allocation4], %s5445_s23, %s5445_s23, %s5446_s24  }
 0x5c8   :  { %5441 = dma.done.wait [#allocation4], 4096  }
 0x5c9   :  { %5442 = vsyncadd [#allocation4], 4294963200 }
 0x5ca   :  { %4275 = vsyncpa [#allocation3], 1 }
 0x5cb   :  { %4276 = vsyncpa [#allocation6], 1 }
 0x5cc   :  { %4277 = vsyncpa [#allocation9], 1 }
 0x5cd   :  { %4278 = vsyncpa [#allocation12], 1 }
 0x5ce   :  { %4279 = vsyncpa [#allocation4], 1 }

</bundles_post_ra>
